<compile_context>
chip_gen: v7x
topology: tpu7x:2x2x1
jax: 0.10.0
libtpu: 0.0.40
codegen_flags: <defaults>
</compile_context>

<pallas_src>
import functools
import numpy as np

import jax
import jax.numpy as jnp
from jax import lax
from jax.experimental import pallas as pl
from jax.experimental.pallas import tpu as pltpu

EPS = 1e-5  # LayerNorm / BatchNorm eps (PyTorch default)


# ----------------------------------------------------------------------------
# Elementwise helpers usable inside kernels (only Mosaic-supported ops).
# ----------------------------------------------------------------------------
def _erf(x):
    # Abramowitz & Stegun 7.1.26 rational approximation (|err| < 1.5e-7),
    # numerically equivalent to exact erf at the test tolerance.
    a1, a2, a3, a4, a5 = (0.254829592, -0.284496736, 1.421413741,
                          -1.453152027, 1.061405429)
    p = 0.3275911
    s = jnp.where(x < 0.0, -1.0, 1.0)
    ax = jnp.abs(x)
    t = 1.0 / (1.0 + p * ax)
    poly = ((((a5 * t + a4) * t + a3) * t + a2) * t + a1) * t
    return s * (1.0 - poly * jnp.exp(-ax * ax))


def _gelu_exact(x):
    # PyTorch nn.GELU() default is the exact erf-based GELU.
    return 0.5 * x * (1.0 + _erf(x * (1.0 / np.sqrt(2.0))))


def _layernorm(x, gamma, beta):
    mu = jnp.mean(x, axis=-1, keepdims=True)
    var = jnp.mean((x - mu) ** 2, axis=-1, keepdims=True)
    return (x - mu) * lax.rsqrt(var + EPS) * gamma + beta


def _full_spec(a):
    nd = a.ndim
    return pl.BlockSpec(a.shape, lambda i, _nd=nd: (0,) * _nd)


# ----------------------------------------------------------------------------
# Single fused kernel: patch embed + all encoder blocks + classification head
# ----------------------------------------------------------------------------
def conformer_kernel(x_ref, pos_ref,
                     w1_ref, b1_ref, w2_ref, b2_ref,
                     ln1g_ref, ln1b_ref, wqkv_ref, bqkv_ref, wo_ref, bo_ref,
                     ln2g_ref, ln2b_ref, wf1_ref, bf1_ref, wf2_ref, bf2_ref,
                     hg_ref, hb_ref, hw_ref, hbias_ref,
                     o_ref, *, batch, num_heads):
    f32 = jnp.float32
    B = batch
    S = x_ref.shape[0] // B
    depth, _, E = ln1g_ref.shape
    D = E // num_heads
    # NOTE: the reference module scales attention by emb_size**0.5
    # (not head_dim**0.5) — keep that behaviour.
    scale = 1.0 / (E ** 0.5)

    # ---- patch embedding: pos add -> 1x1 conv (matmul) + folded BN -> ReLU x2
    x = x_ref[...] + pos_ref[...]                                   # (B*S, F)
    h = jnp.dot(x, w1_ref[...], preferred_element_type=f32) + b1_ref[...]
    h = jnp.maximum(h, 0.0)
    h = jnp.dot(h, w2_ref[...], preferred_element_type=f32) + b2_ref[...]
    x = jnp.maximum(h, 0.0)                                         # (B*S, E)

    # ---- transformer encoder blocks (static loop over stacked weights) ----
    for l in range(depth):
        # sublayer 1: LayerNorm -> MHA -> residual
        xn = _layernorm(x, ln1g_ref[l], ln1b_ref[l])
        qkv = (jnp.dot(xn, wqkv_ref[l], preferred_element_type=f32)
               + bqkv_ref[l])                                       # (B*S, 3E)
        wo_l = wo_ref[l]                                            # (E, E)

        outs = []
        for b in range(B):                                          # static
            r0 = b * S
            acc = jnp.zeros((S, E), f32)
            for hh in range(num_heads):                             # static
                c0 = hh * D
                qh = qkv[r0:r0 + S, c0:c0 + D]                      # (S, D)
                kh = qkv[r0:r0 + S, E + c0:E + c0 + D]
                vh = qkv[r0:r0 + S, 2 * E + c0:2 * E + c0 + D]
                e = lax.dot_general(qh, kh, (((1,), (1,)), ((), ())),
                                    preferred_element_type=f32) * scale
                e = e - jnp.max(e, axis=-1, keepdims=True)
                p = jnp.exp(e)
                att = p * pl.reciprocal(jnp.sum(p, axis=-1, keepdims=True),
                                        approx=True)
                ctx = jnp.dot(att, vh, preferred_element_type=f32)  # (S, D)
                # per-head accumulation into the output projection (no concat)
                acc = acc + jnp.dot(ctx, wo_l[c0:c0 + D, :],
                                    preferred_element_type=f32)
            outs.append(acc)
        x = x + jnp.concatenate(outs, axis=0) + bo_ref[l]

        # sublayer 2: LayerNorm -> FFN (GELU) -> residual
        xn2 = _layernorm(x, ln2g_ref[l], ln2b_ref[l])
        hf = jnp.dot(xn2, wf1_ref[l], preferred_element_type=f32) + bf1_ref[l]
        hf = _gelu_exact(hf)
        x = x + jnp.dot(hf, wf2_ref[l], preferred_element_type=f32) + bf2_ref[l]

    # ---- classification head on the CLS token (seq position 0 per batch) ----
    cls = jnp.concatenate([x[b * S:b * S + 1, :] for b in range(B)], axis=0)
    cn = _layernorm(cls, hg_ref[...], hb_ref[...])
    o_ref[...] = (jnp.dot(cn, hw_ref[...], preferred_element_type=f32)
                  + hbias_ref[...])


# ----------------------------------------------------------------------------
# Wrapper: fold eval-mode BN, stack per-layer weights, one pallas_call
# ----------------------------------------------------------------------------
def conformer_forward(x_in, params, *, num_heads):
    # x_in: (B, 1, C, F)  (NCHW as in the PyTorch module)
    B = x_in.shape[0]
    C = x_in.shape[2]
    F = x_in.shape[3]
    pe = params['pe']
    E2 = pe['w1'].shape[1]
    E = pe['w2'].shape[1]
    depth = len(params['layers'])
    hp = params['head']
    n_classes = hp['w'].shape[1]
    S = C  # sequence length == num_channels

    # Merge batch into rows (metadata-only reshape); tile pos to match.
    x2d = x_in[:, 0].reshape(B * S, F)
    pos2d = jnp.tile(params['pos'], (B, 1))                          # (B*S, F)

    # Fold eval-mode BatchNorm into the 1x1 convs (exact algebra).
    s1 = pe['g1'] * lax.rsqrt(pe['v1'] + EPS)
    w1 = pe['w1'] * s1
    b1 = (pe['b1'] - pe['m1']) * s1 + pe['be1']
    s2 = pe['g2'] * lax.rsqrt(pe['v2'] + EPS)
    w2 = pe['w2'] * s2
    b2 = (pe['b2'] - pe['m2']) * s2 + pe['be2']

    stk = lambda k: jnp.stack([lp[k] for lp in params['layers']], axis=0)
    wqkv = jnp.stack([jnp.concatenate([lp['wq'], lp['wk'], lp['wv']], axis=1)
                      for lp in params['layers']], axis=0)           # (L,E,3E)
    bqkv = jnp.stack([jnp.concatenate([lp['bq'], lp['bk'], lp['bv']], axis=1)
                      for lp in params['layers']], axis=0)           # (L,1,3E)

    args = (x2d, pos2d, w1, b1, w2, b2,
            stk('ln1g'), stk('ln1b'), wqkv, bqkv, stk('wo'), stk('bo'),
            stk('ln2g'), stk('ln2b'), stk('wf1'), stk('bf1'),
            stk('wf2'), stk('bf2'),
            hp['g'], hp['b'], hp['w'], hp['bias'])

    # Advisory cost estimate for the XLA scheduler.
    flops = (2 * B * S * (F * E2 + E2 * E)
             + depth * 2 * B * S * (3 * E * E + 2 * S * E + E * E + 8 * E * E)
             + 2 * B * E * n_classes)
    transcendentals = depth * B * S * (S + 4 * E)
    bytes_accessed = int(sum(int(np.prod(a.shape)) for a in args) * 4
                         + B * n_classes * 4)

    return pl.pallas_call(
        functools.partial(conformer_kernel, batch=B, num_heads=num_heads),
        out_shape=jax.ShapeDtypeStruct((B, n_classes), jnp.float32),
        grid=(1,),
        in_specs=[_full_spec(a) for a in args],
        out_specs=pl.BlockSpec((B, n_classes), lambda i: (0, 0)),
        compiler_params=pltpu.CompilerParams(
            dimension_semantics=("arbitrary",)),
        cost_estimate=pl.CostEstimate(flops=int(flops),
                                      transcendentals=int(transcendentals),
                                      bytes_accessed=bytes_accessed),
    )(*args)


# ----------------------------------------------------------------------------
# Deterministic parameter init (synthetic weights; matmul weights stored (in,out))
# ----------------------------------------------------------------------------
def init_params(key, *, emb, C, F, depth, n_classes):
    keys = iter(jax.random.split(key, 256))

    def nrm(shape, s=0.1):
        return (s * jax.random.normal(next(keys), shape)).astype(jnp.float32)

    E2 = emb // 2
    p = {
        'pos': nrm((C, F), 1.0),
        'pe': dict(
            w1=nrm((F, E2)), b1=nrm((1, E2)),
            g1=1.0 + nrm((1, E2)), be1=nrm((1, E2)),
            m1=nrm((1, E2)), v1=1.0 + jnp.abs(nrm((1, E2))),
            w2=nrm((E2, emb)), b2=nrm((1, emb)),
            g2=1.0 + nrm((1, emb)), be2=nrm((1, emb)),
            m2=nrm((1, emb)), v2=1.0 + jnp.abs(nrm((1, emb))),
        ),
        'layers': [],
        'head': None,
    }
    for _ in range(depth):
        p['layers'].append(dict(
            ln1g=1.0 + nrm((1, emb)), ln1b=nrm((1, emb)),
            wq=nrm((emb, emb)), bq=nrm((1, emb)),
            wk=nrm((emb, emb)), bk=nrm((1, emb)),
            wv=nrm((emb, emb)), bv=nrm((1, emb)),
            wo=nrm((emb, emb)), bo=nrm((1, emb)),
            ln2g=1.0 + nrm((1, emb)), ln2b=nrm((1, emb)),
            wf1=nrm((emb, 4 * emb)), bf1=nrm((1, 4 * emb)),
            wf2=nrm((4 * emb, emb)), bf2=nrm((1, emb)),
        ))
    p['head'] = dict(
        g=1.0 + nrm((1, emb)), b=nrm((1, emb)),
        w=nrm((emb, n_classes)), bias=nrm((1, n_classes)),
    )
    return p


# ----------------------------------------------------------------------------
# Pure-JAX reference (original, unfolded math) for a correctness check
# ----------------------------------------------------------------------------
def reference_forward(x_in, params, *, num_heads):
    x = x_in[:, 0] + params['pos'][None]
    pe = params['pe']
    h = x @ pe['w1'] + pe['b1']
    h = (h - pe['m1']) * lax.rsqrt(pe['v1'] + EPS) * pe['g1'] + pe['be1']
    h = jnp.maximum(h, 0.0)
    h = h @ pe['w2'] + pe['b2']
    h = (h - pe['m2']) * lax.rsqrt(pe['v2'] + EPS) * pe['g2'] + pe['be2']
    x = jnp.maximum(h, 0.0)                                       # (B, S, E)

    B, S, E = x.shape
    D = E // num_heads
    for lp in params['layers']:
        xn = _layernorm(x, lp['ln1g'], lp['ln1b'])
        q = (xn @ lp['wq'] + lp['bq']).reshape(B, S, num_heads, D).transpose(0, 2, 1, 3)
        k = (xn @ lp['wk'] + lp['bk']).reshape(B, S, num_heads, D).transpose(0, 2, 1, 3)
        v = (xn @ lp['wv'] + lp['bv']).reshape(B, S, num_heads, D).transpose(0, 2, 1, 3)
        energy = jnp.einsum('bhqd,bhkd->bhqk', q, k) / (E ** 0.5)
        att = jax.nn.softmax(energy, axis=-1)
        out = jnp.einsum('bhqk,bhkd->bhqd', att, v)
        out = out.transpose(0, 2, 1, 3).reshape(B, S, E)
        x = x + (out @ lp['wo'] + lp['bo'])

        xn2 = _layernorm(x, lp['ln2g'], lp['ln2b'])
        hf = _gelu_exact(xn2 @ lp['wf1'] + lp['bf1'])
        x = x + (hf @ lp['wf2'] + lp['bf2'])

    cls = x[:, 0, :]
    hp = params['head']
    return _layernorm(cls, hp['g'], hp['b']) @ hp['w'] + hp['bias']


if __name__ == "__main__":
    # Small shapes consistent with the module's forward:
    # input (B, 1, num_channels, num_freq_bands)
    B, C, F, E, depth, heads, n_classes = 2, 16, 5, 40, 2, 5, 4

    key = jax.random.PRNGKey(0)
    kx, kp = jax.random.split(key)
    x_in = jax.random.normal(kx, (B, 1, C, F), dtype=jnp.float32)
    params = init_params(kp, emb=E, C=C, F=F, depth=depth, n_classes=n_classes)

    logits = conformer_forward(x_in, params, num_heads=heads)
    logits = jax.block_until_ready(logits)
    assert logits.shape == (B, n_classes)

    # Tolerance slightly relaxed vs exact fp32: folded BN and the EUP
    # approximate-reciprocal softmax denominator introduce tiny deviations.
    ref = reference_forward(x_in, params, num_heads=heads)
    np.testing.assert_allclose(np.asarray(logits), np.asarray(ref),
                               rtol=3e-3, atol=3e-3)
    print("KERNEL_OK")
</pallas_src>

<mosaic_0001>
module attributes {stable_mosaic.version = 11 : i64} {
  func.func @conformer_kernel(%arg0: i32, %arg1: memref<32x5xf32, #tpu.memory_space<vmem>>, %arg2: memref<32x5xf32, #tpu.memory_space<vmem>>, %arg3: memref<5x20xf32, #tpu.memory_space<vmem>>, %arg4: memref<1x20xf32, #tpu.memory_space<vmem>>, %arg5: memref<20x40xf32, #tpu.memory_space<vmem>>, %arg6: memref<1x40xf32, #tpu.memory_space<vmem>>, %arg7: memref<2x1x40xf32, #tpu.memory_space<vmem>>, %arg8: memref<2x1x40xf32, #tpu.memory_space<vmem>>, %arg9: memref<2x40x120xf32, #tpu.memory_space<vmem>>, %arg10: memref<2x1x120xf32, #tpu.memory_space<vmem>>, %arg11: memref<2x40x40xf32, #tpu.memory_space<vmem>>, %arg12: memref<2x1x40xf32, #tpu.memory_space<vmem>>, %arg13: memref<2x1x40xf32, #tpu.memory_space<vmem>>, %arg14: memref<2x1x40xf32, #tpu.memory_space<vmem>>, %arg15: memref<2x40x160xf32, #tpu.memory_space<vmem>>, %arg16: memref<2x1x160xf32, #tpu.memory_space<vmem>>, %arg17: memref<2x160x40xf32, #tpu.memory_space<vmem>>, %arg18: memref<2x1x40xf32, #tpu.memory_space<vmem>>, %arg19: memref<1x40xf32, #tpu.memory_space<vmem>>, %arg20: memref<1x40xf32, #tpu.memory_space<vmem>>, %arg21: memref<40x4xf32, #tpu.memory_space<vmem>>, %arg22: memref<1x4xf32, #tpu.memory_space<vmem>>, %arg23: memref<2x4xf32, #tpu.memory_space<vmem>>) attributes {dimension_semantics = [#tpu.dimension_semantics<arbitrary>], iteration_bounds = array<i64: 1>, scalar_prefetch = 0 : i64, scratch_operands = 0 : i64, tpu.core_type = #tpu.core_type<tc>, window_params = [{pipeline_mode = #tpu.pipeline_mode<synchronous>, transform_indices = @transform_0, window_bounds = array<i64: 32, 5>}, {pipeline_mode = #tpu.pipeline_mode<synchronous>, transform_indices = @transform_1, window_bounds = array<i64: 32, 5>}, {pipeline_mode = #tpu.pipeline_mode<synchronous>, transform_indices = @transform_2, window_bounds = array<i64: 5, 20>}, {pipeline_mode = #tpu.pipeline_mode<synchronous>, transform_indices = @transform_3, window_bounds = array<i64: 1, 20>}, {pipeline_mode = #tpu.pipeline_mode<synchronous>, transform_indices = @transform_4, window_bounds = array<i64: 20, 40>}, {pipeline_mode = #tpu.pipeline_mode<synchronous>, transform_indices = @transform_5, window_bounds = array<i64: 1, 40>}, {pipeline_mode = #tpu.pipeline_mode<synchronous>, transform_indices = @transform_6, window_bounds = array<i64: 2, 1, 40>}, {pipeline_mode = #tpu.pipeline_mode<synchronous>, transform_indices = @transform_7, window_bounds = array<i64: 2, 1, 40>}, {pipeline_mode = #tpu.pipeline_mode<synchronous>, transform_indices = @transform_8, window_bounds = array<i64: 2, 40, 120>}, {pipeline_mode = #tpu.pipeline_mode<synchronous>, transform_indices = @transform_9, window_bounds = array<i64: 2, 1, 120>}, {pipeline_mode = #tpu.pipeline_mode<synchronous>, transform_indices = @transform_10, window_bounds = array<i64: 2, 40, 40>}, {pipeline_mode = #tpu.pipeline_mode<synchronous>, transform_indices = @transform_11, window_bounds = array<i64: 2, 1, 40>}, {pipeline_mode = #tpu.pipeline_mode<synchronous>, transform_indices = @transform_12, window_bounds = array<i64: 2, 1, 40>}, {pipeline_mode = #tpu.pipeline_mode<synchronous>, transform_indices = @transform_13, window_bounds = array<i64: 2, 1, 40>}, {pipeline_mode = #tpu.pipeline_mode<synchronous>, transform_indices = @transform_14, window_bounds = array<i64: 2, 40, 160>}, {pipeline_mode = #tpu.pipeline_mode<synchronous>, transform_indices = @transform_15, window_bounds = array<i64: 2, 1, 160>}, {pipeline_mode = #tpu.pipeline_mode<synchronous>, transform_indices = @transform_16, window_bounds = array<i64: 2, 160, 40>}, {pipeline_mode = #tpu.pipeline_mode<synchronous>, transform_indices = @transform_17, window_bounds = array<i64: 2, 1, 40>}, {pipeline_mode = #tpu.pipeline_mode<synchronous>, transform_indices = @transform_18, window_bounds = array<i64: 1, 40>}, {pipeline_mode = #tpu.pipeline_mode<synchronous>, transform_indices = @transform_19, window_bounds = array<i64: 1, 40>}, {pipeline_mode = #tpu.pipeline_mode<synchronous>, transform_indices = @transform_20, window_bounds = array<i64: 40, 4>}, {pipeline_mode = #tpu.pipeline_mode<synchronous>, transform_indices = @transform_21, window_bounds = array<i64: 1, 4>}, {pipeline_mode = #tpu.pipeline_mode<synchronous>, transform_indices = @transform_22, window_bounds = array<i64: 2, 4>}]} {
    %c0 = arith.constant 0 : index
    %c0_0 = arith.constant 0 : index
    %0 = vector.load %arg1[%c0, %c0_0] : memref<32x5xf32, #tpu.memory_space<vmem>>, vector<32x5xf32>
    %c0_1 = arith.constant 0 : index
    %c0_2 = arith.constant 0 : index
    %1 = vector.load %arg2[%c0_1, %c0_2] : memref<32x5xf32, #tpu.memory_space<vmem>>, vector<32x5xf32>
    %2 = arith.addf %0, %1 : vector<32x5xf32>
    %c0_3 = arith.constant 0 : index
    %c0_4 = arith.constant 0 : index
    %3 = vector.load %arg3[%c0_3, %c0_4] : memref<5x20xf32, #tpu.memory_space<vmem>>, vector<5x20xf32>
    %cst = arith.constant dense<0.000000e+00> : vector<32x20xf32>
    %4 = tpu.matmul %2, %3, %cst {dimension_numbers = #tpu.dot_dimension_numbers<[1], [0], [0], [1], [0, 0, 1, 1], [], []>} : vector<32x5xf32>, vector<5x20xf32>, vector<32x20xf32> -> vector<32x20xf32>
    %c0_5 = arith.constant 0 : index
    %c0_6 = arith.constant 0 : index
    %5 = vector.load %arg4[%c0_5, %c0_6] : memref<1x20xf32, #tpu.memory_space<vmem>>, vector<1x20xf32>
    %6 = vector.broadcast %5 : vector<1x20xf32> to vector<32x20xf32>
    %7 = arith.addf %4, %6 : vector<32x20xf32>
    %cst_7 = arith.constant 0.000000e+00 : f32
    %8 = vector.broadcast %cst_7 : f32 to vector<32x20xf32>
    %9 = arith.maximumf %7, %8 : vector<32x20xf32>
    %c0_8 = arith.constant 0 : index
    %c0_9 = arith.constant 0 : index
    %10 = vector.load %arg5[%c0_8, %c0_9] : memref<20x40xf32, #tpu.memory_space<vmem>>, vector<20x40xf32>
    %cst_10 = arith.constant dense<0.000000e+00> : vector<32x40xf32>
    %11 = tpu.matmul %9, %10, %cst_10 {dimension_numbers = #tpu.dot_dimension_numbers<[1], [0], [0], [1], [0, 0, 1, 1], [], []>} : vector<32x20xf32>, vector<20x40xf32>, vector<32x40xf32> -> vector<32x40xf32>
    %c0_11 = arith.constant 0 : index
    %c0_12 = arith.constant 0 : index
    %12 = vector.load %arg6[%c0_11, %c0_12] : memref<1x40xf32, #tpu.memory_space<vmem>>, vector<1x40xf32>
    %13 = vector.broadcast %12 : vector<1x40xf32> to vector<32x40xf32>
    %14 = arith.addf %11, %13 : vector<32x40xf32>
    %cst_13 = arith.constant 0.000000e+00 : f32
    %15 = vector.broadcast %cst_13 : f32 to vector<32x40xf32>
    %16 = arith.maximumf %14, %15 : vector<32x40xf32>
    %c0_14 = arith.constant 0 : index
    %c0_15 = arith.constant 0 : index
    %c0_16 = arith.constant 0 : index
    %17 = vector.load %arg7[%c0_14, %c0_15, %c0_16] : memref<2x1x40xf32, #tpu.memory_space<vmem>>, vector<1x1x40xf32>
    %18 = vector.shape_cast %17 : vector<1x1x40xf32> to vector<1x40xf32>
    %c0_17 = arith.constant 0 : index
    %c0_18 = arith.constant 0 : index
    %c0_19 = arith.constant 0 : index
    %19 = vector.load %arg8[%c0_17, %c0_18, %c0_19] : memref<2x1x40xf32, #tpu.memory_space<vmem>>, vector<1x1x40xf32>
    %20 = vector.shape_cast %19 : vector<1x1x40xf32> to vector<1x40xf32>
    %cst_20 = arith.constant dense<0.000000e+00> : vector<32xf32>
    %21 = vector.multi_reduction <add>, %16, %cst_20 [1] : vector<32x40xf32> to vector<32xf32>
    %22 = vector.shape_cast %21 : vector<32xf32> to vector<32x1xf32>
    %cst_21 = arith.constant 4.000000e+01 : f32
    %23 = vector.broadcast %cst_21 : f32 to vector<32x1xf32>
    %24 = arith.divf %22, %23 : vector<32x1xf32>
    %25 = vector.broadcast %24 : vector<32x1xf32> to vector<32x40xf32>
    %26 = arith.subf %16, %25 : vector<32x40xf32>
    %27 = arith.mulf %26, %26 : vector<32x40xf32>
    %cst_22 = arith.constant dense<0.000000e+00> : vector<32xf32>
    %28 = vector.multi_reduction <add>, %27, %cst_22 [1] : vector<32x40xf32> to vector<32xf32>
    %29 = vector.shape_cast %28 : vector<32xf32> to vector<32x1xf32>
    %cst_23 = arith.constant 4.000000e+01 : f32
    %30 = vector.broadcast %cst_23 : f32 to vector<32x1xf32>
    %31 = arith.divf %29, %30 : vector<32x1xf32>
    %32 = vector.broadcast %24 : vector<32x1xf32> to vector<32x40xf32>
    %33 = arith.subf %16, %32 : vector<32x40xf32>
    %cst_24 = arith.constant 9.99999974E-6 : f32
    %34 = vector.broadcast %cst_24 : f32 to vector<32x1xf32>
    %35 = arith.addf %31, %34 : vector<32x1xf32>
    %36 = math.rsqrt %35 : vector<32x1xf32>
    %37 = vector.broadcast %36 : vector<32x1xf32> to vector<32x40xf32>
    %38 = arith.mulf %33, %37 : vector<32x40xf32>
    %39 = vector.broadcast %18 : vector<1x40xf32> to vector<32x40xf32>
    %40 = arith.mulf %38, %39 : vector<32x40xf32>
    %41 = vector.broadcast %20 : vector<1x40xf32> to vector<32x40xf32>
    %42 = arith.addf %40, %41 : vector<32x40xf32>
    %c0_25 = arith.constant 0 : index
    %c0_26 = arith.constant 0 : index
    %c0_27 = arith.constant 0 : index
    %43 = vector.load %arg9[%c0_25, %c0_26, %c0_27] : memref<2x40x120xf32, #tpu.memory_space<vmem>>, vector<1x40x120xf32>
    %44 = vector.shape_cast %43 : vector<1x40x120xf32> to vector<40x120xf32>
    %cst_28 = arith.constant dense<0.000000e+00> : vector<32x120xf32>
    %45 = tpu.matmul %42, %44, %cst_28 {dimension_numbers = #tpu.dot_dimension_numbers<[1], [0], [0], [1], [0, 0, 1, 1], [], []>} : vector<32x40xf32>, vector<40x120xf32>, vector<32x120xf32> -> vector<32x120xf32>
    %c0_29 = arith.constant 0 : index
    %c0_30 = arith.constant 0 : index
    %c0_31 = arith.constant 0 : index
    %46 = vector.load %arg10[%c0_29, %c0_30, %c0_31] : memref<2x1x120xf32, #tpu.memory_space<vmem>>, vector<1x1x120xf32>
    %47 = vector.shape_cast %46 : vector<1x1x120xf32> to vector<1x120xf32>
    %48 = vector.broadcast %47 : vector<1x120xf32> to vector<32x120xf32>
    %49 = arith.addf %45, %48 : vector<32x120xf32>
    %c0_32 = arith.constant 0 : index
    %c0_33 = arith.constant 0 : index
    %c0_34 = arith.constant 0 : index
    %50 = vector.load %arg11[%c0_32, %c0_33, %c0_34] : memref<2x40x40xf32, #tpu.memory_space<vmem>>, vector<1x40x40xf32>
    %51 = vector.shape_cast %50 : vector<1x40x40xf32> to vector<40x40xf32>
    %cst_35 = arith.constant 0.000000e+00 : f32
    %52 = vector.broadcast %cst_35 : f32 to vector<16x40xf32>
    %53 = vector.extract_strided_slice %49 {offsets = [0, 0], sizes = [16, 8], strides = [1, 1]} : vector<32x120xf32> to vector<16x8xf32>
    %54 = vector.extract_strided_slice %49 {offsets = [0, 40], sizes = [16, 8], strides = [1, 1]} : vector<32x120xf32> to vector<16x8xf32>
    %55 = vector.extract_strided_slice %49 {offsets = [0, 80], sizes = [16, 8], strides = [1, 1]} : vector<32x120xf32> to vector<16x8xf32>
    %cst_36 = arith.constant dense<0.000000e+00> : vector<16x16xf32>
    %56 = tpu.matmul %53, %54, %cst_36 {dimension_numbers = #tpu.dot_dimension_numbers<[1], [1], [0], [0], [0, 0, 1, 0], [], []>} : vector<16x8xf32>, vector<16x8xf32>, vector<16x16xf32> -> vector<16x16xf32>
    %cst_37 = arith.constant 0.158113882 : f32
    %57 = vector.broadcast %cst_37 : f32 to vector<16x16xf32>
    %58 = arith.mulf %56, %57 : vector<16x16xf32>
    %cst_38 = arith.constant dense<0xFF800000> : vector<16xf32>
    %59 = vector.multi_reduction <maximumf>, %58, %cst_38 [1] : vector<16x16xf32> to vector<16xf32>
    %60 = vector.shape_cast %59 : vector<16xf32> to vector<16x1xf32>
    %61 = vector.broadcast %60 : vector<16x1xf32> to vector<16x16xf32>
    %62 = arith.subf %58, %61 : vector<16x16xf32>
    %63 = math.exp %62 : vector<16x16xf32>
    %cst_39 = arith.constant dense<0.000000e+00> : vector<16xf32>
    %64 = vector.multi_reduction <add>, %63, %cst_39 [1] : vector<16x16xf32> to vector<16xf32>
    %65 = vector.shape_cast %64 : vector<16xf32> to vector<16x1xf32>
    %66 = tpu.reciprocal %65 {approx = true} : vector<16x1xf32> -> vector<16x1xf32>
    %67 = vector.broadcast %66 : vector<16x1xf32> to vector<16x16xf32>
    %68 = arith.mulf %63, %67 : vector<16x16xf32>
    %cst_40 = arith.constant dense<0.000000e+00> : vector<16x8xf32>
    %69 = tpu.matmul %68, %55, %cst_40 {dimension_numbers = #tpu.dot_dimension_numbers<[1], [0], [0], [1], [0, 0, 1, 1], [], []>} : vector<16x16xf32>, vector<16x8xf32>, vector<16x8xf32> -> vector<16x8xf32>
    %70 = vector.extract_strided_slice %51 {offsets = [0, 0], sizes = [8, 40], strides = [1, 1]} : vector<40x40xf32> to vector<8x40xf32>
    %cst_41 = arith.constant dense<0.000000e+00> : vector<16x40xf32>
    %71 = tpu.matmul %69, %70, %cst_41 {dimension_numbers = #tpu.dot_dimension_numbers<[1], [0], [0], [1], [0, 0, 1, 1], [], []>} : vector<16x8xf32>, vector<8x40xf32>, vector<16x40xf32> -> vector<16x40xf32>
    %72 = arith.addf %52, %71 : vector<16x40xf32>
    %73 = vector.extract_strided_slice %49 {offsets = [0, 8], sizes = [16, 8], strides = [1, 1]} : vector<32x120xf32> to vector<16x8xf32>
    %74 = vector.extract_strided_slice %49 {offsets = [0, 48], sizes = [16, 8], strides = [1, 1]} : vector<32x120xf32> to vector<16x8xf32>
    %75 = vector.extract_strided_slice %49 {offsets = [0, 88], sizes = [16, 8], strides = [1, 1]} : vector<32x120xf32> to vector<16x8xf32>
    %cst_42 = arith.constant dense<0.000000e+00> : vector<16x16xf32>
    %76 = tpu.matmul %73, %74, %cst_42 {dimension_numbers = #tpu.dot_dimension_numbers<[1], [1], [0], [0], [0, 0, 1, 0], [], []>} : vector<16x8xf32>, vector<16x8xf32>, vector<16x16xf32> -> vector<16x16xf32>
    %cst_43 = arith.constant 0.158113882 : f32
    %77 = vector.broadcast %cst_43 : f32 to vector<16x16xf32>
    %78 = arith.mulf %76, %77 : vector<16x16xf32>
    %cst_44 = arith.constant dense<0xFF800000> : vector<16xf32>
    %79 = vector.multi_reduction <maximumf>, %78, %cst_44 [1] : vector<16x16xf32> to vector<16xf32>
    %80 = vector.shape_cast %79 : vector<16xf32> to vector<16x1xf32>
    %81 = vector.broadcast %80 : vector<16x1xf32> to vector<16x16xf32>
    %82 = arith.subf %78, %81 : vector<16x16xf32>
    %83 = math.exp %82 : vector<16x16xf32>
    %cst_45 = arith.constant dense<0.000000e+00> : vector<16xf32>
    %84 = vector.multi_reduction <add>, %83, %cst_45 [1] : vector<16x16xf32> to vector<16xf32>
    %85 = vector.shape_cast %84 : vector<16xf32> to vector<16x1xf32>
    %86 = tpu.reciprocal %85 {approx = true} : vector<16x1xf32> -> vector<16x1xf32>
    %87 = vector.broadcast %86 : vector<16x1xf32> to vector<16x16xf32>
    %88 = arith.mulf %83, %87 : vector<16x16xf32>
    %cst_46 = arith.constant dense<0.000000e+00> : vector<16x8xf32>
    %89 = tpu.matmul %88, %75, %cst_46 {dimension_numbers = #tpu.dot_dimension_numbers<[1], [0], [0], [1], [0, 0, 1, 1], [], []>} : vector<16x16xf32>, vector<16x8xf32>, vector<16x8xf32> -> vector<16x8xf32>
    %90 = vector.extract_strided_slice %51 {offsets = [8, 0], sizes = [8, 40], strides = [1, 1]} : vector<40x40xf32> to vector<8x40xf32>
    %cst_47 = arith.constant dense<0.000000e+00> : vector<16x40xf32>
    %91 = tpu.matmul %89, %90, %cst_47 {dimension_numbers = #tpu.dot_dimension_numbers<[1], [0], [0], [1], [0, 0, 1, 1], [], []>} : vector<16x8xf32>, vector<8x40xf32>, vector<16x40xf32> -> vector<16x40xf32>
    %92 = arith.addf %72, %91 : vector<16x40xf32>
    %93 = vector.extract_strided_slice %49 {offsets = [0, 16], sizes = [16, 8], strides = [1, 1]} : vector<32x120xf32> to vector<16x8xf32>
    %94 = vector.extract_strided_slice %49 {offsets = [0, 56], sizes = [16, 8], strides = [1, 1]} : vector<32x120xf32> to vector<16x8xf32>
    %95 = vector.extract_strided_slice %49 {offsets = [0, 96], sizes = [16, 8], strides = [1, 1]} : vector<32x120xf32> to vector<16x8xf32>
    %cst_48 = arith.constant dense<0.000000e+00> : vector<16x16xf32>
    %96 = tpu.matmul %93, %94, %cst_48 {dimension_numbers = #tpu.dot_dimension_numbers<[1], [1], [0], [0], [0, 0, 1, 0], [], []>} : vector<16x8xf32>, vector<16x8xf32>, vector<16x16xf32> -> vector<16x16xf32>
    %cst_49 = arith.constant 0.158113882 : f32
    %97 = vector.broadcast %cst_49 : f32 to vector<16x16xf32>
    %98 = arith.mulf %96, %97 : vector<16x16xf32>
    %cst_50 = arith.constant dense<0xFF800000> : vector<16xf32>
    %99 = vector.multi_reduction <maximumf>, %98, %cst_50 [1] : vector<16x16xf32> to vector<16xf32>
    %100 = vector.shape_cast %99 : vector<16xf32> to vector<16x1xf32>
    %101 = vector.broadcast %100 : vector<16x1xf32> to vector<16x16xf32>
    %102 = arith.subf %98, %101 : vector<16x16xf32>
    %103 = math.exp %102 : vector<16x16xf32>
    %cst_51 = arith.constant dense<0.000000e+00> : vector<16xf32>
    %104 = vector.multi_reduction <add>, %103, %cst_51 [1] : vector<16x16xf32> to vector<16xf32>
    %105 = vector.shape_cast %104 : vector<16xf32> to vector<16x1xf32>
    %106 = tpu.reciprocal %105 {approx = true} : vector<16x1xf32> -> vector<16x1xf32>
    %107 = vector.broadcast %106 : vector<16x1xf32> to vector<16x16xf32>
    %108 = arith.mulf %103, %107 : vector<16x16xf32>
    %cst_52 = arith.constant dense<0.000000e+00> : vector<16x8xf32>
    %109 = tpu.matmul %108, %95, %cst_52 {dimension_numbers = #tpu.dot_dimension_numbers<[1], [0], [0], [1], [0, 0, 1, 1], [], []>} : vector<16x16xf32>, vector<16x8xf32>, vector<16x8xf32> -> vector<16x8xf32>
    %110 = vector.extract_strided_slice %51 {offsets = [16, 0], sizes = [8, 40], strides = [1, 1]} : vector<40x40xf32> to vector<8x40xf32>
    %cst_53 = arith.constant dense<0.000000e+00> : vector<16x40xf32>
    %111 = tpu.matmul %109, %110, %cst_53 {dimension_numbers = #tpu.dot_dimension_numbers<[1], [0], [0], [1], [0, 0, 1, 1], [], []>} : vector<16x8xf32>, vector<8x40xf32>, vector<16x40xf32> -> vector<16x40xf32>
    %112 = arith.addf %92, %111 : vector<16x40xf32>
    %113 = vector.extract_strided_slice %49 {offsets = [0, 24], sizes = [16, 8], strides = [1, 1]} : vector<32x120xf32> to vector<16x8xf32>
    %114 = vector.extract_strided_slice %49 {offsets = [0, 64], sizes = [16, 8], strides = [1, 1]} : vector<32x120xf32> to vector<16x8xf32>
    %115 = vector.extract_strided_slice %49 {offsets = [0, 104], sizes = [16, 8], strides = [1, 1]} : vector<32x120xf32> to vector<16x8xf32>
    %cst_54 = arith.constant dense<0.000000e+00> : vector<16x16xf32>
    %116 = tpu.matmul %113, %114, %cst_54 {dimension_numbers = #tpu.dot_dimension_numbers<[1], [1], [0], [0], [0, 0, 1, 0], [], []>} : vector<16x8xf32>, vector<16x8xf32>, vector<16x16xf32> -> vector<16x16xf32>
    %cst_55 = arith.constant 0.158113882 : f32
    %117 = vector.broadcast %cst_55 : f32 to vector<16x16xf32>
    %118 = arith.mulf %116, %117 : vector<16x16xf32>
    %cst_56 = arith.constant dense<0xFF800000> : vector<16xf32>
    %119 = vector.multi_reduction <maximumf>, %118, %cst_56 [1] : vector<16x16xf32> to vector<16xf32>
    %120 = vector.shape_cast %119 : vector<16xf32> to vector<16x1xf32>
    %121 = vector.broadcast %120 : vector<16x1xf32> to vector<16x16xf32>
    %122 = arith.subf %118, %121 : vector<16x16xf32>
    %123 = math.exp %122 : vector<16x16xf32>
    %cst_57 = arith.constant dense<0.000000e+00> : vector<16xf32>
    %124 = vector.multi_reduction <add>, %123, %cst_57 [1] : vector<16x16xf32> to vector<16xf32>
    %125 = vector.shape_cast %124 : vector<16xf32> to vector<16x1xf32>
    %126 = tpu.reciprocal %125 {approx = true} : vector<16x1xf32> -> vector<16x1xf32>
    %127 = vector.broadcast %126 : vector<16x1xf32> to vector<16x16xf32>
    %128 = arith.mulf %123, %127 : vector<16x16xf32>
    %cst_58 = arith.constant dense<0.000000e+00> : vector<16x8xf32>
    %129 = tpu.matmul %128, %115, %cst_58 {dimension_numbers = #tpu.dot_dimension_numbers<[1], [0], [0], [1], [0, 0, 1, 1], [], []>} : vector<16x16xf32>, vector<16x8xf32>, vector<16x8xf32> -> vector<16x8xf32>
    %130 = vector.extract_strided_slice %51 {offsets = [24, 0], sizes = [8, 40], strides = [1, 1]} : vector<40x40xf32> to vector<8x40xf32>
    %cst_59 = arith.constant dense<0.000000e+00> : vector<16x40xf32>
    %131 = tpu.matmul %129, %130, %cst_59 {dimension_numbers = #tpu.dot_dimension_numbers<[1], [0], [0], [1], [0, 0, 1, 1], [], []>} : vector<16x8xf32>, vector<8x40xf32>, vector<16x40xf32> -> vector<16x40xf32>
    %132 = arith.addf %112, %131 : vector<16x40xf32>
    %133 = vector.extract_strided_slice %49 {offsets = [0, 32], sizes = [16, 8], strides = [1, 1]} : vector<32x120xf32> to vector<16x8xf32>
    %134 = vector.extract_strided_slice %49 {offsets = [0, 72], sizes = [16, 8], strides = [1, 1]} : vector<32x120xf32> to vector<16x8xf32>
    %135 = vector.extract_strided_slice %49 {offsets = [0, 112], sizes = [16, 8], strides = [1, 1]} : vector<32x120xf32> to vector<16x8xf32>
    %cst_60 = arith.constant dense<0.000000e+00> : vector<16x16xf32>
    %136 = tpu.matmul %133, %134, %cst_60 {dimension_numbers = #tpu.dot_dimension_numbers<[1], [1], [0], [0], [0, 0, 1, 0], [], []>} : vector<16x8xf32>, vector<16x8xf32>, vector<16x16xf32> -> vector<16x16xf32>
    %cst_61 = arith.constant 0.158113882 : f32
    %137 = vector.broadcast %cst_61 : f32 to vector<16x16xf32>
    %138 = arith.mulf %136, %137 : vector<16x16xf32>
    %cst_62 = arith.constant dense<0xFF800000> : vector<16xf32>
    %139 = vector.multi_reduction <maximumf>, %138, %cst_62 [1] : vector<16x16xf32> to vector<16xf32>
    %140 = vector.shape_cast %139 : vector<16xf32> to vector<16x1xf32>
    %141 = vector.broadcast %140 : vector<16x1xf32> to vector<16x16xf32>
    %142 = arith.subf %138, %141 : vector<16x16xf32>
    %143 = math.exp %142 : vector<16x16xf32>
    %cst_63 = arith.constant dense<0.000000e+00> : vector<16xf32>
    %144 = vector.multi_reduction <add>, %143, %cst_63 [1] : vector<16x16xf32> to vector<16xf32>
    %145 = vector.shape_cast %144 : vector<16xf32> to vector<16x1xf32>
    %146 = tpu.reciprocal %145 {approx = true} : vector<16x1xf32> -> vector<16x1xf32>
    %147 = vector.broadcast %146 : vector<16x1xf32> to vector<16x16xf32>
    %148 = arith.mulf %143, %147 : vector<16x16xf32>
    %cst_64 = arith.constant dense<0.000000e+00> : vector<16x8xf32>
    %149 = tpu.matmul %148, %135, %cst_64 {dimension_numbers = #tpu.dot_dimension_numbers<[1], [0], [0], [1], [0, 0, 1, 1], [], []>} : vector<16x16xf32>, vector<16x8xf32>, vector<16x8xf32> -> vector<16x8xf32>
    %150 = vector.extract_strided_slice %51 {offsets = [32, 0], sizes = [8, 40], strides = [1, 1]} : vector<40x40xf32> to vector<8x40xf32>
    %cst_65 = arith.constant dense<0.000000e+00> : vector<16x40xf32>
    %151 = tpu.matmul %149, %150, %cst_65 {dimension_numbers = #tpu.dot_dimension_numbers<[1], [0], [0], [1], [0, 0, 1, 1], [], []>} : vector<16x8xf32>, vector<8x40xf32>, vector<16x40xf32> -> vector<16x40xf32>
    %152 = arith.addf %132, %151 : vector<16x40xf32>
    %cst_66 = arith.constant 0.000000e+00 : f32
    %153 = vector.broadcast %cst_66 : f32 to vector<16x40xf32>
    %154 = vector.extract_strided_slice %49 {offsets = [16, 0], sizes = [16, 8], strides = [1, 1]} : vector<32x120xf32> to vector<16x8xf32>
    %155 = vector.extract_strided_slice %49 {offsets = [16, 40], sizes = [16, 8], strides = [1, 1]} : vector<32x120xf32> to vector<16x8xf32>
    %156 = vector.extract_strided_slice %49 {offsets = [16, 80], sizes = [16, 8], strides = [1, 1]} : vector<32x120xf32> to vector<16x8xf32>
    %cst_67 = arith.constant dense<0.000000e+00> : vector<16x16xf32>
    %157 = tpu.matmul %154, %155, %cst_67 {dimension_numbers = #tpu.dot_dimension_numbers<[1], [1], [0], [0], [0, 0, 1, 0], [], []>} : vector<16x8xf32>, vector<16x8xf32>, vector<16x16xf32> -> vector<16x16xf32>
    %cst_68 = arith.constant 0.158113882 : f32
    %158 = vector.broadcast %cst_68 : f32 to vector<16x16xf32>
    %159 = arith.mulf %157, %158 : vector<16x16xf32>
    %cst_69 = arith.constant dense<0xFF800000> : vector<16xf32>
    %160 = vector.multi_reduction <maximumf>, %159, %cst_69 [1] : vector<16x16xf32> to vector<16xf32>
    %161 = vector.shape_cast %160 : vector<16xf32> to vector<16x1xf32>
    %162 = vector.broadcast %161 : vector<16x1xf32> to vector<16x16xf32>
    %163 = arith.subf %159, %162 : vector<16x16xf32>
    %164 = math.exp %163 : vector<16x16xf32>
    %cst_70 = arith.constant dense<0.000000e+00> : vector<16xf32>
    %165 = vector.multi_reduction <add>, %164, %cst_70 [1] : vector<16x16xf32> to vector<16xf32>
    %166 = vector.shape_cast %165 : vector<16xf32> to vector<16x1xf32>
    %167 = tpu.reciprocal %166 {approx = true} : vector<16x1xf32> -> vector<16x1xf32>
    %168 = vector.broadcast %167 : vector<16x1xf32> to vector<16x16xf32>
    %169 = arith.mulf %164, %168 : vector<16x16xf32>
    %cst_71 = arith.constant dense<0.000000e+00> : vector<16x8xf32>
    %170 = tpu.matmul %169, %156, %cst_71 {dimension_numbers = #tpu.dot_dimension_numbers<[1], [0], [0], [1], [0, 0, 1, 1], [], []>} : vector<16x16xf32>, vector<16x8xf32>, vector<16x8xf32> -> vector<16x8xf32>
    %171 = vector.extract_strided_slice %51 {offsets = [0, 0], sizes = [8, 40], strides = [1, 1]} : vector<40x40xf32> to vector<8x40xf32>
    %cst_72 = arith.constant dense<0.000000e+00> : vector<16x40xf32>
    %172 = tpu.matmul %170, %171, %cst_72 {dimension_numbers = #tpu.dot_dimension_numbers<[1], [0], [0], [1], [0, 0, 1, 1], [], []>} : vector<16x8xf32>, vector<8x40xf32>, vector<16x40xf32> -> vector<16x40xf32>
    %173 = arith.addf %153, %172 : vector<16x40xf32>
    %174 = vector.extract_strided_slice %49 {offsets = [16, 8], sizes = [16, 8], strides = [1, 1]} : vector<32x120xf32> to vector<16x8xf32>
    %175 = vector.extract_strided_slice %49 {offsets = [16, 48], sizes = [16, 8], strides = [1, 1]} : vector<32x120xf32> to vector<16x8xf32>
    %176 = vector.extract_strided_slice %49 {offsets = [16, 88], sizes = [16, 8], strides = [1, 1]} : vector<32x120xf32> to vector<16x8xf32>
    %cst_73 = arith.constant dense<0.000000e+00> : vector<16x16xf32>
    %177 = tpu.matmul %174, %175, %cst_73 {dimension_numbers = #tpu.dot_dimension_numbers<[1], [1], [0], [0], [0, 0, 1, 0], [], []>} : vector<16x8xf32>, vector<16x8xf32>, vector<16x16xf32> -> vector<16x16xf32>
    %cst_74 = arith.constant 0.158113882 : f32
    %178 = vector.broadcast %cst_74 : f32 to vector<16x16xf32>
    %179 = arith.mulf %177, %178 : vector<16x16xf32>
    %cst_75 = arith.constant dense<0xFF800000> : vector<16xf32>
    %180 = vector.multi_reduction <maximumf>, %179, %cst_75 [1] : vector<16x16xf32> to vector<16xf32>
    %181 = vector.shape_cast %180 : vector<16xf32> to vector<16x1xf32>
    %182 = vector.broadcast %181 : vector<16x1xf32> to vector<16x16xf32>
    %183 = arith.subf %179, %182 : vector<16x16xf32>
    %184 = math.exp %183 : vector<16x16xf32>
    %cst_76 = arith.constant dense<0.000000e+00> : vector<16xf32>
    %185 = vector.multi_reduction <add>, %184, %cst_76 [1] : vector<16x16xf32> to vector<16xf32>
    %186 = vector.shape_cast %185 : vector<16xf32> to vector<16x1xf32>
    %187 = tpu.reciprocal %186 {approx = true} : vector<16x1xf32> -> vector<16x1xf32>
    %188 = vector.broadcast %187 : vector<16x1xf32> to vector<16x16xf32>
    %189 = arith.mulf %184, %188 : vector<16x16xf32>
    %cst_77 = arith.constant dense<0.000000e+00> : vector<16x8xf32>
    %190 = tpu.matmul %189, %176, %cst_77 {dimension_numbers = #tpu.dot_dimension_numbers<[1], [0], [0], [1], [0, 0, 1, 1], [], []>} : vector<16x16xf32>, vector<16x8xf32>, vector<16x8xf32> -> vector<16x8xf32>
    %191 = vector.extract_strided_slice %51 {offsets = [8, 0], sizes = [8, 40], strides = [1, 1]} : vector<40x40xf32> to vector<8x40xf32>
    %cst_78 = arith.constant dense<0.000000e+00> : vector<16x40xf32>
    %192 = tpu.matmul %190, %191, %cst_78 {dimension_numbers = #tpu.dot_dimension_numbers<[1], [0], [0], [1], [0, 0, 1, 1], [], []>} : vector<16x8xf32>, vector<8x40xf32>, vector<16x40xf32> -> vector<16x40xf32>
    %193 = arith.addf %173, %192 : vector<16x40xf32>
    %194 = vector.extract_strided_slice %49 {offsets = [16, 16], sizes = [16, 8], strides = [1, 1]} : vector<32x120xf32> to vector<16x8xf32>
    %195 = vector.extract_strided_slice %49 {offsets = [16, 56], sizes = [16, 8], strides = [1, 1]} : vector<32x120xf32> to vector<16x8xf32>
    %196 = vector.extract_strided_slice %49 {offsets = [16, 96], sizes = [16, 8], strides = [1, 1]} : vector<32x120xf32> to vector<16x8xf32>
    %cst_79 = arith.constant dense<0.000000e+00> : vector<16x16xf32>
    %197 = tpu.matmul %194, %195, %cst_79 {dimension_numbers = #tpu.dot_dimension_numbers<[1], [1], [0], [0], [0, 0, 1, 0], [], []>} : vector<16x8xf32>, vector<16x8xf32>, vector<16x16xf32> -> vector<16x16xf32>
    %cst_80 = arith.constant 0.158113882 : f32
    %198 = vector.broadcast %cst_80 : f32 to vector<16x16xf32>
    %199 = arith.mulf %197, %198 : vector<16x16xf32>
    %cst_81 = arith.constant dense<0xFF800000> : vector<16xf32>
    %200 = vector.multi_reduction <maximumf>, %199, %cst_81 [1] : vector<16x16xf32> to vector<16xf32>
    %201 = vector.shape_cast %200 : vector<16xf32> to vector<16x1xf32>
    %202 = vector.broadcast %201 : vector<16x1xf32> to vector<16x16xf32>
    %203 = arith.subf %199, %202 : vector<16x16xf32>
    %204 = math.exp %203 : vector<16x16xf32>
    %cst_82 = arith.constant dense<0.000000e+00> : vector<16xf32>
    %205 = vector.multi_reduction <add>, %204, %cst_82 [1] : vector<16x16xf32> to vector<16xf32>
    %206 = vector.shape_cast %205 : vector<16xf32> to vector<16x1xf32>
    %207 = tpu.reciprocal %206 {approx = true} : vector<16x1xf32> -> vector<16x1xf32>
    %208 = vector.broadcast %207 : vector<16x1xf32> to vector<16x16xf32>
    %209 = arith.mulf %204, %208 : vector<16x16xf32>
    %cst_83 = arith.constant dense<0.000000e+00> : vector<16x8xf32>
    %210 = tpu.matmul %209, %196, %cst_83 {dimension_numbers = #tpu.dot_dimension_numbers<[1], [0], [0], [1], [0, 0, 1, 1], [], []>} : vector<16x16xf32>, vector<16x8xf32>, vector<16x8xf32> -> vector<16x8xf32>
    %211 = vector.extract_strided_slice %51 {offsets = [16, 0], sizes = [8, 40], strides = [1, 1]} : vector<40x40xf32> to vector<8x40xf32>
    %cst_84 = arith.constant dense<0.000000e+00> : vector<16x40xf32>
    %212 = tpu.matmul %210, %211, %cst_84 {dimension_numbers = #tpu.dot_dimension_numbers<[1], [0], [0], [1], [0, 0, 1, 1], [], []>} : vector<16x8xf32>, vector<8x40xf32>, vector<16x40xf32> -> vector<16x40xf32>
    %213 = arith.addf %193, %212 : vector<16x40xf32>
    %214 = vector.extract_strided_slice %49 {offsets = [16, 24], sizes = [16, 8], strides = [1, 1]} : vector<32x120xf32> to vector<16x8xf32>
    %215 = vector.extract_strided_slice %49 {offsets = [16, 64], sizes = [16, 8], strides = [1, 1]} : vector<32x120xf32> to vector<16x8xf32>
    %216 = vector.extract_strided_slice %49 {offsets = [16, 104], sizes = [16, 8], strides = [1, 1]} : vector<32x120xf32> to vector<16x8xf32>
    %cst_85 = arith.constant dense<0.000000e+00> : vector<16x16xf32>
    %217 = tpu.matmul %214, %215, %cst_85 {dimension_numbers = #tpu.dot_dimension_numbers<[1], [1], [0], [0], [0, 0, 1, 0], [], []>} : vector<16x8xf32>, vector<16x8xf32>, vector<16x16xf32> -> vector<16x16xf32>
    %cst_86 = arith.constant 0.158113882 : f32
    %218 = vector.broadcast %cst_86 : f32 to vector<16x16xf32>
    %219 = arith.mulf %217, %218 : vector<16x16xf32>
    %cst_87 = arith.constant dense<0xFF800000> : vector<16xf32>
    %220 = vector.multi_reduction <maximumf>, %219, %cst_87 [1] : vector<16x16xf32> to vector<16xf32>
    %221 = vector.shape_cast %220 : vector<16xf32> to vector<16x1xf32>
    %222 = vector.broadcast %221 : vector<16x1xf32> to vector<16x16xf32>
    %223 = arith.subf %219, %222 : vector<16x16xf32>
    %224 = math.exp %223 : vector<16x16xf32>
    %cst_88 = arith.constant dense<0.000000e+00> : vector<16xf32>
    %225 = vector.multi_reduction <add>, %224, %cst_88 [1] : vector<16x16xf32> to vector<16xf32>
    %226 = vector.shape_cast %225 : vector<16xf32> to vector<16x1xf32>
    %227 = tpu.reciprocal %226 {approx = true} : vector<16x1xf32> -> vector<16x1xf32>
    %228 = vector.broadcast %227 : vector<16x1xf32> to vector<16x16xf32>
    %229 = arith.mulf %224, %228 : vector<16x16xf32>
    %cst_89 = arith.constant dense<0.000000e+00> : vector<16x8xf32>
    %230 = tpu.matmul %229, %216, %cst_89 {dimension_numbers = #tpu.dot_dimension_numbers<[1], [0], [0], [1], [0, 0, 1, 1], [], []>} : vector<16x16xf32>, vector<16x8xf32>, vector<16x8xf32> -> vector<16x8xf32>
    %231 = vector.extract_strided_slice %51 {offsets = [24, 0], sizes = [8, 40], strides = [1, 1]} : vector<40x40xf32> to vector<8x40xf32>
    %cst_90 = arith.constant dense<0.000000e+00> : vector<16x40xf32>
    %232 = tpu.matmul %230, %231, %cst_90 {dimension_numbers = #tpu.dot_dimension_numbers<[1], [0], [0], [1], [0, 0, 1, 1], [], []>} : vector<16x8xf32>, vector<8x40xf32>, vector<16x40xf32> -> vector<16x40xf32>
    %233 = arith.addf %213, %232 : vector<16x40xf32>
    %234 = vector.extract_strided_slice %49 {offsets = [16, 32], sizes = [16, 8], strides = [1, 1]} : vector<32x120xf32> to vector<16x8xf32>
    %235 = vector.extract_strided_slice %49 {offsets = [16, 72], sizes = [16, 8], strides = [1, 1]} : vector<32x120xf32> to vector<16x8xf32>
    %236 = vector.extract_strided_slice %49 {offsets = [16, 112], sizes = [16, 8], strides = [1, 1]} : vector<32x120xf32> to vector<16x8xf32>
    %cst_91 = arith.constant dense<0.000000e+00> : vector<16x16xf32>
    %237 = tpu.matmul %234, %235, %cst_91 {dimension_numbers = #tpu.dot_dimension_numbers<[1], [1], [0], [0], [0, 0, 1, 0], [], []>} : vector<16x8xf32>, vector<16x8xf32>, vector<16x16xf32> -> vector<16x16xf32>
    %cst_92 = arith.constant 0.158113882 : f32
    %238 = vector.broadcast %cst_92 : f32 to vector<16x16xf32>
    %239 = arith.mulf %237, %238 : vector<16x16xf32>
    %cst_93 = arith.constant dense<0xFF800000> : vector<16xf32>
    %240 = vector.multi_reduction <maximumf>, %239, %cst_93 [1] : vector<16x16xf32> to vector<16xf32>
    %241 = vector.shape_cast %240 : vector<16xf32> to vector<16x1xf32>
    %242 = vector.broadcast %241 : vector<16x1xf32> to vector<16x16xf32>
    %243 = arith.subf %239, %242 : vector<16x16xf32>
    %244 = math.exp %243 : vector<16x16xf32>
    %cst_94 = arith.constant dense<0.000000e+00> : vector<16xf32>
    %245 = vector.multi_reduction <add>, %244, %cst_94 [1] : vector<16x16xf32> to vector<16xf32>
    %246 = vector.shape_cast %245 : vector<16xf32> to vector<16x1xf32>
    %247 = tpu.reciprocal %246 {approx = true} : vector<16x1xf32> -> vector<16x1xf32>
    %248 = vector.broadcast %247 : vector<16x1xf32> to vector<16x16xf32>
    %249 = arith.mulf %244, %248 : vector<16x16xf32>
    %cst_95 = arith.constant dense<0.000000e+00> : vector<16x8xf32>
    %250 = tpu.matmul %249, %236, %cst_95 {dimension_numbers = #tpu.dot_dimension_numbers<[1], [0], [0], [1], [0, 0, 1, 1], [], []>} : vector<16x16xf32>, vector<16x8xf32>, vector<16x8xf32> -> vector<16x8xf32>
    %251 = vector.extract_strided_slice %51 {offsets = [32, 0], sizes = [8, 40], strides = [1, 1]} : vector<40x40xf32> to vector<8x40xf32>
    %cst_96 = arith.constant dense<0.000000e+00> : vector<16x40xf32>
    %252 = tpu.matmul %250, %251, %cst_96 {dimension_numbers = #tpu.dot_dimension_numbers<[1], [0], [0], [1], [0, 0, 1, 1], [], []>} : vector<16x8xf32>, vector<8x40xf32>, vector<16x40xf32> -> vector<16x40xf32>
    %253 = arith.addf %233, %252 : vector<16x40xf32>
    %254 = tpu.concatenate %152, %253 in 0 : vector<16x40xf32>, vector<16x40xf32> -> vector<32x40xf32>
    %255 = arith.addf %16, %254 : vector<32x40xf32>
    %c0_97 = arith.constant 0 : index
    %c0_98 = arith.constant 0 : index
    %c0_99 = arith.constant 0 : index
    %256 = vector.load %arg12[%c0_97, %c0_98, %c0_99] : memref<2x1x40xf32, #tpu.memory_space<vmem>>, vector<1x1x40xf32>
    %257 = vector.shape_cast %256 : vector<1x1x40xf32> to vector<1x40xf32>
    %258 = vector.broadcast %257 : vector<1x40xf32> to vector<32x40xf32>
    %259 = arith.addf %255, %258 : vector<32x40xf32>
    %c0_100 = arith.constant 0 : index
    %c0_101 = arith.constant 0 : index
    %c0_102 = arith.constant 0 : index
    %260 = vector.load %arg13[%c0_100, %c0_101, %c0_102] : memref<2x1x40xf32, #tpu.memory_space<vmem>>, vector<1x1x40xf32>
    %261 = vector.shape_cast %260 : vector<1x1x40xf32> to vector<1x40xf32>
    %c0_103 = arith.constant 0 : index
    %c0_104 = arith.constant 0 : index
    %c0_105 = arith.constant 0 : index
    %262 = vector.load %arg14[%c0_103, %c0_104, %c0_105] : memref<2x1x40xf32, #tpu.memory_space<vmem>>, vector<1x1x40xf32>
    %263 = vector.shape_cast %262 : vector<1x1x40xf32> to vector<1x40xf32>
    %cst_106 = arith.constant dense<0.000000e+00> : vector<32xf32>
    %264 = vector.multi_reduction <add>, %259, %cst_106 [1] : vector<32x40xf32> to vector<32xf32>
    %265 = vector.shape_cast %264 : vector<32xf32> to vector<32x1xf32>
    %cst_107 = arith.constant 4.000000e+01 : f32
    %266 = vector.broadcast %cst_107 : f32 to vector<32x1xf32>
    %267 = arith.divf %265, %266 : vector<32x1xf32>
    %268 = vector.broadcast %267 : vector<32x1xf32> to vector<32x40xf32>
    %269 = arith.subf %259, %268 : vector<32x40xf32>
    %270 = arith.mulf %269, %269 : vector<32x40xf32>
    %cst_108 = arith.constant dense<0.000000e+00> : vector<32xf32>
    %271 = vector.multi_reduction <add>, %270, %cst_108 [1] : vector<32x40xf32> to vector<32xf32>
    %272 = vector.shape_cast %271 : vector<32xf32> to vector<32x1xf32>
    %cst_109 = arith.constant 4.000000e+01 : f32
    %273 = vector.broadcast %cst_109 : f32 to vector<32x1xf32>
    %274 = arith.divf %272, %273 : vector<32x1xf32>
    %275 = vector.broadcast %267 : vector<32x1xf32> to vector<32x40xf32>
    %276 = arith.subf %259, %275 : vector<32x40xf32>
    %cst_110 = arith.constant 9.99999974E-6 : f32
    %277 = vector.broadcast %cst_110 : f32 to vector<32x1xf32>
    %278 = arith.addf %274, %277 : vector<32x1xf32>
    %279 = math.rsqrt %278 : vector<32x1xf32>
    %280 = vector.broadcast %279 : vector<32x1xf32> to vector<32x40xf32>
    %281 = arith.mulf %276, %280 : vector<32x40xf32>
    %282 = vector.broadcast %261 : vector<1x40xf32> to vector<32x40xf32>
    %283 = arith.mulf %281, %282 : vector<32x40xf32>
    %284 = vector.broadcast %263 : vector<1x40xf32> to vector<32x40xf32>
    %285 = arith.addf %283, %284 : vector<32x40xf32>
    %c0_111 = arith.constant 0 : index
    %c0_112 = arith.constant 0 : index
    %c0_113 = arith.constant 0 : index
    %286 = vector.load %arg15[%c0_111, %c0_112, %c0_113] : memref<2x40x160xf32, #tpu.memory_space<vmem>>, vector<1x40x160xf32>
    %287 = vector.shape_cast %286 : vector<1x40x160xf32> to vector<40x160xf32>
    %cst_114 = arith.constant dense<0.000000e+00> : vector<32x160xf32>
    %288 = tpu.matmul %285, %287, %cst_114 {dimension_numbers = #tpu.dot_dimension_numbers<[1], [0], [0], [1], [0, 0, 1, 1], [], []>} : vector<32x40xf32>, vector<40x160xf32>, vector<32x160xf32> -> vector<32x160xf32>
    %c0_115 = arith.constant 0 : index
    %c0_116 = arith.constant 0 : index
    %c0_117 = arith.constant 0 : index
    %289 = vector.load %arg16[%c0_115, %c0_116, %c0_117] : memref<2x1x160xf32, #tpu.memory_space<vmem>>, vector<1x1x160xf32>
    %290 = vector.shape_cast %289 : vector<1x1x160xf32> to vector<1x160xf32>
    %291 = vector.broadcast %290 : vector<1x160xf32> to vector<32x160xf32>
    %292 = arith.addf %288, %291 : vector<32x160xf32>
    %cst_118 = arith.constant 5.000000e-01 : f32
    %293 = vector.broadcast %cst_118 : f32 to vector<32x160xf32>
    %294 = arith.mulf %293, %292 : vector<32x160xf32>
    %cst_119 = arith.constant 0.707106769 : f32
    %295 = vector.broadcast %cst_119 : f32 to vector<32x160xf32>
    %296 = arith.mulf %292, %295 : vector<32x160xf32>
    %cst_120 = arith.constant 0.000000e+00 : f32
    %297 = vector.broadcast %cst_120 : f32 to vector<32x160xf32>
    %298 = arith.cmpf olt, %296, %297 : vector<32x160xf32>
    %cst_121 = arith.constant -1.000000e+00 : f32
    %cst_122 = arith.constant 1.000000e+00 : f32
    %299 = vector.broadcast %cst_121 : f32 to vector<32x160xf32>
    %300 = vector.broadcast %cst_122 : f32 to vector<32x160xf32>
    %301 = arith.select %298, %299, %300 : vector<32x160xi1>, vector<32x160xf32>
    %302 = math.absf %296 : vector<32x160xf32>
    %cst_123 = arith.constant 0.327591091 : f32
    %303 = vector.broadcast %cst_123 : f32 to vector<32x160xf32>
    %304 = arith.mulf %303, %302 : vector<32x160xf32>
    %cst_124 = arith.constant 1.000000e+00 : f32
    %305 = vector.broadcast %cst_124 : f32 to vector<32x160xf32>
    %306 = arith.addf %305, %304 : vector<32x160xf32>
    %cst_125 = arith.constant 1.000000e+00 : f32
    %307 = vector.broadcast %cst_125 : f32 to vector<32x160xf32>
    %308 = arith.divf %307, %306 : vector<32x160xf32>
    %cst_126 = arith.constant 1.06140542 : f32
    %309 = vector.broadcast %cst_126 : f32 to vector<32x160xf32>
    %310 = arith.mulf %309, %308 : vector<32x160xf32>
    %cst_127 = arith.constant -1.45315206 : f32
    %311 = vector.broadcast %cst_127 : f32 to vector<32x160xf32>
    %312 = arith.addf %310, %311 : vector<32x160xf32>
    %313 = arith.mulf %312, %308 : vector<32x160xf32>
    %cst_128 = arith.constant 1.42141378 : f32
    %314 = vector.broadcast %cst_128 : f32 to vector<32x160xf32>
    %315 = arith.addf %313, %314 : vector<32x160xf32>
    %316 = arith.mulf %315, %308 : vector<32x160xf32>
    %cst_129 = arith.constant -0.284496725 : f32
    %317 = vector.broadcast %cst_129 : f32 to vector<32x160xf32>
    %318 = arith.addf %316, %317 : vector<32x160xf32>
    %319 = arith.mulf %318, %308 : vector<32x160xf32>
    %cst_130 = arith.constant 0.254829586 : f32
    %320 = vector.broadcast %cst_130 : f32 to vector<32x160xf32>
    %321 = arith.addf %319, %320 : vector<32x160xf32>
    %322 = arith.mulf %321, %308 : vector<32x160xf32>
    %cst_131 = arith.constant 0.000000e+00 : f32
    %323 = vector.broadcast %cst_131 : f32 to vector<32x160xf32>
    %324 = arith.subf %323, %302 : vector<32x160xf32>
    %325 = arith.mulf %324, %302 : vector<32x160xf32>
    %326 = math.exp %325 : vector<32x160xf32>
    %327 = arith.mulf %322, %326 : vector<32x160xf32>
    %cst_132 = arith.constant 1.000000e+00 : f32
    %328 = vector.broadcast %cst_132 : f32 to vector<32x160xf32>
    %329 = arith.subf %328, %327 : vector<32x160xf32>
    %330 = arith.mulf %301, %329 : vector<32x160xf32>
    %cst_133 = arith.constant 1.000000e+00 : f32
    %331 = vector.broadcast %cst_133 : f32 to vector<32x160xf32>
    %332 = arith.addf %331, %330 : vector<32x160xf32>
    %333 = arith.mulf %294, %332 : vector<32x160xf32>
    %c0_134 = arith.constant 0 : index
    %c0_135 = arith.constant 0 : index
    %c0_136 = arith.constant 0 : index
    %334 = vector.load %arg17[%c0_134, %c0_135, %c0_136] : memref<2x160x40xf32, #tpu.memory_space<vmem>>, vector<1x160x40xf32>
    %335 = vector.shape_cast %334 : vector<1x160x40xf32> to vector<160x40xf32>
    %cst_137 = arith.constant dense<0.000000e+00> : vector<32x40xf32>
    %336 = tpu.matmul %333, %335, %cst_137 {dimension_numbers = #tpu.dot_dimension_numbers<[1], [0], [0], [1], [0, 0, 1, 1], [], []>} : vector<32x160xf32>, vector<160x40xf32>, vector<32x40xf32> -> vector<32x40xf32>
    %337 = arith.addf %259, %336 : vector<32x40xf32>
    %c0_138 = arith.constant 0 : index
    %c0_139 = arith.constant 0 : index
    %c0_140 = arith.constant 0 : index
    %338 = vector.load %arg18[%c0_138, %c0_139, %c0_140] : memref<2x1x40xf32, #tpu.memory_space<vmem>>, vector<1x1x40xf32>
    %339 = vector.shape_cast %338 : vector<1x1x40xf32> to vector<1x40xf32>
    %340 = vector.broadcast %339 : vector<1x40xf32> to vector<32x40xf32>
    %341 = arith.addf %337, %340 : vector<32x40xf32>
    %c1 = arith.constant 1 : index
    %c0_141 = arith.constant 0 : index
    %c0_142 = arith.constant 0 : index
    %342 = vector.load %arg7[%c1, %c0_141, %c0_142] : memref<2x1x40xf32, #tpu.memory_space<vmem>>, vector<1x1x40xf32>
    %343 = vector.shape_cast %342 : vector<1x1x40xf32> to vector<1x40xf32>
    %c1_143 = arith.constant 1 : index
    %c0_144 = arith.constant 0 : index
    %c0_145 = arith.constant 0 : index
    %344 = vector.load %arg8[%c1_143, %c0_144, %c0_145] : memref<2x1x40xf32, #tpu.memory_space<vmem>>, vector<1x1x40xf32>
    %345 = vector.shape_cast %344 : vector<1x1x40xf32> to vector<1x40xf32>
    %cst_146 = arith.constant dense<0.000000e+00> : vector<32xf32>
    %346 = vector.multi_reduction <add>, %341, %cst_146 [1] : vector<32x40xf32> to vector<32xf32>
    %347 = vector.shape_cast %346 : vector<32xf32> to vector<32x1xf32>
    %cst_147 = arith.constant 4.000000e+01 : f32
    %348 = vector.broadcast %cst_147 : f32 to vector<32x1xf32>
    %349 = arith.divf %347, %348 : vector<32x1xf32>
    %350 = vector.broadcast %349 : vector<32x1xf32> to vector<32x40xf32>
    %351 = arith.subf %341, %350 : vector<32x40xf32>
    %352 = arith.mulf %351, %351 : vector<32x40xf32>
    %cst_148 = arith.constant dense<0.000000e+00> : vector<32xf32>
    %353 = vector.multi_reduction <add>, %352, %cst_148 [1] : vector<32x40xf32> to vector<32xf32>
    %354 = vector.shape_cast %353 : vector<32xf32> to vector<32x1xf32>
    %cst_149 = arith.constant 4.000000e+01 : f32
    %355 = vector.broadcast %cst_149 : f32 to vector<32x1xf32>
    %356 = arith.divf %354, %355 : vector<32x1xf32>
    %357 = vector.broadcast %349 : vector<32x1xf32> to vector<32x40xf32>
    %358 = arith.subf %341, %357 : vector<32x40xf32>
    %cst_150 = arith.constant 9.99999974E-6 : f32
    %359 = vector.broadcast %cst_150 : f32 to vector<32x1xf32>
    %360 = arith.addf %356, %359 : vector<32x1xf32>
    %361 = math.rsqrt %360 : vector<32x1xf32>
    %362 = vector.broadcast %361 : vector<32x1xf32> to vector<32x40xf32>
    %363 = arith.mulf %358, %362 : vector<32x40xf32>
    %364 = vector.broadcast %343 : vector<1x40xf32> to vector<32x40xf32>
    %365 = arith.mulf %363, %364 : vector<32x40xf32>
    %366 = vector.broadcast %345 : vector<1x40xf32> to vector<32x40xf32>
    %367 = arith.addf %365, %366 : vector<32x40xf32>
    %c1_151 = arith.constant 1 : index
    %c0_152 = arith.constant 0 : index
    %c0_153 = arith.constant 0 : index
    %368 = vector.load %arg9[%c1_151, %c0_152, %c0_153] : memref<2x40x120xf32, #tpu.memory_space<vmem>>, vector<1x40x120xf32>
    %369 = vector.shape_cast %368 : vector<1x40x120xf32> to vector<40x120xf32>
    %cst_154 = arith.constant dense<0.000000e+00> : vector<32x120xf32>
    %370 = tpu.matmul %367, %369, %cst_154 {dimension_numbers = #tpu.dot_dimension_numbers<[1], [0], [0], [1], [0, 0, 1, 1], [], []>} : vector<32x40xf32>, vector<40x120xf32>, vector<32x120xf32> -> vector<32x120xf32>
    %c1_155 = arith.constant 1 : index
    %c0_156 = arith.constant 0 : index
    %c0_157 = arith.constant 0 : index
    %371 = vector.load %arg10[%c1_155, %c0_156, %c0_157] : memref<2x1x120xf32, #tpu.memory_space<vmem>>, vector<1x1x120xf32>
    %372 = vector.shape_cast %371 : vector<1x1x120xf32> to vector<1x120xf32>
    %373 = vector.broadcast %372 : vector<1x120xf32> to vector<32x120xf32>
    %374 = arith.addf %370, %373 : vector<32x120xf32>
    %c1_158 = arith.constant 1 : index
    %c0_159 = arith.constant 0 : index
    %c0_160 = arith.constant 0 : index
    %375 = vector.load %arg11[%c1_158, %c0_159, %c0_160] : memref<2x40x40xf32, #tpu.memory_space<vmem>>, vector<1x40x40xf32>
    %376 = vector.shape_cast %375 : vector<1x40x40xf32> to vector<40x40xf32>
    %cst_161 = arith.constant 0.000000e+00 : f32
    %377 = vector.broadcast %cst_161 : f32 to vector<16x40xf32>
    %378 = vector.extract_strided_slice %374 {offsets = [0, 0], sizes = [16, 8], strides = [1, 1]} : vector<32x120xf32> to vector<16x8xf32>
    %379 = vector.extract_strided_slice %374 {offsets = [0, 40], sizes = [16, 8], strides = [1, 1]} : vector<32x120xf32> to vector<16x8xf32>
    %380 = vector.extract_strided_slice %374 {offsets = [0, 80], sizes = [16, 8], strides = [1, 1]} : vector<32x120xf32> to vector<16x8xf32>
    %cst_162 = arith.constant dense<0.000000e+00> : vector<16x16xf32>
    %381 = tpu.matmul %378, %379, %cst_162 {dimension_numbers = #tpu.dot_dimension_numbers<[1], [1], [0], [0], [0, 0, 1, 0], [], []>} : vector<16x8xf32>, vector<16x8xf32>, vector<16x16xf32> -> vector<16x16xf32>
    %cst_163 = arith.constant 0.158113882 : f32
    %382 = vector.broadcast %cst_163 : f32 to vector<16x16xf32>
    %383 = arith.mulf %381, %382 : vector<16x16xf32>
    %cst_164 = arith.constant dense<0xFF800000> : vector<16xf32>
    %384 = vector.multi_reduction <maximumf>, %383, %cst_164 [1] : vector<16x16xf32> to vector<16xf32>
    %385 = vector.shape_cast %384 : vector<16xf32> to vector<16x1xf32>
    %386 = vector.broadcast %385 : vector<16x1xf32> to vector<16x16xf32>
    %387 = arith.subf %383, %386 : vector<16x16xf32>
    %388 = math.exp %387 : vector<16x16xf32>
    %cst_165 = arith.constant dense<0.000000e+00> : vector<16xf32>
    %389 = vector.multi_reduction <add>, %388, %cst_165 [1] : vector<16x16xf32> to vector<16xf32>
    %390 = vector.shape_cast %389 : vector<16xf32> to vector<16x1xf32>
    %391 = tpu.reciprocal %390 {approx = true} : vector<16x1xf32> -> vector<16x1xf32>
    %392 = vector.broadcast %391 : vector<16x1xf32> to vector<16x16xf32>
    %393 = arith.mulf %388, %392 : vector<16x16xf32>
    %cst_166 = arith.constant dense<0.000000e+00> : vector<16x8xf32>
    %394 = tpu.matmul %393, %380, %cst_166 {dimension_numbers = #tpu.dot_dimension_numbers<[1], [0], [0], [1], [0, 0, 1, 1], [], []>} : vector<16x16xf32>, vector<16x8xf32>, vector<16x8xf32> -> vector<16x8xf32>
    %395 = vector.extract_strided_slice %376 {offsets = [0, 0], sizes = [8, 40], strides = [1, 1]} : vector<40x40xf32> to vector<8x40xf32>
    %cst_167 = arith.constant dense<0.000000e+00> : vector<16x40xf32>
    %396 = tpu.matmul %394, %395, %cst_167 {dimension_numbers = #tpu.dot_dimension_numbers<[1], [0], [0], [1], [0, 0, 1, 1], [], []>} : vector<16x8xf32>, vector<8x40xf32>, vector<16x40xf32> -> vector<16x40xf32>
    %397 = arith.addf %377, %396 : vector<16x40xf32>
    %398 = vector.extract_strided_slice %374 {offsets = [0, 8], sizes = [16, 8], strides = [1, 1]} : vector<32x120xf32> to vector<16x8xf32>
    %399 = vector.extract_strided_slice %374 {offsets = [0, 48], sizes = [16, 8], strides = [1, 1]} : vector<32x120xf32> to vector<16x8xf32>
    %400 = vector.extract_strided_slice %374 {offsets = [0, 88], sizes = [16, 8], strides = [1, 1]} : vector<32x120xf32> to vector<16x8xf32>
    %cst_168 = arith.constant dense<0.000000e+00> : vector<16x16xf32>
    %401 = tpu.matmul %398, %399, %cst_168 {dimension_numbers = #tpu.dot_dimension_numbers<[1], [1], [0], [0], [0, 0, 1, 0], [], []>} : vector<16x8xf32>, vector<16x8xf32>, vector<16x16xf32> -> vector<16x16xf32>
    %cst_169 = arith.constant 0.158113882 : f32
    %402 = vector.broadcast %cst_169 : f32 to vector<16x16xf32>
    %403 = arith.mulf %401, %402 : vector<16x16xf32>
    %cst_170 = arith.constant dense<0xFF800000> : vector<16xf32>
    %404 = vector.multi_reduction <maximumf>, %403, %cst_170 [1] : vector<16x16xf32> to vector<16xf32>
    %405 = vector.shape_cast %404 : vector<16xf32> to vector<16x1xf32>
    %406 = vector.broadcast %405 : vector<16x1xf32> to vector<16x16xf32>
    %407 = arith.subf %403, %406 : vector<16x16xf32>
    %408 = math.exp %407 : vector<16x16xf32>
    %cst_171 = arith.constant dense<0.000000e+00> : vector<16xf32>
    %409 = vector.multi_reduction <add>, %408, %cst_171 [1] : vector<16x16xf32> to vector<16xf32>
    %410 = vector.shape_cast %409 : vector<16xf32> to vector<16x1xf32>
    %411 = tpu.reciprocal %410 {approx = true} : vector<16x1xf32> -> vector<16x1xf32>
    %412 = vector.broadcast %411 : vector<16x1xf32> to vector<16x16xf32>
    %413 = arith.mulf %408, %412 : vector<16x16xf32>
    %cst_172 = arith.constant dense<0.000000e+00> : vector<16x8xf32>
    %414 = tpu.matmul %413, %400, %cst_172 {dimension_numbers = #tpu.dot_dimension_numbers<[1], [0], [0], [1], [0, 0, 1, 1], [], []>} : vector<16x16xf32>, vector<16x8xf32>, vector<16x8xf32> -> vector<16x8xf32>
    %415 = vector.extract_strided_slice %376 {offsets = [8, 0], sizes = [8, 40], strides = [1, 1]} : vector<40x40xf32> to vector<8x40xf32>
    %cst_173 = arith.constant dense<0.000000e+00> : vector<16x40xf32>
    %416 = tpu.matmul %414, %415, %cst_173 {dimension_numbers = #tpu.dot_dimension_numbers<[1], [0], [0], [1], [0, 0, 1, 1], [], []>} : vector<16x8xf32>, vector<8x40xf32>, vector<16x40xf32> -> vector<16x40xf32>
    %417 = arith.addf %397, %416 : vector<16x40xf32>
    %418 = vector.extract_strided_slice %374 {offsets = [0, 16], sizes = [16, 8], strides = [1, 1]} : vector<32x120xf32> to vector<16x8xf32>
    %419 = vector.extract_strided_slice %374 {offsets = [0, 56], sizes = [16, 8], strides = [1, 1]} : vector<32x120xf32> to vector<16x8xf32>
    %420 = vector.extract_strided_slice %374 {offsets = [0, 96], sizes = [16, 8], strides = [1, 1]} : vector<32x120xf32> to vector<16x8xf32>
    %cst_174 = arith.constant dense<0.000000e+00> : vector<16x16xf32>
    %421 = tpu.matmul %418, %419, %cst_174 {dimension_numbers = #tpu.dot_dimension_numbers<[1], [1], [0], [0], [0, 0, 1, 0], [], []>} : vector<16x8xf32>, vector<16x8xf32>, vector<16x16xf32> -> vector<16x16xf32>
    %cst_175 = arith.constant 0.158113882 : f32
    %422 = vector.broadcast %cst_175 : f32 to vector<16x16xf32>
    %423 = arith.mulf %421, %422 : vector<16x16xf32>
    %cst_176 = arith.constant dense<0xFF800000> : vector<16xf32>
    %424 = vector.multi_reduction <maximumf>, %423, %cst_176 [1] : vector<16x16xf32> to vector<16xf32>
    %425 = vector.shape_cast %424 : vector<16xf32> to vector<16x1xf32>
    %426 = vector.broadcast %425 : vector<16x1xf32> to vector<16x16xf32>
    %427 = arith.subf %423, %426 : vector<16x16xf32>
    %428 = math.exp %427 : vector<16x16xf32>
    %cst_177 = arith.constant dense<0.000000e+00> : vector<16xf32>
    %429 = vector.multi_reduction <add>, %428, %cst_177 [1] : vector<16x16xf32> to vector<16xf32>
    %430 = vector.shape_cast %429 : vector<16xf32> to vector<16x1xf32>
    %431 = tpu.reciprocal %430 {approx = true} : vector<16x1xf32> -> vector<16x1xf32>
    %432 = vector.broadcast %431 : vector<16x1xf32> to vector<16x16xf32>
    %433 = arith.mulf %428, %432 : vector<16x16xf32>
    %cst_178 = arith.constant dense<0.000000e+00> : vector<16x8xf32>
    %434 = tpu.matmul %433, %420, %cst_178 {dimension_numbers = #tpu.dot_dimension_numbers<[1], [0], [0], [1], [0, 0, 1, 1], [], []>} : vector<16x16xf32>, vector<16x8xf32>, vector<16x8xf32> -> vector<16x8xf32>
    %435 = vector.extract_strided_slice %376 {offsets = [16, 0], sizes = [8, 40], strides = [1, 1]} : vector<40x40xf32> to vector<8x40xf32>
    %cst_179 = arith.constant dense<0.000000e+00> : vector<16x40xf32>
    %436 = tpu.matmul %434, %435, %cst_179 {dimension_numbers = #tpu.dot_dimension_numbers<[1], [0], [0], [1], [0, 0, 1, 1], [], []>} : vector<16x8xf32>, vector<8x40xf32>, vector<16x40xf32> -> vector<16x40xf32>
    %437 = arith.addf %417, %436 : vector<16x40xf32>
    %438 = vector.extract_strided_slice %374 {offsets = [0, 24], sizes = [16, 8], strides = [1, 1]} : vector<32x120xf32> to vector<16x8xf32>
    %439 = vector.extract_strided_slice %374 {offsets = [0, 64], sizes = [16, 8], strides = [1, 1]} : vector<32x120xf32> to vector<16x8xf32>
    %440 = vector.extract_strided_slice %374 {offsets = [0, 104], sizes = [16, 8], strides = [1, 1]} : vector<32x120xf32> to vector<16x8xf32>
    %cst_180 = arith.constant dense<0.000000e+00> : vector<16x16xf32>
    %441 = tpu.matmul %438, %439, %cst_180 {dimension_numbers = #tpu.dot_dimension_numbers<[1], [1], [0], [0], [0, 0, 1, 0], [], []>} : vector<16x8xf32>, vector<16x8xf32>, vector<16x16xf32> -> vector<16x16xf32>
    %cst_181 = arith.constant 0.158113882 : f32
    %442 = vector.broadcast %cst_181 : f32 to vector<16x16xf32>
    %443 = arith.mulf %441, %442 : vector<16x16xf32>
    %cst_182 = arith.constant dense<0xFF800000> : vector<16xf32>
    %444 = vector.multi_reduction <maximumf>, %443, %cst_182 [1] : vector<16x16xf32> to vector<16xf32>
    %445 = vector.shape_cast %444 : vector<16xf32> to vector<16x1xf32>
    %446 = vector.broadcast %445 : vector<16x1xf32> to vector<16x16xf32>
    %447 = arith.subf %443, %446 : vector<16x16xf32>
    %448 = math.exp %447 : vector<16x16xf32>
    %cst_183 = arith.constant dense<0.000000e+00> : vector<16xf32>
    %449 = vector.multi_reduction <add>, %448, %cst_183 [1] : vector<16x16xf32> to vector<16xf32>
    %450 = vector.shape_cast %449 : vector<16xf32> to vector<16x1xf32>
    %451 = tpu.reciprocal %450 {approx = true} : vector<16x1xf32> -> vector<16x1xf32>
    %452 = vector.broadcast %451 : vector<16x1xf32> to vector<16x16xf32>
    %453 = arith.mulf %448, %452 : vector<16x16xf32>
    %cst_184 = arith.constant dense<0.000000e+00> : vector<16x8xf32>
    %454 = tpu.matmul %453, %440, %cst_184 {dimension_numbers = #tpu.dot_dimension_numbers<[1], [0], [0], [1], [0, 0, 1, 1], [], []>} : vector<16x16xf32>, vector<16x8xf32>, vector<16x8xf32> -> vector<16x8xf32>
    %455 = vector.extract_strided_slice %376 {offsets = [24, 0], sizes = [8, 40], strides = [1, 1]} : vector<40x40xf32> to vector<8x40xf32>
    %cst_185 = arith.constant dense<0.000000e+00> : vector<16x40xf32>
    %456 = tpu.matmul %454, %455, %cst_185 {dimension_numbers = #tpu.dot_dimension_numbers<[1], [0], [0], [1], [0, 0, 1, 1], [], []>} : vector<16x8xf32>, vector<8x40xf32>, vector<16x40xf32> -> vector<16x40xf32>
    %457 = arith.addf %437, %456 : vector<16x40xf32>
    %458 = vector.extract_strided_slice %374 {offsets = [0, 32], sizes = [16, 8], strides = [1, 1]} : vector<32x120xf32> to vector<16x8xf32>
    %459 = vector.extract_strided_slice %374 {offsets = [0, 72], sizes = [16, 8], strides = [1, 1]} : vector<32x120xf32> to vector<16x8xf32>
    %460 = vector.extract_strided_slice %374 {offsets = [0, 112], sizes = [16, 8], strides = [1, 1]} : vector<32x120xf32> to vector<16x8xf32>
    %cst_186 = arith.constant dense<0.000000e+00> : vector<16x16xf32>
    %461 = tpu.matmul %458, %459, %cst_186 {dimension_numbers = #tpu.dot_dimension_numbers<[1], [1], [0], [0], [0, 0, 1, 0], [], []>} : vector<16x8xf32>, vector<16x8xf32>, vector<16x16xf32> -> vector<16x16xf32>
    %cst_187 = arith.constant 0.158113882 : f32
    %462 = vector.broadcast %cst_187 : f32 to vector<16x16xf32>
    %463 = arith.mulf %461, %462 : vector<16x16xf32>
    %cst_188 = arith.constant dense<0xFF800000> : vector<16xf32>
    %464 = vector.multi_reduction <maximumf>, %463, %cst_188 [1] : vector<16x16xf32> to vector<16xf32>
    %465 = vector.shape_cast %464 : vector<16xf32> to vector<16x1xf32>
    %466 = vector.broadcast %465 : vector<16x1xf32> to vector<16x16xf32>
    %467 = arith.subf %463, %466 : vector<16x16xf32>
    %468 = math.exp %467 : vector<16x16xf32>
    %cst_189 = arith.constant dense<0.000000e+00> : vector<16xf32>
    %469 = vector.multi_reduction <add>, %468, %cst_189 [1] : vector<16x16xf32> to vector<16xf32>
    %470 = vector.shape_cast %469 : vector<16xf32> to vector<16x1xf32>
    %471 = tpu.reciprocal %470 {approx = true} : vector<16x1xf32> -> vector<16x1xf32>
    %472 = vector.broadcast %471 : vector<16x1xf32> to vector<16x16xf32>
    %473 = arith.mulf %468, %472 : vector<16x16xf32>
    %cst_190 = arith.constant dense<0.000000e+00> : vector<16x8xf32>
    %474 = tpu.matmul %473, %460, %cst_190 {dimension_numbers = #tpu.dot_dimension_numbers<[1], [0], [0], [1], [0, 0, 1, 1], [], []>} : vector<16x16xf32>, vector<16x8xf32>, vector<16x8xf32> -> vector<16x8xf32>
    %475 = vector.extract_strided_slice %376 {offsets = [32, 0], sizes = [8, 40], strides = [1, 1]} : vector<40x40xf32> to vector<8x40xf32>
    %cst_191 = arith.constant dense<0.000000e+00> : vector<16x40xf32>
    %476 = tpu.matmul %474, %475, %cst_191 {dimension_numbers = #tpu.dot_dimension_numbers<[1], [0], [0], [1], [0, 0, 1, 1], [], []>} : vector<16x8xf32>, vector<8x40xf32>, vector<16x40xf32> -> vector<16x40xf32>
    %477 = arith.addf %457, %476 : vector<16x40xf32>
    %cst_192 = arith.constant 0.000000e+00 : f32
    %478 = vector.broadcast %cst_192 : f32 to vector<16x40xf32>
    %479 = vector.extract_strided_slice %374 {offsets = [16, 0], sizes = [16, 8], strides = [1, 1]} : vector<32x120xf32> to vector<16x8xf32>
    %480 = vector.extract_strided_slice %374 {offsets = [16, 40], sizes = [16, 8], strides = [1, 1]} : vector<32x120xf32> to vector<16x8xf32>
    %481 = vector.extract_strided_slice %374 {offsets = [16, 80], sizes = [16, 8], strides = [1, 1]} : vector<32x120xf32> to vector<16x8xf32>
    %cst_193 = arith.constant dense<0.000000e+00> : vector<16x16xf32>
    %482 = tpu.matmul %479, %480, %cst_193 {dimension_numbers = #tpu.dot_dimension_numbers<[1], [1], [0], [0], [0, 0, 1, 0], [], []>} : vector<16x8xf32>, vector<16x8xf32>, vector<16x16xf32> -> vector<16x16xf32>
    %cst_194 = arith.constant 0.158113882 : f32
    %483 = vector.broadcast %cst_194 : f32 to vector<16x16xf32>
    %484 = arith.mulf %482, %483 : vector<16x16xf32>
    %cst_195 = arith.constant dense<0xFF800000> : vector<16xf32>
    %485 = vector.multi_reduction <maximumf>, %484, %cst_195 [1] : vector<16x16xf32> to vector<16xf32>
    %486 = vector.shape_cast %485 : vector<16xf32> to vector<16x1xf32>
    %487 = vector.broadcast %486 : vector<16x1xf32> to vector<16x16xf32>
    %488 = arith.subf %484, %487 : vector<16x16xf32>
    %489 = math.exp %488 : vector<16x16xf32>
    %cst_196 = arith.constant dense<0.000000e+00> : vector<16xf32>
    %490 = vector.multi_reduction <add>, %489, %cst_196 [1] : vector<16x16xf32> to vector<16xf32>
    %491 = vector.shape_cast %490 : vector<16xf32> to vector<16x1xf32>
    %492 = tpu.reciprocal %491 {approx = true} : vector<16x1xf32> -> vector<16x1xf32>
    %493 = vector.broadcast %492 : vector<16x1xf32> to vector<16x16xf32>
    %494 = arith.mulf %489, %493 : vector<16x16xf32>
    %cst_197 = arith.constant dense<0.000000e+00> : vector<16x8xf32>
    %495 = tpu.matmul %494, %481, %cst_197 {dimension_numbers = #tpu.dot_dimension_numbers<[1], [0], [0], [1], [0, 0, 1, 1], [], []>} : vector<16x16xf32>, vector<16x8xf32>, vector<16x8xf32> -> vector<16x8xf32>
    %496 = vector.extract_strided_slice %376 {offsets = [0, 0], sizes = [8, 40], strides = [1, 1]} : vector<40x40xf32> to vector<8x40xf32>
    %cst_198 = arith.constant dense<0.000000e+00> : vector<16x40xf32>
    %497 = tpu.matmul %495, %496, %cst_198 {dimension_numbers = #tpu.dot_dimension_numbers<[1], [0], [0], [1], [0, 0, 1, 1], [], []>} : vector<16x8xf32>, vector<8x40xf32>, vector<16x40xf32> -> vector<16x40xf32>
    %498 = arith.addf %478, %497 : vector<16x40xf32>
    %499 = vector.extract_strided_slice %374 {offsets = [16, 8], sizes = [16, 8], strides = [1, 1]} : vector<32x120xf32> to vector<16x8xf32>
    %500 = vector.extract_strided_slice %374 {offsets = [16, 48], sizes = [16, 8], strides = [1, 1]} : vector<32x120xf32> to vector<16x8xf32>
    %501 = vector.extract_strided_slice %374 {offsets = [16, 88], sizes = [16, 8], strides = [1, 1]} : vector<32x120xf32> to vector<16x8xf32>
    %cst_199 = arith.constant dense<0.000000e+00> : vector<16x16xf32>
    %502 = tpu.matmul %499, %500, %cst_199 {dimension_numbers = #tpu.dot_dimension_numbers<[1], [1], [0], [0], [0, 0, 1, 0], [], []>} : vector<16x8xf32>, vector<16x8xf32>, vector<16x16xf32> -> vector<16x16xf32>
    %cst_200 = arith.constant 0.158113882 : f32
    %503 = vector.broadcast %cst_200 : f32 to vector<16x16xf32>
    %504 = arith.mulf %502, %503 : vector<16x16xf32>
    %cst_201 = arith.constant dense<0xFF800000> : vector<16xf32>
    %505 = vector.multi_reduction <maximumf>, %504, %cst_201 [1] : vector<16x16xf32> to vector<16xf32>
    %506 = vector.shape_cast %505 : vector<16xf32> to vector<16x1xf32>
    %507 = vector.broadcast %506 : vector<16x1xf32> to vector<16x16xf32>
    %508 = arith.subf %504, %507 : vector<16x16xf32>
    %509 = math.exp %508 : vector<16x16xf32>
    %cst_202 = arith.constant dense<0.000000e+00> : vector<16xf32>
    %510 = vector.multi_reduction <add>, %509, %cst_202 [1] : vector<16x16xf32> to vector<16xf32>
    %511 = vector.shape_cast %510 : vector<16xf32> to vector<16x1xf32>
    %512 = tpu.reciprocal %511 {approx = true} : vector<16x1xf32> -> vector<16x1xf32>
    %513 = vector.broadcast %512 : vector<16x1xf32> to vector<16x16xf32>
    %514 = arith.mulf %509, %513 : vector<16x16xf32>
    %cst_203 = arith.constant dense<0.000000e+00> : vector<16x8xf32>
    %515 = tpu.matmul %514, %501, %cst_203 {dimension_numbers = #tpu.dot_dimension_numbers<[1], [0], [0], [1], [0, 0, 1, 1], [], []>} : vector<16x16xf32>, vector<16x8xf32>, vector<16x8xf32> -> vector<16x8xf32>
    %516 = vector.extract_strided_slice %376 {offsets = [8, 0], sizes = [8, 40], strides = [1, 1]} : vector<40x40xf32> to vector<8x40xf32>
    %cst_204 = arith.constant dense<0.000000e+00> : vector<16x40xf32>
    %517 = tpu.matmul %515, %516, %cst_204 {dimension_numbers = #tpu.dot_dimension_numbers<[1], [0], [0], [1], [0, 0, 1, 1], [], []>} : vector<16x8xf32>, vector<8x40xf32>, vector<16x40xf32> -> vector<16x40xf32>
    %518 = arith.addf %498, %517 : vector<16x40xf32>
    %519 = vector.extract_strided_slice %374 {offsets = [16, 16], sizes = [16, 8], strides = [1, 1]} : vector<32x120xf32> to vector<16x8xf32>
    %520 = vector.extract_strided_slice %374 {offsets = [16, 56], sizes = [16, 8], strides = [1, 1]} : vector<32x120xf32> to vector<16x8xf32>
    %521 = vector.extract_strided_slice %374 {offsets = [16, 96], sizes = [16, 8], strides = [1, 1]} : vector<32x120xf32> to vector<16x8xf32>
    %cst_205 = arith.constant dense<0.000000e+00> : vector<16x16xf32>
    %522 = tpu.matmul %519, %520, %cst_205 {dimension_numbers = #tpu.dot_dimension_numbers<[1], [1], [0], [0], [0, 0, 1, 0], [], []>} : vector<16x8xf32>, vector<16x8xf32>, vector<16x16xf32> -> vector<16x16xf32>
    %cst_206 = arith.constant 0.158113882 : f32
    %523 = vector.broadcast %cst_206 : f32 to vector<16x16xf32>
    %524 = arith.mulf %522, %523 : vector<16x16xf32>
    %cst_207 = arith.constant dense<0xFF800000> : vector<16xf32>
    %525 = vector.multi_reduction <maximumf>, %524, %cst_207 [1] : vector<16x16xf32> to vector<16xf32>
    %526 = vector.shape_cast %525 : vector<16xf32> to vector<16x1xf32>
    %527 = vector.broadcast %526 : vector<16x1xf32> to vector<16x16xf32>
    %528 = arith.subf %524, %527 : vector<16x16xf32>
    %529 = math.exp %528 : vector<16x16xf32>
    %cst_208 = arith.constant dense<0.000000e+00> : vector<16xf32>
    %530 = vector.multi_reduction <add>, %529, %cst_208 [1] : vector<16x16xf32> to vector<16xf32>
    %531 = vector.shape_cast %530 : vector<16xf32> to vector<16x1xf32>
    %532 = tpu.reciprocal %531 {approx = true} : vector<16x1xf32> -> vector<16x1xf32>
    %533 = vector.broadcast %532 : vector<16x1xf32> to vector<16x16xf32>
    %534 = arith.mulf %529, %533 : vector<16x16xf32>
    %cst_209 = arith.constant dense<0.000000e+00> : vector<16x8xf32>
    %535 = tpu.matmul %534, %521, %cst_209 {dimension_numbers = #tpu.dot_dimension_numbers<[1], [0], [0], [1], [0, 0, 1, 1], [], []>} : vector<16x16xf32>, vector<16x8xf32>, vector<16x8xf32> -> vector<16x8xf32>
    %536 = vector.extract_strided_slice %376 {offsets = [16, 0], sizes = [8, 40], strides = [1, 1]} : vector<40x40xf32> to vector<8x40xf32>
    %cst_210 = arith.constant dense<0.000000e+00> : vector<16x40xf32>
    %537 = tpu.matmul %535, %536, %cst_210 {dimension_numbers = #tpu.dot_dimension_numbers<[1], [0], [0], [1], [0, 0, 1, 1], [], []>} : vector<16x8xf32>, vector<8x40xf32>, vector<16x40xf32> -> vector<16x40xf32>
    %538 = arith.addf %518, %537 : vector<16x40xf32>
    %539 = vector.extract_strided_slice %374 {offsets = [16, 24], sizes = [16, 8], strides = [1, 1]} : vector<32x120xf32> to vector<16x8xf32>
    %540 = vector.extract_strided_slice %374 {offsets = [16, 64], sizes = [16, 8], strides = [1, 1]} : vector<32x120xf32> to vector<16x8xf32>
    %541 = vector.extract_strided_slice %374 {offsets = [16, 104], sizes = [16, 8], strides = [1, 1]} : vector<32x120xf32> to vector<16x8xf32>
    %cst_211 = arith.constant dense<0.000000e+00> : vector<16x16xf32>
    %542 = tpu.matmul %539, %540, %cst_211 {dimension_numbers = #tpu.dot_dimension_numbers<[1], [1], [0], [0], [0, 0, 1, 0], [], []>} : vector<16x8xf32>, vector<16x8xf32>, vector<16x16xf32> -> vector<16x16xf32>
    %cst_212 = arith.constant 0.158113882 : f32
    %543 = vector.broadcast %cst_212 : f32 to vector<16x16xf32>
    %544 = arith.mulf %542, %543 : vector<16x16xf32>
    %cst_213 = arith.constant dense<0xFF800000> : vector<16xf32>
    %545 = vector.multi_reduction <maximumf>, %544, %cst_213 [1] : vector<16x16xf32> to vector<16xf32>
    %546 = vector.shape_cast %545 : vector<16xf32> to vector<16x1xf32>
    %547 = vector.broadcast %546 : vector<16x1xf32> to vector<16x16xf32>
    %548 = arith.subf %544, %547 : vector<16x16xf32>
    %549 = math.exp %548 : vector<16x16xf32>
    %cst_214 = arith.constant dense<0.000000e+00> : vector<16xf32>
    %550 = vector.multi_reduction <add>, %549, %cst_214 [1] : vector<16x16xf32> to vector<16xf32>
    %551 = vector.shape_cast %550 : vector<16xf32> to vector<16x1xf32>
    %552 = tpu.reciprocal %551 {approx = true} : vector<16x1xf32> -> vector<16x1xf32>
    %553 = vector.broadcast %552 : vector<16x1xf32> to vector<16x16xf32>
    %554 = arith.mulf %549, %553 : vector<16x16xf32>
    %cst_215 = arith.constant dense<0.000000e+00> : vector<16x8xf32>
    %555 = tpu.matmul %554, %541, %cst_215 {dimension_numbers = #tpu.dot_dimension_numbers<[1], [0], [0], [1], [0, 0, 1, 1], [], []>} : vector<16x16xf32>, vector<16x8xf32>, vector<16x8xf32> -> vector<16x8xf32>
    %556 = vector.extract_strided_slice %376 {offsets = [24, 0], sizes = [8, 40], strides = [1, 1]} : vector<40x40xf32> to vector<8x40xf32>
    %cst_216 = arith.constant dense<0.000000e+00> : vector<16x40xf32>
    %557 = tpu.matmul %555, %556, %cst_216 {dimension_numbers = #tpu.dot_dimension_numbers<[1], [0], [0], [1], [0, 0, 1, 1], [], []>} : vector<16x8xf32>, vector<8x40xf32>, vector<16x40xf32> -> vector<16x40xf32>
    %558 = arith.addf %538, %557 : vector<16x40xf32>
    %559 = vector.extract_strided_slice %374 {offsets = [16, 32], sizes = [16, 8], strides = [1, 1]} : vector<32x120xf32> to vector<16x8xf32>
    %560 = vector.extract_strided_slice %374 {offsets = [16, 72], sizes = [16, 8], strides = [1, 1]} : vector<32x120xf32> to vector<16x8xf32>
    %561 = vector.extract_strided_slice %374 {offsets = [16, 112], sizes = [16, 8], strides = [1, 1]} : vector<32x120xf32> to vector<16x8xf32>
    %cst_217 = arith.constant dense<0.000000e+00> : vector<16x16xf32>
    %562 = tpu.matmul %559, %560, %cst_217 {dimension_numbers = #tpu.dot_dimension_numbers<[1], [1], [0], [0], [0, 0, 1, 0], [], []>} : vector<16x8xf32>, vector<16x8xf32>, vector<16x16xf32> -> vector<16x16xf32>
    %cst_218 = arith.constant 0.158113882 : f32
    %563 = vector.broadcast %cst_218 : f32 to vector<16x16xf32>
    %564 = arith.mulf %562, %563 : vector<16x16xf32>
    %cst_219 = arith.constant dense<0xFF800000> : vector<16xf32>
    %565 = vector.multi_reduction <maximumf>, %564, %cst_219 [1] : vector<16x16xf32> to vector<16xf32>
    %566 = vector.shape_cast %565 : vector<16xf32> to vector<16x1xf32>
    %567 = vector.broadcast %566 : vector<16x1xf32> to vector<16x16xf32>
    %568 = arith.subf %564, %567 : vector<16x16xf32>
    %569 = math.exp %568 : vector<16x16xf32>
    %cst_220 = arith.constant dense<0.000000e+00> : vector<16xf32>
    %570 = vector.multi_reduction <add>, %569, %cst_220 [1] : vector<16x16xf32> to vector<16xf32>
    %571 = vector.shape_cast %570 : vector<16xf32> to vector<16x1xf32>
    %572 = tpu.reciprocal %571 {approx = true} : vector<16x1xf32> -> vector<16x1xf32>
    %573 = vector.broadcast %572 : vector<16x1xf32> to vector<16x16xf32>
    %574 = arith.mulf %569, %573 : vector<16x16xf32>
    %cst_221 = arith.constant dense<0.000000e+00> : vector<16x8xf32>
    %575 = tpu.matmul %574, %561, %cst_221 {dimension_numbers = #tpu.dot_dimension_numbers<[1], [0], [0], [1], [0, 0, 1, 1], [], []>} : vector<16x16xf32>, vector<16x8xf32>, vector<16x8xf32> -> vector<16x8xf32>
    %576 = vector.extract_strided_slice %376 {offsets = [32, 0], sizes = [8, 40], strides = [1, 1]} : vector<40x40xf32> to vector<8x40xf32>
    %cst_222 = arith.constant dense<0.000000e+00> : vector<16x40xf32>
    %577 = tpu.matmul %575, %576, %cst_222 {dimension_numbers = #tpu.dot_dimension_numbers<[1], [0], [0], [1], [0, 0, 1, 1], [], []>} : vector<16x8xf32>, vector<8x40xf32>, vector<16x40xf32> -> vector<16x40xf32>
    %578 = arith.addf %558, %577 : vector<16x40xf32>
    %579 = tpu.concatenate %477, %578 in 0 : vector<16x40xf32>, vector<16x40xf32> -> vector<32x40xf32>
    %580 = arith.addf %341, %579 : vector<32x40xf32>
    %c1_223 = arith.constant 1 : index
    %c0_224 = arith.constant 0 : index
    %c0_225 = arith.constant 0 : index
    %581 = vector.load %arg12[%c1_223, %c0_224, %c0_225] : memref<2x1x40xf32, #tpu.memory_space<vmem>>, vector<1x1x40xf32>
    %582 = vector.shape_cast %581 : vector<1x1x40xf32> to vector<1x40xf32>
    %583 = vector.broadcast %582 : vector<1x40xf32> to vector<32x40xf32>
    %584 = arith.addf %580, %583 : vector<32x40xf32>
    %c1_226 = arith.constant 1 : index
    %c0_227 = arith.constant 0 : index
    %c0_228 = arith.constant 0 : index
    %585 = vector.load %arg13[%c1_226, %c0_227, %c0_228] : memref<2x1x40xf32, #tpu.memory_space<vmem>>, vector<1x1x40xf32>
    %586 = vector.shape_cast %585 : vector<1x1x40xf32> to vector<1x40xf32>
    %c1_229 = arith.constant 1 : index
    %c0_230 = arith.constant 0 : index
    %c0_231 = arith.constant 0 : index
    %587 = vector.load %arg14[%c1_229, %c0_230, %c0_231] : memref<2x1x40xf32, #tpu.memory_space<vmem>>, vector<1x1x40xf32>
    %588 = vector.shape_cast %587 : vector<1x1x40xf32> to vector<1x40xf32>
    %cst_232 = arith.constant dense<0.000000e+00> : vector<32xf32>
    %589 = vector.multi_reduction <add>, %584, %cst_232 [1] : vector<32x40xf32> to vector<32xf32>
    %590 = vector.shape_cast %589 : vector<32xf32> to vector<32x1xf32>
    %cst_233 = arith.constant 4.000000e+01 : f32
    %591 = vector.broadcast %cst_233 : f32 to vector<32x1xf32>
    %592 = arith.divf %590, %591 : vector<32x1xf32>
    %593 = vector.broadcast %592 : vector<32x1xf32> to vector<32x40xf32>
    %594 = arith.subf %584, %593 : vector<32x40xf32>
    %595 = arith.mulf %594, %594 : vector<32x40xf32>
    %cst_234 = arith.constant dense<0.000000e+00> : vector<32xf32>
    %596 = vector.multi_reduction <add>, %595, %cst_234 [1] : vector<32x40xf32> to vector<32xf32>
    %597 = vector.shape_cast %596 : vector<32xf32> to vector<32x1xf32>
    %cst_235 = arith.constant 4.000000e+01 : f32
    %598 = vector.broadcast %cst_235 : f32 to vector<32x1xf32>
    %599 = arith.divf %597, %598 : vector<32x1xf32>
    %600 = vector.broadcast %592 : vector<32x1xf32> to vector<32x40xf32>
    %601 = arith.subf %584, %600 : vector<32x40xf32>
    %cst_236 = arith.constant 9.99999974E-6 : f32
    %602 = vector.broadcast %cst_236 : f32 to vector<32x1xf32>
    %603 = arith.addf %599, %602 : vector<32x1xf32>
    %604 = math.rsqrt %603 : vector<32x1xf32>
    %605 = vector.broadcast %604 : vector<32x1xf32> to vector<32x40xf32>
    %606 = arith.mulf %601, %605 : vector<32x40xf32>
    %607 = vector.broadcast %586 : vector<1x40xf32> to vector<32x40xf32>
    %608 = arith.mulf %606, %607 : vector<32x40xf32>
    %609 = vector.broadcast %588 : vector<1x40xf32> to vector<32x40xf32>
    %610 = arith.addf %608, %609 : vector<32x40xf32>
    %c1_237 = arith.constant 1 : index
    %c0_238 = arith.constant 0 : index
    %c0_239 = arith.constant 0 : index
    %611 = vector.load %arg15[%c1_237, %c0_238, %c0_239] : memref<2x40x160xf32, #tpu.memory_space<vmem>>, vector<1x40x160xf32>
    %612 = vector.shape_cast %611 : vector<1x40x160xf32> to vector<40x160xf32>
    %cst_240 = arith.constant dense<0.000000e+00> : vector<32x160xf32>
    %613 = tpu.matmul %610, %612, %cst_240 {dimension_numbers = #tpu.dot_dimension_numbers<[1], [0], [0], [1], [0, 0, 1, 1], [], []>} : vector<32x40xf32>, vector<40x160xf32>, vector<32x160xf32> -> vector<32x160xf32>
    %c1_241 = arith.constant 1 : index
    %c0_242 = arith.constant 0 : index
    %c0_243 = arith.constant 0 : index
    %614 = vector.load %arg16[%c1_241, %c0_242, %c0_243] : memref<2x1x160xf32, #tpu.memory_space<vmem>>, vector<1x1x160xf32>
    %615 = vector.shape_cast %614 : vector<1x1x160xf32> to vector<1x160xf32>
    %616 = vector.broadcast %615 : vector<1x160xf32> to vector<32x160xf32>
    %617 = arith.addf %613, %616 : vector<32x160xf32>
    %cst_244 = arith.constant 5.000000e-01 : f32
    %618 = vector.broadcast %cst_244 : f32 to vector<32x160xf32>
    %619 = arith.mulf %618, %617 : vector<32x160xf32>
    %cst_245 = arith.constant 0.707106769 : f32
    %620 = vector.broadcast %cst_245 : f32 to vector<32x160xf32>
    %621 = arith.mulf %617, %620 : vector<32x160xf32>
    %cst_246 = arith.constant 0.000000e+00 : f32
    %622 = vector.broadcast %cst_246 : f32 to vector<32x160xf32>
    %623 = arith.cmpf olt, %621, %622 : vector<32x160xf32>
    %cst_247 = arith.constant -1.000000e+00 : f32
    %cst_248 = arith.constant 1.000000e+00 : f32
    %624 = vector.broadcast %cst_247 : f32 to vector<32x160xf32>
    %625 = vector.broadcast %cst_248 : f32 to vector<32x160xf32>
    %626 = arith.select %623, %624, %625 : vector<32x160xi1>, vector<32x160xf32>
    %627 = math.absf %621 : vector<32x160xf32>
    %cst_249 = arith.constant 0.327591091 : f32
    %628 = vector.broadcast %cst_249 : f32 to vector<32x160xf32>
    %629 = arith.mulf %628, %627 : vector<32x160xf32>
    %cst_250 = arith.constant 1.000000e+00 : f32
    %630 = vector.broadcast %cst_250 : f32 to vector<32x160xf32>
    %631 = arith.addf %630, %629 : vector<32x160xf32>
    %cst_251 = arith.constant 1.000000e+00 : f32
    %632 = vector.broadcast %cst_251 : f32 to vector<32x160xf32>
    %633 = arith.divf %632, %631 : vector<32x160xf32>
    %cst_252 = arith.constant 1.06140542 : f32
    %634 = vector.broadcast %cst_252 : f32 to vector<32x160xf32>
    %635 = arith.mulf %634, %633 : vector<32x160xf32>
    %cst_253 = arith.constant -1.45315206 : f32
    %636 = vector.broadcast %cst_253 : f32 to vector<32x160xf32>
    %637 = arith.addf %635, %636 : vector<32x160xf32>
    %638 = arith.mulf %637, %633 : vector<32x160xf32>
    %cst_254 = arith.constant 1.42141378 : f32
    %639 = vector.broadcast %cst_254 : f32 to vector<32x160xf32>
    %640 = arith.addf %638, %639 : vector<32x160xf32>
    %641 = arith.mulf %640, %633 : vector<32x160xf32>
    %cst_255 = arith.constant -0.284496725 : f32
    %642 = vector.broadcast %cst_255 : f32 to vector<32x160xf32>
    %643 = arith.addf %641, %642 : vector<32x160xf32>
    %644 = arith.mulf %643, %633 : vector<32x160xf32>
    %cst_256 = arith.constant 0.254829586 : f32
    %645 = vector.broadcast %cst_256 : f32 to vector<32x160xf32>
    %646 = arith.addf %644, %645 : vector<32x160xf32>
    %647 = arith.mulf %646, %633 : vector<32x160xf32>
    %cst_257 = arith.constant 0.000000e+00 : f32
    %648 = vector.broadcast %cst_257 : f32 to vector<32x160xf32>
    %649 = arith.subf %648, %627 : vector<32x160xf32>
    %650 = arith.mulf %649, %627 : vector<32x160xf32>
    %651 = math.exp %650 : vector<32x160xf32>
    %652 = arith.mulf %647, %651 : vector<32x160xf32>
    %cst_258 = arith.constant 1.000000e+00 : f32
    %653 = vector.broadcast %cst_258 : f32 to vector<32x160xf32>
    %654 = arith.subf %653, %652 : vector<32x160xf32>
    %655 = arith.mulf %626, %654 : vector<32x160xf32>
    %cst_259 = arith.constant 1.000000e+00 : f32
    %656 = vector.broadcast %cst_259 : f32 to vector<32x160xf32>
    %657 = arith.addf %656, %655 : vector<32x160xf32>
    %658 = arith.mulf %619, %657 : vector<32x160xf32>
    %c1_260 = arith.constant 1 : index
    %c0_261 = arith.constant 0 : index
    %c0_262 = arith.constant 0 : index
    %659 = vector.load %arg17[%c1_260, %c0_261, %c0_262] : memref<2x160x40xf32, #tpu.memory_space<vmem>>, vector<1x160x40xf32>
    %660 = vector.shape_cast %659 : vector<1x160x40xf32> to vector<160x40xf32>
    %cst_263 = arith.constant dense<0.000000e+00> : vector<32x40xf32>
    %661 = tpu.matmul %658, %660, %cst_263 {dimension_numbers = #tpu.dot_dimension_numbers<[1], [0], [0], [1], [0, 0, 1, 1], [], []>} : vector<32x160xf32>, vector<160x40xf32>, vector<32x40xf32> -> vector<32x40xf32>
    %662 = arith.addf %584, %661 : vector<32x40xf32>
    %c1_264 = arith.constant 1 : index
    %c0_265 = arith.constant 0 : index
    %c0_266 = arith.constant 0 : index
    %663 = vector.load %arg18[%c1_264, %c0_265, %c0_266] : memref<2x1x40xf32, #tpu.memory_space<vmem>>, vector<1x1x40xf32>
    %664 = vector.shape_cast %663 : vector<1x1x40xf32> to vector<1x40xf32>
    %665 = vector.broadcast %664 : vector<1x40xf32> to vector<32x40xf32>
    %666 = arith.addf %662, %665 : vector<32x40xf32>
    %667 = vector.extract_strided_slice %666 {offsets = [0, 0], sizes = [1, 40], strides = [1, 1]} : vector<32x40xf32> to vector<1x40xf32>
    %668 = vector.extract_strided_slice %666 {offsets = [16, 0], sizes = [1, 40], strides = [1, 1]} : vector<32x40xf32> to vector<1x40xf32>
    %669 = tpu.concatenate %667, %668 in 0 : vector<1x40xf32>, vector<1x40xf32> -> vector<2x40xf32>
    %c0_267 = arith.constant 0 : index
    %c0_268 = arith.constant 0 : index
    %670 = vector.load %arg19[%c0_267, %c0_268] : memref<1x40xf32, #tpu.memory_space<vmem>>, vector<1x40xf32>
    %c0_269 = arith.constant 0 : index
    %c0_270 = arith.constant 0 : index
    %671 = vector.load %arg20[%c0_269, %c0_270] : memref<1x40xf32, #tpu.memory_space<vmem>>, vector<1x40xf32>
    %cst_271 = arith.constant dense<0.000000e+00> : vector<2xf32>
    %672 = vector.multi_reduction <add>, %669, %cst_271 [1] : vector<2x40xf32> to vector<2xf32>
    %673 = vector.shape_cast %672 : vector<2xf32> to vector<2x1xf32>
    %cst_272 = arith.constant 4.000000e+01 : f32
    %674 = vector.broadcast %cst_272 : f32 to vector<2x1xf32>
    %675 = arith.divf %673, %674 : vector<2x1xf32>
    %676 = vector.broadcast %675 : vector<2x1xf32> to vector<2x40xf32>
    %677 = arith.subf %669, %676 : vector<2x40xf32>
    %678 = arith.mulf %677, %677 : vector<2x40xf32>
    %cst_273 = arith.constant dense<0.000000e+00> : vector<2xf32>
    %679 = vector.multi_reduction <add>, %678, %cst_273 [1] : vector<2x40xf32> to vector<2xf32>
    %680 = vector.shape_cast %679 : vector<2xf32> to vector<2x1xf32>
    %cst_274 = arith.constant 4.000000e+01 : f32
    %681 = vector.broadcast %cst_274 : f32 to vector<2x1xf32>
    %682 = arith.divf %680, %681 : vector<2x1xf32>
    %683 = vector.broadcast %675 : vector<2x1xf32> to vector<2x40xf32>
    %684 = arith.subf %669, %683 : vector<2x40xf32>
    %cst_275 = arith.constant 9.99999974E-6 : f32
    %685 = vector.broadcast %cst_275 : f32 to vector<2x1xf32>
    %686 = arith.addf %682, %685 : vector<2x1xf32>
    %687 = math.rsqrt %686 : vector<2x1xf32>
    %688 = vector.broadcast %687 : vector<2x1xf32> to vector<2x40xf32>
    %689 = arith.mulf %684, %688 : vector<2x40xf32>
    %690 = vector.broadcast %670 : vector<1x40xf32> to vector<2x40xf32>
    %691 = arith.mulf %689, %690 : vector<2x40xf32>
    %692 = vector.broadcast %671 : vector<1x40xf32> to vector<2x40xf32>
    %693 = arith.addf %691, %692 : vector<2x40xf32>
    %c0_276 = arith.constant 0 : index
    %c0_277 = arith.constant 0 : index
    %694 = vector.load %arg21[%c0_276, %c0_277] : memref<40x4xf32, #tpu.memory_space<vmem>>, vector<40x4xf32>
    %cst_278 = arith.constant dense<0.000000e+00> : vector<2x4xf32>
    %695 = tpu.matmul %693, %694, %cst_278 {dimension_numbers = #tpu.dot_dimension_numbers<[1], [0], [0], [1], [0, 0, 1, 1], [], []>} : vector<2x40xf32>, vector<40x4xf32>, vector<2x4xf32> -> vector<2x4xf32>
    %c0_279 = arith.constant 0 : index
    %c0_280 = arith.constant 0 : index
    %696 = vector.load %arg22[%c0_279, %c0_280] : memref<1x4xf32, #tpu.memory_space<vmem>>, vector<1x4xf32>
    %697 = vector.broadcast %696 : vector<1x4xf32> to vector<2x4xf32>
    %698 = arith.addf %695, %697 : vector<2x4xf32>
    %c0_281 = arith.constant 0 : index
    %c0_282 = arith.constant 0 : index
    %699 = vector.load %arg23[%c0_281, %c0_282] : memref<2x4xf32, #tpu.memory_space<vmem>>, vector<2x4xf32>
    tpu.vector_store %arg23[%c0_281, %c0_282], %698 {strides = array<i32>} : memref<2x4xf32, #tpu.memory_space<vmem>>, vector<2x4xf32>,
    return
  }
  func.func @transform_0(%arg0: i32) -> (i32, i32) {
    %c0_i32 = arith.constant 0 : i32
    %c0_i32_0 = arith.constant 0 : i32
    %c0_i32_1 = arith.constant 0 : i32
    return %c0_i32, %c0_i32_0 : i32, i32
  }
  func.func @transform_1(%arg0: i32) -> (i32, i32) {
    %c0_i32 = arith.constant 0 : i32
    %c0_i32_0 = arith.constant 0 : i32
    %c0_i32_1 = arith.constant 0 : i32
    return %c0_i32, %c0_i32_0 : i32, i32
  }
  func.func @transform_2(%arg0: i32) -> (i32, i32) {
    %c0_i32 = arith.constant 0 : i32
    %c0_i32_0 = arith.constant 0 : i32
    %c0_i32_1 = arith.constant 0 : i32
    return %c0_i32, %c0_i32_0 : i32, i32
  }
  func.func @transform_3(%arg0: i32) -> (i32, i32) {
    %c0_i32 = arith.constant 0 : i32
    %c0_i32_0 = arith.constant 0 : i32
    %c0_i32_1 = arith.constant 0 : i32
    return %c0_i32, %c0_i32_0 : i32, i32
  }
  func.func @transform_4(%arg0: i32) -> (i32, i32) {
    %c0_i32 = arith.constant 0 : i32
    %c0_i32_0 = arith.constant 0 : i32
    %c0_i32_1 = arith.constant 0 : i32
    return %c0_i32, %c0_i32_0 : i32, i32
  }
  func.func @transform_5(%arg0: i32) -> (i32, i32) {
    %c0_i32 = arith.constant 0 : i32
    %c0_i32_0 = arith.constant 0 : i32
    %c0_i32_1 = arith.constant 0 : i32
    return %c0_i32, %c0_i32_0 : i32, i32
  }
  func.func @transform_6(%arg0: i32) -> (i32, i32, i32) {
    %c0_i32 = arith.constant 0 : i32
    %c0_i32_0 = arith.constant 0 : i32
    %c0_i32_1 = arith.constant 0 : i32
    %c0_i32_2 = arith.constant 0 : i32
    return %c0_i32, %c0_i32_0, %c0_i32_1 : i32, i32, i32
  }
  func.func @transform_7(%arg0: i32) -> (i32, i32, i32) {
    %c0_i32 = arith.constant 0 : i32
    %c0_i32_0 = arith.constant 0 : i32
    %c0_i32_1 = arith.constant 0 : i32
    %c0_i32_2 = arith.constant 0 : i32
    return %c0_i32, %c0_i32_0, %c0_i32_1 : i32, i32, i32
  }
  func.func @transform_8(%arg0: i32) -> (i32, i32, i32) {
    %c0_i32 = arith.constant 0 : i32
    %c0_i32_0 = arith.constant 0 : i32
    %c0_i32_1 = arith.constant 0 : i32
    %c0_i32_2 = arith.constant 0 : i32
    return %c0_i32, %c0_i32_0, %c0_i32_1 : i32, i32, i32
  }
  func.func @transform_9(%arg0: i32) -> (i32, i32, i32) {
    %c0_i32 = arith.constant 0 : i32
    %c0_i32_0 = arith.constant 0 : i32
    %c0_i32_1 = arith.constant 0 : i32
    %c0_i32_2 = arith.constant 0 : i32
    return %c0_i32, %c0_i32_0, %c0_i32_1 : i32, i32, i32
  }
  func.func @transform_10(%arg0: i32) -> (i32, i32, i32) {
    %c0_i32 = arith.constant 0 : i32
    %c0_i32_0 = arith.constant 0 : i32
    %c0_i32_1 = arith.constant 0 : i32
    %c0_i32_2 = arith.constant 0 : i32
    return %c0_i32, %c0_i32_0, %c0_i32_1 : i32, i32, i32
  }
  func.func @transform_11(%arg0: i32) -> (i32, i32, i32) {
    %c0_i32 = arith.constant 0 : i32
    %c0_i32_0 = arith.constant 0 : i32
    %c0_i32_1 = arith.constant 0 : i32
    %c0_i32_2 = arith.constant 0 : i32
    return %c0_i32, %c0_i32_0, %c0_i32_1 : i32, i32, i32
  }
  func.func @transform_12(%arg0: i32) -> (i32, i32, i32) {
    %c0_i32 = arith.constant 0 : i32
    %c0_i32_0 = arith.constant 0 : i32
    %c0_i32_1 = arith.constant 0 : i32
    %c0_i32_2 = arith.constant 0 : i32
    return %c0_i32, %c0_i32_0, %c0_i32_1 : i32, i32, i32
  }
  func.func @transform_13(%arg0: i32) -> (i32, i32, i32) {
    %c0_i32 = arith.constant 0 : i32
    %c0_i32_0 = arith.constant 0 : i32
    %c0_i32_1 = arith.constant 0 : i32
    %c0_i32_2 = arith.constant 0 : i32
    return %c0_i32, %c0_i32_0, %c0_i32_1 : i32, i32, i32
  }
  func.func @transform_14(%arg0: i32) -> (i32, i32, i32) {
    %c0_i32 = arith.constant 0 : i32
    %c0_i32_0 = arith.constant 0 : i32
    %c0_i32_1 = arith.constant 0 : i32
    %c0_i32_2 = arith.constant 0 : i32
    return %c0_i32, %c0_i32_0, %c0_i32_1 : i32, i32, i32
  }
  func.func @transform_15(%arg0: i32) -> (i32, i32, i32) {
    %c0_i32 = arith.constant 0 : i32
    %c0_i32_0 = arith.constant 0 : i32
    %c0_i32_1 = arith.constant 0 : i32
    %c0_i32_2 = arith.constant 0 : i32
    return %c0_i32, %c0_i32_0, %c0_i32_1 : i32, i32, i32
  }
  func.func @transform_16(%arg0: i32) -> (i32, i32, i32) {
    %c0_i32 = arith.constant 0 : i32
    %c0_i32_0 = arith.constant 0 : i32
    %c0_i32_1 = arith.constant 0 : i32
    %c0_i32_2 = arith.constant 0 : i32
    return %c0_i32, %c0_i32_0, %c0_i32_1 : i32, i32, i32
  }
  func.func @transform_17(%arg0: i32) -> (i32, i32, i32) {
    %c0_i32 = arith.constant 0 : i32
    %c0_i32_0 = arith.constant 0 : i32
    %c0_i32_1 = arith.constant 0 : i32
    %c0_i32_2 = arith.constant 0 : i32
    return %c0_i32, %c0_i32_0, %c0_i32_1 : i32, i32, i32
  }
  func.func @transform_18(%arg0: i32) -> (i32, i32) {
    %c0_i32 = arith.constant 0 : i32
    %c0_i32_0 = arith.constant 0 : i32
    %c0_i32_1 = arith.constant 0 : i32
    return %c0_i32, %c0_i32_0 : i32, i32
  }
  func.func @transform_19(%arg0: i32) -> (i32, i32) {
    %c0_i32 = arith.constant 0 : i32
    %c0_i32_0 = arith.constant 0 : i32
    %c0_i32_1 = arith.constant 0 : i32
    return %c0_i32, %c0_i32_0 : i32, i32
  }
  func.func @transform_20(%arg0: i32) -> (i32, i32) {
    %c0_i32 = arith.constant 0 : i32
    %c0_i32_0 = arith.constant 0 : i32
    %c0_i32_1 = arith.constant 0 : i32
    return %c0_i32, %c0_i32_0 : i32, i32
  }
  func.func @transform_21(%arg0: i32) -> (i32, i32) {
    %c0_i32 = arith.constant 0 : i32
    %c0_i32_0 = arith.constant 0 : i32
    %c0_i32_1 = arith.constant 0 : i32
    return %c0_i32, %c0_i32_0 : i32, i32
  }
  func.func @transform_22(%arg0: i32) -> (i32, i32) {
    %c0_i32 = arith.constant 0 : i32
    %c0_i32_0 = arith.constant 0 : i32
    %c0_i32_1 = arith.constant 0 : i32
    return %c0_i32, %c0_i32_0 : i32, i32
  }
}

</mosaic_0001>

<bundles_post_ra>
// kernel: tpu_custom_call.1
= control target key start
LH: loop header
LB: loop body
LE: loop exit
PB: predicated region body
PF: predicated region fallthrough
CT: control target
= control target key end

     0   :  { %s10950_s0 = inlined_call_operand.vmem [shape: f32[32,5], index: 0, kind: input, shape index: {}]   ;;  %s10951_s1 = inlined_call_operand.vmem [shape: f32[32,5], index: 1, kind: input, shape index: {}]   ;;  %s10952_s2 = inlined_call_operand.vmem [shape: f32[5,20], index: 2, kind: input, shape index: {}]   ;;  %s10953_s3 = inlined_call_operand.vmem [shape: f32[1,20], index: 3, kind: input, shape index: {}]   ;;  %s10954_s4 = inlined_call_operand.vmem [shape: f32[20,40], index: 4, kind: input, shape index: {}]   ;;  %s10955_s5 = inlined_call_operand.vmem [shape: f32[1,40], index: 5, kind: input, shape index: {}]   ;;  %s10956_s6 = inlined_call_operand.vmem [shape: f32[2,1,40], index: 6, kind: input, shape index: {}]   ;;  %s10957_s7 = inlined_call_operand.vmem [shape: f32[2,1,40], index: 7, kind: input, shape index: {}]   ;;  %s10958_s8 = inlined_call_operand.vmem [shape: f32[2,40,120], index: 8, kind: input, shape index: {}]   ;;  %s10959_s9 = inlined_call_operand.vmem [shape: f32[2,1,120], index: 9, kind: input, shape index: {}]   ;;  %s10960_s10 = inlined_call_operand.vmem [shape: f32[2,40,40], index: 10, kind: input, shape index: {}]   ;;  %s10961_s11 = inlined_call_operand.vmem [shape: f32[2,1,40], index: 11, kind: input, shape index: {}]   ;;  %s10962_s12 = inlined_call_operand.vmem [shape: f32[2,1,40], index: 12, kind: input, shape index: {}]   ;;  %s10963_s13 = inlined_call_operand.vmem [shape: f32[2,1,40], index: 13, kind: input, shape index: {}]   ;;  %s10964_s14 = inlined_call_operand.vmem [shape: f32[2,40,160], index: 14, kind: input, shape index: {}]   ;;  %s10965_s15 = inlined_call_operand.vmem [shape: f32[2,1,160], index: 15, kind: input, shape index: {}]   ;;  %s10966_s16 = inlined_call_operand.vmem [shape: f32[2,160,40], index: 16, kind: input, shape index: {}]   ;;  %s10967_s17 = inlined_call_operand.vmem [shape: f32[2,1,40], index: 17, kind: input, shape index: {}]   ;;  %s10968_s18 = inlined_call_operand.vmem [shape: f32[1,40], index: 18, kind: input, shape index: {}]   ;;  %s10969_s19 = inlined_call_operand.vmem [shape: f32[1,40], index: 19, kind: input, shape index: {}]   ;;  %s10970_s20 = inlined_call_operand.vmem [shape: f32[40,4], index: 20, kind: input, shape index: {}]   ;;  %s10971_s21 = inlined_call_operand.vmem [shape: f32[1,4], index: 21, kind: input, shape index: {}]   ;;  %s10972_s22 = inlined_call_operand.hbm [shape: f32[2,4], index: 22, kind: output, shape index: {}]  }
   0x1   :  { %10995 = sst [smem:[#allocation5_spill]] %s10950_s0 }
   0x2   :  { %10996 = sst [smem:[#allocation6_spill]] %s10951_s1 }
   0x3   :  { %10997 = sst [smem:[#allocation7_spill]] %s10952_s2 }
   0x4   :  { %10998 = sst [smem:[#allocation8_spill]] %s10953_s3 }
   0x5   :  { %10999 = sst [smem:[#allocation9_spill]] %s10954_s4 }
   0x6   :  { %11000 = sst [smem:[#allocation10_spill]] %s10955_s5 }
   0x7   :  { %11001 = sst [smem:[#allocation11_spill]] %s10956_s6 }
   0x8   :  { %s11002_s29 = sld [smem:[#allocation7_spill]]  ;;  %vm105_vm0 = vcmask 1044480   ;;  %s11003_s0 = sld [smem:[#allocation5_spill]]  ;;  %vm92_vm1 = vcmask 39936  }
   0x9   :  { %s11004_s5 = sld [smem:[#allocation6_spill]] }
   0xe   :  { %v84_v0 = vld [vmem:[%s11002_s29] sm:$0x1f]  ;;  %v73_v4 = vld [vmem:[%s11003_s0 + $0x8] sm:$0xff]  ;;  %v74_v6 = vld [vmem:[%s11003_s0 + $0x10] sm:$0xff] }
   0xf   :  { %v72_v1 = vld [vmem:[%s11003_s0] sm:$0xff]  ;;  %8151 = vmatprep.subr.msk.mxu0 %vm105_vm0, %v84_v0  ;;  %v77_v5 = vld [vmem:[%s11004_s5 + $0x8] sm:$0xff]  ;;  %v78_v8 = vld [vmem:[%s11004_s5 + $0x10] sm:$0xff] }
  0x10   :  { %v76_v2 = vld [vmem:[%s11004_s5] sm:$0xff]  ;;  %8152 = vmatpush3.msk.msra.mxu0 %vm105_vm0, %v84_v0  ;;  %v81_v7 = vadd.f32 %v77_v5, %v73_v4  ;;  %v75_v9 = vld [vmem:[%s11003_s0 + $0x18] sm:$0xff]  ;;  %v82_v11 = vadd.f32 %v78_v8, %v74_v6 }
  0x11   :  { %v80_v3 = vadd.f32 %v76_v2, %v72_v1  ;;  %v79_v10 = vld [vmem:[%s11004_s5 + $0x18] sm:$0xff] }
  0x13   :  { %8153 = vmatprep.mubr.msk.f32.mxu0 %vm92_vm1, %v80_v3 }
  0x14   :  { %27 = vsyncpa [#allocation3], 0  ;;  %8154 = vmatmul.mubr.msk.f32.vlgmr.msra.gmra.mrb[0].mxu0 %vm92_vm1, %v81_v7  ;;  %v83_v12 = vadd.f32 %v79_v10, %v75_v9  ;;  %s11005_s6 = sld [smem:[#allocation9_spill]]  ;;  %vm221_vm2 = vcmask 1043456   ;;  %s11006_s3 = sld [smem:[#allocation8_spill]]  ;;  %vm208_vm3 = vcmask 162816  }
  0x15   :  { %8156 = vmatprep.mubr.msk.f32.mxu0 %vm92_vm1, %v82_v11  ;;  %s11007_s30 = sld [smem:[#allocation10_spill]]  ;;  %vm316_vm4 = vcmask 326656   ;;  %v390_v62 = vld [vmem:[%s10958_s8] sm:$0xff]  ;;  %v391_v63 = vld [vmem:[%s10958_s8 + $0x8] sm:$0xff]  ;;  %v392_v1 = vld [vmem:[%s10958_s8 + $0x10] sm:$0xff]  ;;  %s11008_s28 = sld [smem:[#allocation11_spill]] }
  0x16   :  { %v8600_v0 = vpack.c.bf16 %v391_v63, %v390_v62  ;;  %v393_v2 = vld [vmem:[%s10958_s8 + $0x18] sm:$0xff]  ;;  %v394_v4 = vld [vmem:[%s10958_s8 + $0x20] sm:$0xff]  ;;  %vm510_vm5 = vcmask 64512   ;;  %s10977_s1 = smov 80   ;;  %s10979_s24 = smov 88   ;;  %vm596_vm7 = vcmask 130048  }
  0x17   :  { %v8604_v3 = vpack.c.bf16 %v393_v2, %v392_v1  ;;  %vm9687_vm6 = vmpackc.low %vm510_vm5, %vm510_vm5  ;;  %s10987_s0 = smov 40   ;;  %s9435_s25 = smov 48   ;;  %vm3792_vm12 = vcmask 261120  }
  0x18   :  { %8157 = vmatmul.mubr.msk.f32.gmra.mrb[2].mxu0 %vm92_vm1, %v83_v12  ;;  %8601 = vmatprep.subr.bf16.mxu0 %v8600_v0  ;;  %s9436_s5 = smov 72   ;;  %s9437_s26 = smov 112  }
  0x19   :  { %8603 = vmatpush3.bf16.msra.mxu0 %v8600_v0  ;;  %s10993_s2 = smov 104   ;;  %s9439_s27 = smov 64  }
  0x1a   :  { %v198_v13 = vld [vmem:[%s11005_s6] sm:$0xff]  ;;  %v199_v14 = vld [vmem:[%s11005_s6 + $0x8] sm:$0xff]  ;;  %v200_v16 = vld [vmem:[%s11005_s6 + $0x10] sm:$0xf]  ;;  %8605 = vmatprep.subr.bf16.mxu0 %v8604_v3  ;;  %s9433_s6 = smov 120   ;;  %s10991_s23 = smov 56  }
  0x1b   :  { %v8596_v15 = vpack.c.bf16 %v199_v14, %v198_v13  ;;  %v7633_v17 = vld [vmem:[%s11006_s3] ss:$0 sm:$0xff]  ;;  %s10989_s3 = smov 96   ;;  %s10985_s29 = smov 32  }
  0x1c   :  { %v7639_v30 = vld [vmem:[%s11007_s30] ss:$0 sm:$0xff]  ;;  %s10983_s30 = smov 16   ;;  %s11012_s4 = smov 80  }
  0x1d   :  { %8597 = vmatprep.subr.bf16.mxu1 %v8596_v15  ;;  %8607 = vmatpush3.bf16.msra.mxu0 %v8604_v3 }
  0x1e   :  { %8599 = vmatpush3.bf16.msra.mxu1 %v8596_v15  ;;  %8179 = vmatprep.subr.mxu0 %v394_v4 }
  0x1f   :  { %8163 = vmatprep.subr.msk.mxu1 %vm221_vm2, %v200_v16 }
  0x21   :  { %8180 = vmatpush3.msra.mxu0 %v394_v4 }
  0x22   :  { %8164 = vmatpush3.msk.msra.mxu1 %vm221_vm2, %v200_v16 }
  0xe7   :  { %v8155_v18 = vpop.f32.mrb[0].mxu0 }
  0xe8   :  { %v181_v19 = vadd.f32 %v8155_v18, %v7633_v17  ;;  %v175_v20 = vpop.f32.mrb[1].mxu0 }
  0xe9   :  { %v176_v21 = vadd.f32 %v7633_v17, %v175_v20  ;;  %v7645_v20 = vld [vmem:[%s11008_s28] ss:$0 sm:$0xff] }
  0xea   :  { %v195_v24 = vmax.f32 %v181_v19, 0.0 }
  0xeb   :  { %v194_v22 = vmax.f32 %v176_v21, 0.0  ;;  %v8158_v23 = vpop.f32.mrb[2].mxu0 }
  0xec   :  { %v191_v25 = vadd.f32 %v8158_v23, %v7633_v17  ;;  %v185_v26 = vpop.f32.mrb[3].mxu0 }
  0xed   :  { %8165 = vmatprep.mubr.msk.f32.mxu1 %vm208_vm3, %v194_v22  ;;  %v186_v27 = vadd.f32 %v7633_v17, %v185_v26  ;;  %v7646_v22 = vld [vmem:[%s10957_s7] ss:$0 sm:$0xff] }
  0xee   :  { %8166 = vmatmul.mubr.msk.f32.vlgmr.msra.gmra.mrb[0].mxu1 %vm208_vm3, %v195_v24  ;;  %v197_v28 = vmax.f32 %v191_v25, 0.0 }
  0xef   :  { %v196_v29 = vmax.f32 %v186_v27, 0.0 }
  0xf1   :  { %8168 = vmatprep.mubr.msk.f32.mxu1 %vm208_vm3, %v196_v29 }
  0xf2   :  { %8169 = vmatmul.mubr.msk.f32.gmra.mrb[2].mxu1 %vm208_vm3, %v197_v28 }
 0x1c1   :  { %v8167_v31 = vpop.f32.mrb[0].mxu1 }
 0x1c2   :  { %v291_v32 = vpop.f32.mrb[1].mxu1  ;;  %v297_v33 = vadd.f32 %v8167_v31, %v7639_v30 }
 0x1c3   :  { %v292_v34 = vadd.f32 %v7639_v30, %v291_v32 }
 0x1c4   :  { %v9613_v39 = vmax.f32 %v297_v33, 0.0 }
 0x1c5   :  { %v9611_v35 = vmax.f32 %v292_v34, 0.0  ;;  %v8170_v36 = vpop.f32.mrb[2].mxu1 }
 0x1c6   :  { %v307_v37 = vadd.f32 %v8170_v36, %v7639_v30  ;;  %v301_v38 = vpop.f32.mrb[3].mxu1  ;;  %v320_v43 = vsel %vm316_vm4, %v9613_v39, 0.0 }
 0x1c7   :  { %v317_v40 = vsel %vm316_vm4, %v9611_v35, 0.0  ;;  %v302_v41 = vadd.f32 %v7639_v30, %v301_v38 }
 0x1c8   :  { %318 = vadd.xlane.f32.xlu0 %v317_v40  ;;  %v9626_v54 = vmax.f32 %v307_v37, 0.0 }
 0x1c9   :  { %v9617_v42 = vmax.f32 %v302_v41, 0.0 }
 0x1ca   :  { %v326_v59 = vsel %vm316_vm4, %v9626_v54, 0.0 }
 0x1cb   :  { %v323_v44 = vsel %vm316_vm4, %v9617_v42, 0.0 }
 0x1cc   :  { %321 = vadd.xlane.f32.xlu0 %v320_v43  ;;  %v9663_v43 = vld [vmem:[%s10959_s9] ss:$0 sm:$0xff] }
 0x1d0   :  { %324 = vadd.xlane.f32.xlu0 %v323_v44 }
 0x255   :  { %v319_v45 = vpop.xlane.xlu0 %318 }
 0x256   :  { %v330_v46 = vmul.f32 0.025, %v319_v45 }
 0x258   :  { %v334_v47 = vsub.f32 %v9611_v35, %v330_v46 }
 0x259   :  { %v322_v48 = vpop.xlane.xlu0 %321 }
 0x25a   :  { %v331_v49 = vmul.f32 0.025, %v322_v48  ;;  %v338_v50 = vmul.f32 %v334_v47, %v334_v47 }
 0x25c   :  { %v335_v51 = vsub.f32 %v9613_v39, %v331_v49  ;;  %v342_v52 = vsel %vm316_vm4, %v338_v50, 0.0 }
 0x25d   :  { %343 = vadd.xlane.f32.xlu1 %v342_v52  ;;  %v325_v53 = vpop.xlane.xlu0 %324 }
 0x25e   :  { %v339_v55 = vmul.f32 %v335_v51, %v335_v51  ;;  %v332_v56 = vmul.f32 0.025, %v325_v53 }
 0x260   :  { %v345_v57 = vsel %vm316_vm4, %v339_v55, 0.0  ;;  %v336_v58 = vsub.f32 %v9617_v42, %v332_v56 }
 0x261   :  { %346 = vadd.xlane.f32.xlu1 %v345_v57 }
 0x262   :  { %v340_v60 = vmul.f32 %v336_v58, %v336_v58 }
 0x264   :  { %v348_v61 = vsel %vm316_vm4, %v340_v60, 0.0 }
 0x265   :  { %327 = vadd.xlane.f32.xlu1 %v326_v59  ;;  %349 = vadd.xlane.f32.xlu0 %v348_v61 }
 0x2ea   :  { %v344_v5 = vpop.xlane.xlu1 %343 }
 0x2eb   :  { %v354_v6 = vmul.f32 0.025, %v344_v5 }
 0x2ed   :  { %v358_v7 = vadd.f32 1e-05, %v354_v6 }
 0x2ee   :  { %v347_v8 = vpop.xlane.xlu1 %346 }
 0x2ef   :  { %9149 = vrsqrt.f32 %v358_v7  ;;  %v355_v9 = vmul.f32 0.025, %v347_v8 }
 0x2f1   :  { %v359_v10 = vadd.f32 1e-05, %v355_v9 }
 0x2f2   :  { %v328_v11 = vpop.xlane.xlu1 %327  ;;  %v350_v12 = vpop.xlane.xlu0 %349 }
 0x2f3   :  { %9151 = vrsqrt.f32 %v359_v10  ;;  %v333_v13 = vmul.f32 0.025, %v328_v11  ;;  %v356_v14 = vmul.f32 0.025, %v350_v12 }
 0x2f5   :  { %v337_v15 = vsub.f32 %v9626_v54, %v333_v13  ;;  %v360_v16 = vadd.f32 1e-05, %v356_v14 }
 0x2f7   :  { %v341_v17 = vmul.f32 %v337_v15, %v337_v15  ;;  %9153 = vrsqrt.f32 %v360_v16 }
 0x2f9   :  { %v9150_v18 = vpop.eup %9149  ;;  %v351_v19 = vsel %vm316_vm4, %v341_v17, 0.0 }
 0x2fa   :  { %352 = vadd.xlane.f32.xlu1 %v351_v19  ;;  %v366_v21 = vmul.f32 %v9150_v18, %v334_v47 }
 0x2fc   :  { %v376_v23 = vmul.f32 %v7645_v20, %v366_v21 }
 0x2fd   :  { %v9152_v24 = vpop.eup %9151 }
 0x2fe   :  { %v367_v25 = vmul.f32 %v9152_v24, %v335_v51  ;;  %v386_v26 = vadd.f32 %v7646_v22, %v376_v23 }
 0x300   :  { %v377_v27 = vmul.f32 %v7645_v20, %v367_v25  ;;  %8181 = vmatprep.mubr.msk.f32.mxu0 %vm316_vm4, %v386_v26 }
 0x301   :  { %v9154_v28 = vpop.eup %9153 }
 0x302   :  { %v387_v29 = vadd.f32 %v7646_v22, %v377_v27  ;;  %v368_v30 = vmul.f32 %v9154_v28, %v336_v58 }
 0x304   :  { %8182 = vmatmul.mubr.msk.f32.vlgmr.msra.gmra.mrb[4].mxu0 %vm316_vm4, %v387_v29  ;;  %v378_v31 = vmul.f32 %v7645_v20, %v368_v30 }
 0x306   :  { %v388_v32 = vadd.f32 %v7646_v22, %v378_v31 }
 0x308   :  { %8184 = vmatprep.mubr.msk.f32.mxu0 %vm316_vm4, %v388_v32 }
 0x387   :  { %v353_v33 = vpop.xlane.xlu1 %352 }
 0x388   :  { %v357_v34 = vmul.f32 0.025, %v353_v33 }
 0x38a   :  { %v361_v36 = vadd.f32 1e-05, %v357_v34 }
 0x38c   :  { %9155 = vrsqrt.f32 %v361_v36 }
 0x396   :  { %v9156_v37 = vpop.eup %9155 }
 0x397   :  { %v369_v38 = vmul.f32 %v9156_v37, %v337_v15 }
 0x399   :  { %v379_v40 = vmul.f32 %v7645_v20, %v369_v38 }
 0x39b   :  { %v389_v41 = vadd.f32 %v7646_v22, %v379_v40 }
 0x39d   :  { %8185 = vmatmul.mubr.msk.f32.gmra.mrb[6].mxu0 %vm316_vm4, %v389_v41 }
 0x3d7   :  { %v8183_v44 = vpop.f32.mrb[4].mxu0 }
 0x3d8   :  { %v9666_v45 = vadd.f32 %v8183_v44, %v9663_v43  ;;  %v480_v46 = vpop.f32.mrb[5].mxu0 }
 0x3d9   :  { %v9669_v47 = vadd.f32 %v9663_v43, %v480_v46 }
 0x3db   :  { %8191 = vmatprep.mubr.msk.f32.mxu1 %vm510_vm5, %v9669_v47  ;;  %v9675_v48 = vpack.i.bf16 %v9666_v45, %v9669_v47 }
 0x3dd   :  { %8955 = vrot.lane.b32.xlu1 %v9675_v48, %s10977_s1  ;;  %8950 = vrot.lane.b32.xlu0 %v9675_v48, %s10979_s24 }
 0x3e1   :  { %706 = vrot.lane.b32.xlu1 %v9669_v47, %s9433_s6 }
 0x3e5   :  { %708 = vrot.lane.b32.xlu1 %v9666_v45, %s9433_s6 }
 0x44f   :  { %v8956_v49 = vpop.permute.xlu1 %8955  ;;  %v8951_v50 = vpop.permute.xlu0 %8950 }
 0x450   :  { %v8958_v51 = vunpack.i.h.bf16 %v8956_v49  ;;  %v8957_v52 = vunpack.i.l.bf16 %v8956_v49  ;;  %v8953_v53 = vunpack.i.h.bf16 %v8951_v50  ;;  %v8952_v55 = vunpack.i.l.bf16 %v8951_v50 }
 0x452   :  { %v8618_v57 = vpack.c.bf16 %v8958_v51, %v8957_v52  ;;  %v8608_v58 = vpack.c.bf16 %v8953_v53, %v8952_v55 }
 0x453   :  { %v707_v59 = vpop.permute.xlu1 %706 }
 0x454   :  { %8610 = vmatprep.subr.msk.bf16.mxu1 %vm9687_vm6, %v8608_v58  ;;  %8620 = vmatprep.subr.msk.bf16.mxu0 %vm9687_vm6, %v8618_v57 }
 0x455   :  { %8205 = vmatprep.mubr.msk.f32.mxu0 %vm510_vm5, %v707_v59  ;;  %8613 = vmatpush3.bf16.xpose.msk.msra.mxu1 %vm9687_vm6, %v8608_v58 }
 0x456   :  { %8623 = vmatpush3.bf16.xpose.msk.msra.mxu0 %vm9687_vm6, %v8618_v57 }
 0x457   :  { %v709_v60 = vpop.permute.xlu1 %708 }
 0x45c   :  { %8192 = vmatmul.mubr.msk.f32.vlgmr.msra.gmra.mrb[4].mxu1 %vm510_vm5, %v9666_v45 }
 0x45d   :  { %8206 = vmatmul.mubr.msk.f32.vlgmr.msra.gmra.mrb[8].mxu0 %vm510_vm5, %v709_v60 }
 0x470   :  { %v9703_v61 = vpop.f32.mrb[6].mxu0 }
 0x471   :  { %v9705_v62 = vpop.f32.mrb[7].mxu0 }
 0x52f   :  { %v8193_v63 = vpop.f32.mrb[4].mxu1 }
 0x530   :  { %v595_v0 = vmul.f32 0.15811388, %v8193_v63  ;;  %v8207_v1 = vpop.f32.mrb[8].mxu0  ;;  %v585_v2 = vpop.f32.mrb[5].mxu1 }
 0x531   :  { %v594_v3 = vmul.f32 0.15811388, %v585_v2  ;;  %v788_v4 = vpop.f32.mrb[9].mxu0  ;;  %v798_v8 = vmul.f32 0.15811388, %v8207_v1 }
 0x532   :  { %v600_v5 = vsel %vm596_vm7, %v595_v0, -inf  ;;  %v797_v6 = vmul.f32 0.15811388, %v788_v4 }
 0x533   :  { %601 = vmax.xlane.f32.xlu1 %v600_v5  ;;  %v597_v7 = vsel %vm596_vm7, %v594_v3, -inf  ;;  %v802_v10 = vsel %vm596_vm7, %v798_v8, -inf }
 0x534   :  { %598 = vmax.xlane.f32.xlu0 %v597_v7  ;;  %v799_v9 = vsel %vm596_vm7, %v797_v6, -inf }
 0x538   :  { %800 = vmax.xlane.f32.xlu0 %v799_v9 }
 0x53c   :  { %803 = vmax.xlane.f32.xlu0 %v802_v10  ;;  %v9750_v10 = vld [vmem:[%s10960_s10 + $0x8] sm:$0xff] }
 0x53d   :  { %8215 = vmatprep.subr.mxu0 %v9750_v10 }
 0x53e   :  { %8216 = vmatpush3.msra.mxu0 %v9750_v10 }
 0x5c0   :  { %v602_v11 = vpop.xlane.xlu1 %601 }
 0x5c1   :  { %v604_v12 = vsub.f32 %v595_v0, %v602_v11  ;;  %v599_v13 = vpop.xlane.xlu0 %598  ;;  %v9757_v11 = vld [vmem:[%s10960_s10] sm:$0xff] }
 0x5c2   :  { %v603_v14 = vsub.f32 %v594_v3, %v599_v13  ;;  %8220 = vmatprep.subr.mxu0 %v9757_v11 }
 0x5c3   :  { %v607_v15 = vmul.f32 1.442695, %v604_v12 }
 0x5c4   :  { %v605_v16 = vmul.f32 1.442695, %v603_v14 }
 0x5c5   :  { %9157 = vpow2.f32 %v607_v15  ;;  %v801_v17 = vpop.xlane.xlu0 %800 }
 0x5c6   :  { %9159 = vpow2.f32 %v605_v16  ;;  %v805_v18 = vsub.f32 %v797_v6, %v801_v17 }
 0x5c8   :  { %v807_v19 = vmul.f32 1.442695, %v805_v18 }
 0x5c9   :  { %v804_v20 = vpop.xlane.xlu0 %803 }
 0x5ca   :  { %9161 = vpow2.f32 %v807_v19  ;;  %v806_v21 = vsub.f32 %v798_v8, %v804_v20 }
 0x5cc   :  { %v809_v22 = vmul.f32 1.442695, %v806_v21 }
 0x5ce   :  { %9163 = vpow2.f32 %v809_v22 }
 0x5cf   :  { %v9158_v23 = vpop.eup %9157 }
 0x5d0   :  { %v9160_v24 = vpop.eup %9159  ;;  %v612_v25 = vsel %vm596_vm7, %v9158_v23, 0.0 }
 0x5d1   :  { %613 = vadd.xlane.f32.xlu1 %v612_v25  ;;  %v609_v26 = vsel %vm596_vm7, %v9160_v24, 0.0 }
 0x5d2   :  { %610 = vadd.xlane.f32.xlu0 %v609_v26  ;;  %v9776_v26 = vadd.f32 %v9703_v61, %v9663_v43 }
 0x5d4   :  { %v9162_v27 = vpop.eup %9161 }
 0x5d5   :  { %v811_v28 = vsel %vm596_vm7, %v9162_v27, 0.0 }
 0x5d6   :  { %812 = vadd.xlane.f32.xlu0 %v811_v28 }
 0x5d8   :  { %v9164_v29 = vpop.eup %9163 }
 0x5d9   :  { %v814_v30 = vsel %vm596_vm7, %v9164_v29, 0.0 }
 0x5da   :  { %815 = vadd.xlane.f32.xlu1 %v814_v30 }
 0x5eb   :  { %8965 = vrot.lane.b32.xlu1 %v9675_v48, %s10987_s0 }
 0x5ec   :  { %8960 = vrot.lane.b32.xlu0 %v9675_v48, %s9435_s25 }
 0x5ef   :  { %8970 = vrot.lane.b32.xlu1 %v9675_v48, %s9436_s5 }
 0x5f0   :  { %1072 = vrot.lane.b32.xlu0 %v9666_v45, %s9437_s26 }
 0x5f3   :  { %1070 = vrot.lane.b32.xlu1 %v9669_v47, %s9437_s26 }
 0x5f4   :  { %1355 = vrot.lane.b32.xlu0 %v9669_v47, %s10993_s2 }
 0x5f7   :  { %8975 = vrot.lane.b32.xlu1 %v9675_v48, %s9439_s27 }
 0x5fb   :  { %1357 = vrot.lane.b32.xlu1 %v9666_v45, %s10993_s2 }
 0x65e   :  { %v614_v31 = vpop.xlane.xlu1 %613 }
 0x65f   :  { %v611_v32 = vpop.xlane.xlu0 %610 }
 0x660   :  { %9165 = vrcp.f32 %v611_v32 }
 0x661   :  { %9167 = vrcp.f32 %v614_v31 }
 0x663   :  { %v813_v33 = vpop.xlane.xlu0 %812 }
 0x664   :  { %9169 = vrcp.f32 %v813_v33 }
 0x667   :  { %v816_v34 = vpop.xlane.xlu1 %815  ;;  %v8961_v36 = vpop.permute.xlu0 %8960 }
 0x668   :  { %9171 = vrcp.f32 %v816_v34  ;;  %v8963_v37 = vunpack.i.h.bf16 %v8961_v36  ;;  %v8962_v38 = vunpack.i.l.bf16 %v8961_v36 }
 0x66a   :  { %v9166_v40 = vpop.eup %9165  ;;  %v8614_v41 = vpack.c.bf16 %v8963_v37, %v8962_v38 }
 0x66b   :  { %v9168_v44 = vpop.eup %9167  ;;  %v8966_v46 = vpop.permute.xlu1 %8965  ;;  %v617_v49 = vmul.f32 %v9166_v40, %v9160_v24 }
 0x66c   :  { %v8968_v50 = vunpack.i.h.bf16 %v8966_v46  ;;  %v8967_v51 = vunpack.i.l.bf16 %v8966_v46  ;;  %8615 = vmatprep.subr.bf16.mxu1 %v8614_v41  ;;  %v618_v53 = vmul.f32 %v9168_v44, %v9158_v23  ;;  %v1073_v7 = vpop.permute.xlu0 %1072 }
 0x66d   :  { %8617 = vmatpush3.bf16.msra.mxu1 %v8614_v41  ;;  %8198 = vmatprep.mubr.msk.f32.mxu1 %vm596_vm7, %v617_v49 }
 0x66e   :  { %v9170_v52 = vpop.eup %9169  ;;  %v8624_v55 = vpack.c.bf16 %v8968_v50, %v8967_v51 }
 0x66f   :  { %v8971_v57 = vpop.permute.xlu1 %8970  ;;  %v819_v58 = vmul.f32 %v9170_v52, %v9162_v27  ;;  %v9780_v27 = vadd.f32 %v9663_v43, %v9705_v62 }
 0x670   :  { %v8973_v59 = vunpack.i.h.bf16 %v8971_v57  ;;  %v8972_v60 = vunpack.i.l.bf16 %v8971_v57  ;;  %8199 = vmatmul.mubr.msk.f32.vlgmr.msra.gmra.mrb[6].mxu1 %vm596_vm7, %v618_v53  ;;  %8625 = vmatprep.subr.bf16.mxu1 %v8624_v55  ;;  %v1356_v8 = vpop.permute.xlu0 %1355 }
 0x671   :  { %8627 = vmatpush3.bf16.msra.mxu1 %v8624_v55  ;;  %8212 = vmatprep.mubr.msk.f32.mxu1 %vm596_vm7, %v819_v58  ;;  %v9784_v28 = vpack.i.bf16 %v9776_v26, %v9780_v27 }
 0x672   :  { %v9172_v63 = vpop.eup %9171  ;;  %v8628_v0 = vpack.c.bf16 %v8973_v59, %v8972_v60 }
 0x673   :  { %v1071_v1 = vpop.permute.xlu1 %1070  ;;  %v820_v2 = vmul.f32 %v9172_v63, %v9164_v29 }
 0x674   :  { %8630 = vmatprep.subr.msk.bf16.mxu1 %vm9687_vm6, %v8628_v0 }
 0x675   :  { %8213 = vmatmul.mubr.msk.f32.vlgmr.msra.gmra.mrb[8].mxu1 %vm596_vm7, %v820_v2 }
 0x676   :  { %8229 = vmatprep.mubr.msk.f32.mxu1 %vm510_vm5, %v1071_v1 }
 0x677   :  { %v8976_v3 = vpop.permute.xlu1 %8975 }
 0x678   :  { %v8978_v4 = vunpack.i.h.bf16 %v8976_v3  ;;  %v8977_v5 = vunpack.i.l.bf16 %v8976_v3 }
 0x67a   :  { %v8638_v6 = vpack.c.bf16 %v8978_v4, %v8977_v5  ;;  %8633 = vmatpush3.bf16.xpose.msk.msra.mxu1 %vm9687_vm6, %v8628_v0 }
 0x67b   :  { %v1358_v9 = vpop.permute.xlu1 %1357 }
 0x67c   :  { %8640 = vmatprep.subr.msk.bf16.mxu1 %vm9687_vm6, %v8638_v6 }
 0x681   :  { %8230 = vmatmul.mubr.msk.f32.vlgmr.msra.gmra.mrb[10].mxu1 %vm510_vm5, %v1073_v7 }
 0x682   :  { %8643 = vmatpush3.bf16.xpose.msk.msra.mxu1 %vm9687_vm6, %v8638_v6  ;;  %8248 = vmatprep.mubr.msk.f32.mxu1 %vm510_vm5, %v1356_v8 }
 0x689   :  { %8249 = vmatmul.mubr.msk.f32.vlgmr.msra.gmra.mrb[12].mxu1 %vm510_vm5, %v1358_v9 }
 0x743   :  { %v8200_v12 = vpop.f32.mrb[6].mxu1 }
 0x744   :  { %v697_v13 = vpop.f32.mrb[7].mxu1 }
 0x748   :  { %v8214_v14 = vpop.f32.mrb[8].mxu1 }
 0x749   :  { %v899_v15 = vpop.f32.mrb[9].mxu1 }
 0x74a   :  { %8217 = vmatprep.mubr.msk.f32.mxu0 %vm510_vm5, %v899_v15 }
 0x74b   :  { %8218 = vmatmul.mubr.msk.f32.vlgmr.msra.gmra.mrb[10].mxu0 %vm510_vm5, %v8214_v14 }
 0x74c   :  { %8222 = vmatprep.mubr.msk.f32.mxu0 %vm510_vm5, %v697_v13  ;;  %8221 = vmatpush3.msra.mxu0 %v9757_v11 }
 0x753   :  { %8223 = vmatmul.mubr.msk.f32.vlgmr.msra.gmra.mrb[10].mxu0 %vm510_vm5, %v8200_v12 }
 0x754   :  { %v8231_v16 = vpop.f32.mrb[10].mxu1 }
 0x755   :  { %v1162_v17 = vmul.f32 0.15811388, %v8231_v16  ;;  %v1152_v18 = vpop.f32.mrb[11].mxu1 }
 0x756   :  { %v1161_v19 = vmul.f32 0.15811388, %v1152_v18 }
 0x757   :  { %v1166_v20 = vsel %vm596_vm7, %v1162_v17, -inf }
 0x758   :  { %1167 = vmax.xlane.f32.xlu1 %v1166_v20  ;;  %v1163_v21 = vsel %vm596_vm7, %v1161_v19, -inf }
 0x759   :  { %1164 = vmax.xlane.f32.xlu0 %v1163_v21 }
 0x75c   :  { %v8250_v22 = vpop.f32.mrb[12].mxu1 }
 0x75d   :  { %v1437_v23 = vpop.f32.mrb[13].mxu1  ;;  %v1447_v24 = vmul.f32 0.15811388, %v8250_v22 }
 0x75e   :  { %v1446_v55 = vmul.f32 0.15811388, %v1437_v23 }
 0x75f   :  { %v1451_v25 = vsel %vm596_vm7, %v1447_v24, -inf }
 0x760   :  { %v1448_v63 = vsel %vm596_vm7, %v1446_v55, -inf }
 0x769   :  { %8985 = vrot.lane.b32.xlu1 %v9675_v48, %s10991_s23 }
 0x76d   :  { %1640 = vrot.lane.b32.xlu1 %v9669_v47, %s10989_s3 }
 0x771   :  { %1642 = vrot.lane.b32.xlu1 %v9666_v45, %s10989_s3 }
 0x795   :  { %1452 = vmax.xlane.f32.xlu1 %v1451_v25 }
 0x7a6   :  { %8995 = vrot.lane.b32.xlu1 %v9784_v28, %s10979_s24  ;;  %s10981_s24 = smov 24  }
 0x7aa   :  { %9000 = vrot.lane.b32.xlu1 %v9784_v28, %s10977_s1 }
 0x7ae   :  { %2125 = vrot.lane.b32.xlu1 %v9780_v27, %s9433_s6 }
 0x7e5   :  { %v1168_v45 = vpop.xlane.xlu1 %1167 }
 0x7e6   :  { %v1170_v47 = vsub.f32 %v1162_v17, %v1168_v45  ;;  %v1165_v61 = vpop.xlane.xlu0 %1164 }
 0x7e7   :  { %v1169_v29 = vsub.f32 %v1161_v19, %v1165_v61 }
 0x7e8   :  { %v1173_v30 = vmul.f32 1.442695, %v1170_v47 }
 0x7e9   :  { %v1171_v43 = vmul.f32 1.442695, %v1169_v29  ;;  %v8986_v62 = vpop.permute.xlu1 %8985 }
 0x7ea   :  { %9173 = vpow2.f32 %v1173_v30  ;;  %v8988_v31 = vunpack.i.h.bf16 %v8986_v62  ;;  %v8987_v32 = vunpack.i.l.bf16 %v8986_v62 }
 0x7eb   :  { %9175 = vpow2.f32 %v1171_v43 }
 0x7ec   :  { %v8648_v33 = vpack.c.bf16 %v8988_v31, %v8987_v32 }
 0x7ed   :  { %v1641_v34 = vpop.permute.xlu1 %1640 }
 0x7ee   :  { %8650 = vmatprep.subr.msk.bf16.mxu1 %vm9687_vm6, %v8648_v33  ;;  %8267 = vmatprep.mubr.msk.f32.mxu1 %vm510_vm5, %v1641_v34 }
 0x7ef   :  { %8653 = vmatpush3.bf16.xpose.msk.msra.mxu1 %vm9687_vm6, %v8648_v33 }
 0x7f1   :  { %v1643_v37 = vpop.permute.xlu1 %1642 }
 0x7f4   :  { %v9174_v36 = vpop.eup %9173 }
 0x7f5   :  { %v1178_v38 = vsel %vm596_vm7, %v9174_v36, 0.0  ;;  %v9176_v40 = vpop.eup %9175 }
 0x7f6   :  { %8268 = vmatmul.mubr.msk.f32.vlgmr.msra.gmra.mrb[14].mxu1 %vm510_vm5, %v1643_v37  ;;  %1179 = vadd.xlane.f32.xlu0 %v1178_v38  ;;  %v1175_v41 = vsel %vm596_vm7, %v9176_v40, 0.0 }
 0x7f7   :  { %8286 = vmatprep.mubr.msk.f32.mxu1 %vm510_vm5, %v9780_v27 }
 0x7fa   :  { %1176 = vadd.xlane.f32.xlu0 %v1175_v41 }
 0x810   :  { %8980 = vrot.lane.b32.xlu0 %v9675_v48, %s10985_s29 }
 0x822   :  { %v1453_v44 = vpop.xlane.xlu1 %1452 }
 0x823   :  { %v1455_v46 = vsub.f32 %v1447_v24, %v1453_v44  ;;  %v9829_v24 = vld [vmem:[%s10960_s10 + $0x10] sm:$0xff] }
 0x825   :  { %v1458_v49 = vmul.f32 1.442695, %v1455_v46 }
 0x826   :  { %v8996_v50 = vpop.permute.xlu1 %8995 }
 0x827   :  { %9177 = vpow2.f32 %v1458_v49  ;;  %v8998_v51 = vunpack.i.h.bf16 %v8996_v50  ;;  %v8997_v52 = vunpack.i.l.bf16 %v8996_v50 }
 0x829   :  { %v8658_v53 = vpack.c.bf16 %v8998_v51, %v8997_v52 }
 0x82a   :  { %v9001_v57 = vpop.permute.xlu1 %9000 }
 0x82b   :  { %v9003_v58 = vunpack.i.h.bf16 %v9001_v57  ;;  %v9002_v59 = vunpack.i.l.bf16 %v9001_v57  ;;  %8660 = vmatprep.subr.msk.bf16.mxu1 %vm9687_vm6, %v8658_v53 }
 0x82c   :  { %8663 = vmatpush3.bf16.xpose.msk.msra.mxu1 %vm9687_vm6, %v8658_v53 }
 0x82d   :  { %v8668_v60 = vpack.c.bf16 %v9003_v58, %v9002_v59 }
 0x82e   :  { %v2126_v2 = vpop.permute.xlu1 %2125 }
 0x82f   :  { %8670 = vmatprep.subr.msk.bf16.mxu1 %vm9687_vm6, %v8668_v60  ;;  %1449 = vmax.xlane.f32.xlu0 %v1448_v63 }
 0x831   :  { %v9811_v0 = vpop.eup %9177 }
 0x832   :  { %v1463_v1 = vsel %vm596_vm7, %v9811_v0, 0.0 }
 0x833   :  { %8287 = vmatmul.mubr.msk.f32.vlgmr.msra.gmra.mrb[16].mxu1 %vm510_vm5, %v9776_v26  ;;  %1464 = vadd.xlane.f32.xlu0 %v1463_v1 }
 0x834   :  { %8673 = vmatpush3.bf16.xpose.msk.msra.mxu1 %vm9687_vm6, %v8668_v60  ;;  %8300 = vmatprep.mubr.msk.f32.mxu1 %vm510_vm5, %v2126_v2 }
 0x883   :  { %v1180_v3 = vpop.xlane.xlu0 %1179 }
 0x884   :  { %9179 = vrcp.f32 %v1180_v3 }
 0x887   :  { %v1177_v4 = vpop.xlane.xlu0 %1176 }
 0x888   :  { %9181 = vrcp.f32 %v1177_v4 }
 0x88b   :  { %v8981_v5 = vpop.permute.xlu0 %8980 }
 0x88c   :  { %v8983_v6 = vunpack.i.h.bf16 %v8981_v5  ;;  %v8982_v7 = vunpack.i.l.bf16 %v8981_v5 }
 0x88e   :  { %v8634_v8 = vpack.c.bf16 %v8983_v6, %v8982_v7  ;;  %v9180_v9 = vpop.eup %9179 }
 0x88f   :  { %v1184_v14 = vmul.f32 %v9180_v9, %v9174_v36 }
 0x890   :  { %8635 = vmatprep.subr.bf16.mxu0 %v8634_v8 }
 0x891   :  { %8637 = vmatpush3.bf16.msra.mxu0 %v8634_v8 }
 0x892   :  { %v9182_v12 = vpop.eup %9181  ;;  %8239 = vmatprep.subr.mxu0 %v9829_v24 }
 0x893   :  { %v1183_v13 = vmul.f32 %v9182_v12, %v9176_v40 }
 0x895   :  { %8236 = vmatprep.mubr.msk.f32.mxu0 %vm596_vm7, %v1183_v13 }
 0x896   :  { %8237 = vmatmul.mubr.msk.f32.vlgmr.msra.gmra.mrb[12].mxu0 %vm596_vm7, %v1184_v14 }
 0x897   :  { %8240 = vmatpush3.msra.mxu0 %v9829_v24 }
 0x8bc   :  { %v1450_v15 = vpop.xlane.xlu0 %1449 }
 0x8bd   :  { %v1454_v16 = vsub.f32 %v1446_v55, %v1450_v15  ;;  %v9850_v55 = vld [vmem:[%s10960_s10 + $0x18] sm:$0xff] }
 0x8bf   :  { %v1456_v17 = vmul.f32 1.442695, %v1454_v16 }
 0x8c0   :  { %v1465_v43 = vpop.xlane.xlu0 %1464 }
 0x8c1   :  { %9183 = vpow2.f32 %v1456_v17 }
 0x8c9   :  { %v8269_v18 = vpop.f32.mrb[14].mxu1 }
 0x8ca   :  { %v1722_v19 = vpop.f32.mrb[15].mxu1  ;;  %v1732_v25 = vmul.f32 0.15811388, %v8269_v18 }
 0x8cb   :  { %v9184_v20 = vpop.eup %9183  ;;  %v1731_v21 = vmul.f32 0.15811388, %v1722_v19 }
 0x8cc   :  { %v1460_v22 = vsel %vm596_vm7, %v9184_v20, 0.0  ;;  %v1736_v45 = vsel %vm596_vm7, %v1732_v25, -inf }
 0x8cd   :  { %1461 = vadd.xlane.f32.xlu0 %v1460_v22  ;;  %v1733_v23 = vsel %vm596_vm7, %v1731_v21, -inf }
 0x8ce   :  { %1734 = vmax.xlane.f32.xlu1 %v1733_v23 }
 0x8df   :  { %9005 = vrot.lane.b32.xlu1 %v9675_v48, %s10983_s30 }
 0x8e3   :  { %2489 = vrot.lane.b32.xlu1 %v9780_v27, %s9437_s26  ;;  %8990 = vrot.lane.b32.xlu0 %v9675_v48, %s10981_s24 }
 0x8e7   :  { %2491 = vrot.lane.b32.xlu1 %v9776_v26, %s9437_s26  ;;  %2127 = vrot.lane.b32.xlu0 %v9776_v26, %s9433_s6 }
 0x906   :  { %v8288_v47 = vpop.f32.mrb[16].mxu1  ;;  %1737 = vmax.xlane.f32.xlu0 %v1736_v45 }
 0x907   :  { %v2005_v61 = vpop.f32.mrb[17].mxu1  ;;  %v2015_v12 = vmul.f32 0.15811388, %v8288_v47 }
 0x908   :  { %v2014_v29 = vmul.f32 0.15811388, %v2005_v61 }
 0x909   :  { %v2019_v13 = vsel %vm596_vm7, %v2015_v12, -inf }
 0x90a   :  { %v2016_v30 = vsel %vm596_vm7, %v2014_v29, -inf }
 0x90b   :  { %2017 = vmax.xlane.f32.xlu1 %v2016_v30 }
 0x95a   :  { %v1462_v62 = vpop.xlane.xlu0 %1461 }
 0x95b   :  { %v1735_v31 = vpop.xlane.xlu1 %1734  ;;  %9185 = vrcp.f32 %v1462_v62 }
 0x95c   :  { %v1739_v48 = vsub.f32 %v1731_v21, %v1735_v31 }
 0x95e   :  { %v1741_v32 = vmul.f32 1.442695, %v1739_v48  ;;  %v8991_v33 = vpop.permute.xlu0 %8990 }
 0x95f   :  { %v8993_v34 = vunpack.i.h.bf16 %v8991_v33  ;;  %v8992_v36 = vunpack.i.l.bf16 %v8991_v33  ;;  %v9006_v37 = vpop.permute.xlu1 %9005 }
 0x960   :  { %9187 = vpow2.f32 %v1741_v32  ;;  %v9008_v57 = vunpack.i.h.bf16 %v9006_v37  ;;  %v9007_v58 = vunpack.i.l.bf16 %v9006_v37 }
 0x961   :  { %9189 = vrcp.f32 %v1465_v43  ;;  %v8644_v38 = vpack.c.bf16 %v8993_v34, %v8992_v36  ;;  %v9884_v36 = vld [vmem:[%s10960_s10 + $0x20] sm:$0xff] }
 0x962   :  { %v2128_v40 = vpop.permute.xlu0 %2127  ;;  %v8654_v60 = vpack.c.bf16 %v9008_v57, %v9007_v58 }
 0x963   :  { %v2490_v41 = vpop.permute.xlu1 %2489  ;;  %8645 = vmatprep.subr.bf16.mxu0 %v8644_v38  ;;  %8301 = vmatmul.mubr.msk.f32.vlgmr.msra.gmra.mrb[18].mxu1 %vm510_vm5, %v2128_v40 }
 0x964   :  { %8324 = vmatprep.mubr.msk.f32.mxu1 %vm510_vm5, %v2490_v41 }
 0x965   :  { %v9186_v44 = vpop.eup %9185 }
 0x966   :  { %v1468_v53 = vmul.f32 %v9186_v44, %v9184_v20 }
 0x967   :  { %v2492_v1 = vpop.permute.xlu1 %2491 }
 0x969   :  { %v8238_v46 = vpop.f32.mrb[12].mxu0 }
 0x96a   :  { %v9188_v49 = vpop.eup %9187  ;;  %v1263_v50 = vpop.f32.mrb[13].mxu0 }
 0x96b   :  { %v9190_v51 = vpop.eup %9189  ;;  %8241 = vmatprep.mubr.msk.f32.mxu0 %vm510_vm5, %v1263_v50  ;;  %v1745_v52 = vsel %vm596_vm7, %v9188_v49, 0.0 }
 0x96c   :  { %1746 = vadd.xlane.f32.xlu0 %v1745_v52  ;;  %8242 = vmatmul.mubr.msk.f32.vlgmr.msra.gmra.mrb[10].mxu0 %vm510_vm5, %v8238_v46  ;;  %v1469_v59 = vmul.f32 %v9190_v51, %v9811_v0 }
 0x96d   :  { %8647 = vmatpush3.bf16.msra.mxu0 %v8644_v38  ;;  %8255 = vmatprep.mubr.msk.f32.mxu0 %vm596_vm7, %v1468_v53 }
 0x96e   :  { %8258 = vmatprep.subr.mxu0 %v9850_v55 }
 0x970   :  { %8256 = vmatmul.mubr.msk.f32.vlgmr.msra.gmra.mrb[14].mxu0 %vm596_vm7, %v1469_v59 }
 0x971   :  { %8259 = vmatpush3.msra.mxu0 %v9850_v55 }
 0x972   :  { %8655 = vmatprep.subr.bf16.mxu0 %v8654_v60 }
 0x993   :  { %v1738_v63 = vpop.xlane.xlu0 %1737 }
 0x994   :  { %v1740_v2 = vsub.f32 %v1732_v25, %v1738_v63 }
 0x996   :  { %v1743_v3 = vmul.f32 1.442695, %v1740_v2 }
 0x998   :  { %9191 = vpow2.f32 %v1743_v3  ;;  %v2018_v4 = vpop.xlane.xlu1 %2017 }
 0x999   :  { %v2022_v5 = vsub.f32 %v2014_v29, %v2018_v4 }
 0x99b   :  { %v2024_v6 = vmul.f32 1.442695, %v2022_v5 }
 0x99d   :  { %9193 = vpow2.f32 %v2024_v6 }
 0x9a2   :  { %v9192_v7 = vpop.eup %9191 }
 0x9a3   :  { %v1748_v8 = vsel %vm596_vm7, %v9192_v7, 0.0 }
 0x9a4   :  { %1749 = vadd.xlane.f32.xlu0 %v1748_v8 }
 0x9a7   :  { %v9859_v0 = vpop.eup %9193 }
 0x9a8   :  { %v2028_v9 = vsel %vm596_vm7, %v9859_v0, 0.0 }
 0x9a9   :  { %2029 = vadd.xlane.f32.xlu1 %v2028_v9 }
 0x9ba   :  { %9010 = vrot.lane.b32.xlu0 %v9784_v28, %s9436_s5 }
 0x9d9   :  { %2020 = vmax.xlane.f32.xlu0 %v2019_v13 }
 0x9f9   :  { %v1747_v14 = vpop.xlane.xlu0 %1746 }
 0x9fa   :  { %9195 = vrcp.f32 %v1747_v14 }
 0xa04   :  { %v9196_v47 = vpop.eup %9195 }
 0xa05   :  { %v1753_v43 = vmul.f32 %v9196_v47, %v9188_v49 }
 0xa31   :  { %v1750_v15 = vpop.xlane.xlu0 %1749 }
 0xa32   :  { %9197 = vrcp.f32 %v1750_v15 }
 0xa35   :  { %v9011_v16 = vpop.permute.xlu0 %9010 }
 0xa36   :  { %v9013_v17 = vunpack.i.h.bf16 %v9011_v16  ;;  %v9012_v18 = vunpack.i.l.bf16 %v9011_v16  ;;  %v8302_v19 = vpop.f32.mrb[18].mxu1  ;;  %v2030_v53 = vpop.xlane.xlu1 %2029 }
 0xa37   :  { %v2207_v20 = vpop.f32.mrb[19].mxu1  ;;  %v2217_v23 = vmul.f32 0.15811388, %v8302_v19 }
 0xa38   :  { %v8678_v21 = vpack.c.bf16 %v9013_v17, %v9012_v18  ;;  %v2216_v22 = vmul.f32 0.15811388, %v2207_v20 }
 0xa39   :  { %v2221_v45 = vsel %vm596_vm7, %v2217_v23, -inf }
 0xa3a   :  { %8680 = vmatprep.subr.msk.bf16.mxu1 %vm9687_vm6, %v8678_v21  ;;  %v2218_v25 = vsel %vm596_vm7, %v2216_v22, -inf }
 0xa3b   :  { %2219 = vmax.xlane.f32.xlu0 %v2218_v25  ;;  %8683 = vmatpush3.bf16.xpose.msk.msra.mxu1 %vm9687_vm6, %v8678_v21 }
 0xa3c   :  { %v9198_v30 = vpop.eup %9197 }
 0xa3d   :  { %v1754_v62 = vmul.f32 %v9198_v30, %v9192_v7 }
 0xa3f   :  { %2222 = vmax.xlane.f32.xlu0 %v2221_v45 }
 0xa42   :  { %8325 = vmatmul.mubr.msk.f32.vlgmr.msra.gmra.mrb[20].mxu1 %vm510_vm5, %v2492_v1 }
 0xa43   :  { %v8257_v61 = vpop.f32.mrb[14].mxu0 }
 0xa44   :  { %v1548_v29 = vpop.f32.mrb[15].mxu0 }
 0xa45   :  { %8260 = vmatprep.mubr.msk.f32.mxu0 %vm510_vm5, %v1548_v29 }
 0xa46   :  { %8261 = vmatmul.mubr.msk.f32.vlgmr.msra.gmra.mrb[10].mxu0 %vm510_vm5, %v8257_v61 }
 0xa47   :  { %8657 = vmatpush3.bf16.msra.mxu0 %v8654_v60  ;;  %8274 = vmatprep.mubr.msk.f32.mxu0 %vm596_vm7, %v1753_v43 }
 0xa48   :  { %8277 = vmatprep.subr.mxu0 %v9884_v36 }
 0xa4a   :  { %8275 = vmatmul.mubr.msk.f32.vlgmr.msra.gmra.mrb[16].mxu0 %vm596_vm7, %v1754_v62 }
 0xa4b   :  { %8278 = vmatpush3.msra.mxu0 %v9884_v36 }
 0xa66   :  { %v2021_v31 = vpop.xlane.xlu0 %2020 }
 0xa67   :  { %v2023_v48 = vsub.f32 %v2015_v12, %v2021_v31 }
 0xa69   :  { %v2026_v32 = vmul.f32 1.442695, %v2023_v48 }
 0xa6b   :  { %9199 = vpow2.f32 %v2026_v32 }
 0xa75   :  { %v9877_v33 = vpop.eup %9199 }
 0xa76   :  { %v2031_v34 = vsel %vm596_vm7, %v9877_v33, 0.0 }
 0xa77   :  { %2032 = vadd.xlane.f32.xlu0 %v2031_v34 }
 0xac8   :  { %v2220_v37 = vpop.xlane.xlu0 %2219 }
 0xac9   :  { %v2224_v38 = vsub.f32 %v2216_v22, %v2220_v37 }
 0xacb   :  { %v2226_v40 = vmul.f32 1.442695, %v2224_v38 }
 0xacc   :  { %v2223_v41 = vpop.xlane.xlu0 %2222 }
 0xacd   :  { %9201 = vpow2.f32 %v2226_v40  ;;  %v2225_v44 = vsub.f32 %v2217_v23, %v2223_v41 }
 0xacf   :  { %v2228_v46 = vmul.f32 1.442695, %v2225_v44 }
 0xad1   :  { %9203 = vpow2.f32 %v2228_v46 }
 0xad2   :  { %9205 = vrcp.f32 %v2030_v53 }
 0xad7   :  { %v9202_v49 = vpop.eup %9201 }
 0xad8   :  { %v2230_v50 = vsel %vm596_vm7, %v9202_v49, 0.0 }
 0xad9   :  { %2231 = vadd.xlane.f32.xlu1 %v2230_v50 }
 0xadb   :  { %v9204_v51 = vpop.eup %9203 }
 0xadc   :  { %v2233_v52 = vsel %vm596_vm7, %v9204_v51, 0.0  ;;  %v9206_v2 = vpop.eup %9205 }
 0xadd   :  { %2234 = vadd.xlane.f32.xlu0 %v2233_v52  ;;  %v2036_v5 = vmul.f32 %v9206_v2, %v9859_v0 }
 0xaea   :  { %9015 = vrot.lane.b32.xlu1 %v9784_v28, %s9435_s25 }
 0xaee   :  { %9025 = vrot.lane.b32.xlu1 %v9784_v28, %s9439_s27 }
 0xaf2   :  { %2774 = vrot.lane.b32.xlu1 %v9780_v27, %s10993_s2 }
 0xaf3   :  { %9020 = vrot.lane.b32.xlu0 %v9784_v28, %s10987_s0  ;;  %s11016_s0 = smov 40  }
 0xaf6   :  { %2776 = vrot.lane.b32.xlu1 %v9776_v26, %s10993_s2  ;;  %s11011_s2 = smov 88  }
 0xb04   :  { %v2033_v6 = vpop.xlane.xlu0 %2032 }
 0xb05   :  { %9207 = vrcp.f32 %v2033_v6 }
 0xb0f   :  { %v9208_v14 = vpop.eup %9207 }
 0xb10   :  { %v2037_v21 = vmul.f32 %v9208_v14, %v9877_v33 }
 0xb15   :  { %v8326_v57 = vpop.f32.mrb[20].mxu1 }
 0xb16   :  { %v2581_v58 = vmul.f32 0.15811388, %v8326_v57  ;;  %v2571_v59 = vpop.f32.mrb[21].mxu1 }
 0xb17   :  { %v2580_v60 = vmul.f32 0.15811388, %v2571_v59 }
 0xb18   :  { %v2585_v63 = vsel %vm596_vm7, %v2581_v58, -inf }
 0xb19   :  { %v2582_v1 = vsel %vm596_vm7, %v2580_v60, -inf }
 0xb1a   :  { %2586 = vmax.xlane.f32.xlu1 %v2585_v63  ;;  %2583 = vmax.xlane.f32.xlu0 %v2582_v1 }
 0xb1d   :  { %v8276_v3 = vpop.f32.mrb[16].mxu0 }
 0xb1e   :  { %v1833_v4 = vpop.f32.mrb[17].mxu0 }
 0xb1f   :  { %8279 = vmatprep.mubr.msk.f32.mxu0 %vm510_vm5, %v1833_v4 }
 0xb20   :  { %8280 = vmatmul.mubr.msk.f32.vlgmr.msra.gmra.mrb[10].mxu0 %vm510_vm5, %v8276_v3 }
 0xb21   :  { %8293 = vmatprep.mubr.msk.f32.mxu0 %vm596_vm7, %v2036_v5 }
 0xb2b   :  { %9035 = vrot.lane.b32.xlu1 %v9784_v28, %s10991_s23 }
 0xb2f   :  { %3059 = vrot.lane.b32.xlu1 %v9780_v27, %s10989_s3 }
 0xb33   :  { %3061 = vrot.lane.b32.xlu1 %v9776_v26, %s10989_s3 }
 0xb66   :  { %v2232_v7 = vpop.xlane.xlu1 %2231 }
 0xb67   :  { %9209 = vrcp.f32 %v2232_v7 }
 0xb6a   :  { %v9016_v8 = vpop.permute.xlu1 %9015  ;;  %v2235_v9 = vpop.xlane.xlu0 %2234 }
 0xb6b   :  { %v9018_v0 = vunpack.i.h.bf16 %v9016_v8  ;;  %v9017_v12 = vunpack.i.l.bf16 %v9016_v8  ;;  %9211 = vrcp.f32 %v2235_v9 }
 0xb6d   :  { %v8664_v13 = vpack.c.bf16 %v9018_v0, %v9017_v12 }
 0xb6e   :  { %v9026_v15 = vpop.permute.xlu1 %9025  ;;  %v9021_v16 = vpop.permute.xlu0 %9020 }
 0xb6f   :  { %v9028_v17 = vunpack.i.h.bf16 %v9026_v15  ;;  %v9027_v18 = vunpack.i.l.bf16 %v9026_v15  ;;  %v9023_v19 = vunpack.i.h.bf16 %v9021_v16  ;;  %v9022_v27 = vunpack.i.l.bf16 %v9021_v16  ;;  %8665 = vmatprep.subr.bf16.mxu0 %v8664_v13 }
 0xb70   :  { %8667 = vmatpush3.bf16.msra.mxu0 %v8664_v13 }
 0xb71   :  { %v9210_v26 = vpop.eup %9209  ;;  %v8688_v20 = vpack.c.bf16 %v9028_v17, %v9027_v18  ;;  %v8674_v22 = vpack.c.bf16 %v9023_v19, %v9022_v27 }
 0xb72   :  { %v2775_v23 = vpop.permute.xlu1 %2774  ;;  %v2238_v25 = vmul.f32 %v9210_v26, %v9202_v49 }
 0xb73   :  { %8294 = vmatmul.mubr.msk.f32.vlgmr.msra.gmra.mrb[18].mxu0 %vm596_vm7, %v2037_v21  ;;  %8675 = vmatprep.subr.bf16.mxu0 %v8674_v22 }
 0xb74   :  { %8690 = vmatprep.subr.msk.bf16.mxu1 %vm9687_vm6, %v8688_v20  ;;  %8343 = vmatprep.mubr.msk.f32.mxu1 %vm510_vm5, %v2775_v23 }
 0xb75   :  { %v9212_v45 = vpop.eup %9211  ;;  %8677 = vmatpush3.bf16.msra.mxu0 %v8674_v22  ;;  %8307 = vmatprep.mubr.msk.f32.mxu0 %vm596_vm7, %v2238_v25 }
 0xb76   :  { %8693 = vmatpush3.bf16.xpose.msk.msra.mxu1 %vm9687_vm6, %v8688_v20  ;;  %v2239_v47 = vmul.f32 %v9212_v45, %v9204_v51  ;;  %8310 = vmatprep.subr.mxu0 %v9750_v10  ;;  %v2777_v61 = vpop.permute.xlu1 %2776 }
 0xb78   :  { %8308 = vmatmul.mubr.msk.f32.vlgmr.msra.gmra.mrb[20].mxu0 %vm596_vm7, %v2239_v47 }
 0xb79   :  { %8311 = vmatpush3.msra.mxu0 %v9750_v10 }
 0xb7a   :  { %8315 = vmatprep.subr.mxu0 %v9757_v11 }
 0xb7d   :  { %8344 = vmatmul.mubr.msk.f32.vlgmr.msra.gmra.mrb[22].mxu1 %vm510_vm5, %v2777_v61 }
 0xba7   :  { %v2587_v29 = vpop.xlane.xlu1 %2586  ;;  %v2584_v30 = vpop.xlane.xlu0 %2583 }
 0xba8   :  { %v2589_v43 = vsub.f32 %v2581_v58, %v2587_v29  ;;  %v2588_v62 = vsub.f32 %v2580_v60, %v2584_v30 }
 0xbaa   :  { %v2592_v31 = vmul.f32 1.442695, %v2589_v43  ;;  %v2590_v48 = vmul.f32 1.442695, %v2588_v62  ;;  %v9958_v62 = vld [vmem:[%s10961_s11] ss:$0 sm:$0xff] }
 0xbab   :  { %v9036_v32 = vpop.permute.xlu1 %9035 }
 0xbac   :  { %9213 = vpow2.f32 %v2592_v31  ;;  %v9038_v33 = vunpack.i.h.bf16 %v9036_v32  ;;  %v9037_v34 = vunpack.i.l.bf16 %v9036_v32 }
 0xbad   :  { %9215 = vpow2.f32 %v2590_v48 }
 0xbae   :  { %v8698_v37 = vpack.c.bf16 %v9038_v33, %v9037_v34 }
 0xbaf   :  { %v3060_v38 = vpop.permute.xlu1 %3059 }
 0xbb0   :  { %8700 = vmatprep.subr.msk.bf16.mxu1 %vm9687_vm6, %v8698_v37  ;;  %8362 = vmatprep.mubr.msk.f32.mxu1 %vm510_vm5, %v3060_v38 }
 0xbb1   :  { %8703 = vmatpush3.bf16.xpose.msk.msra.mxu1 %vm9687_vm6, %v8698_v37 }
 0xbb3   :  { %v3062_v40 = vpop.permute.xlu1 %3061 }
 0xbb6   :  { %v9214_v10 = vpop.eup %9213 }
 0xbb7   :  { %v2597_v41 = vsel %vm596_vm7, %v9214_v10, 0.0  ;;  %v9216_v44 = vpop.eup %9215 }
 0xbb8   :  { %8363 = vmatmul.mubr.msk.f32.vlgmr.msra.gmra.mrb[24].mxu1 %vm510_vm5, %v3062_v40  ;;  %2598 = vadd.xlane.f32.xlu0 %v2597_v41  ;;  %v2594_v46 = vsel %vm596_vm7, %v9216_v44, 0.0 }
 0xbbc   :  { %2595 = vadd.xlane.f32.xlu0 %v2594_v46 }
 0xbd2   :  { %9030 = vrot.lane.b32.xlu0 %v9784_v28, %s10985_s29  ;;  %s11017_s29 = smov 32  }
 0xbf3   :  { %v9935_v49 = vpop.f32.mrb[10].mxu0 }
 0xbf4   :  { %v1914_v50 = vpop.f32.mrb[11].mxu0  ;;  %v3345_v41 = vadd.f32 %v9935_v49, %v9613_v39 }
 0xbf5   :  { %v3344_v30 = vadd.f32 %v1914_v50, %v9611_v35 }
 0xbf7   :  { %v9961_v32 = vadd.f32 %v9958_v62, %v3344_v30 }
 0xbf9   :  { %v3361_v33 = vsel %vm316_vm4, %v9961_v32, 0.0 }
 0xc45   :  { %v2599_v51 = vpop.xlane.xlu0 %2598 }
 0xc46   :  { %v8295_v52 = vpop.f32.mrb[18].mxu0 }
 0xc47   :  { %v2116_v53 = vpop.f32.mrb[19].mxu0 }
 0xc49   :  { %v2596_v57 = vpop.xlane.xlu0 %2595 }
 0xc4a   :  { %9217 = vrcp.f32 %v2596_v57 }
 0xc4b   :  { %9219 = vrcp.f32 %v2599_v51  ;;  %v8309_v58 = vpop.f32.mrb[20].mxu0 }
 0xc4c   :  { %v2318_v59 = vpop.f32.mrb[21].mxu0 }
 0xc4d   :  { %v9031_v60 = vpop.permute.xlu0 %9030  ;;  %8312 = vmatprep.mubr.msk.f32.mxu0 %vm510_vm5, %v2318_v59 }
 0xc4e   :  { %v9033_v63 = vunpack.i.h.bf16 %v9031_v60  ;;  %v9032_v1 = vunpack.i.l.bf16 %v9031_v60  ;;  %8313 = vmatmul.mubr.msk.f32.vlgmr.msra.gmra.mrb[22].mxu0 %vm510_vm5, %v8309_v58 }
 0xc4f   :  { %8317 = vmatprep.mubr.msk.f32.mxu0 %vm510_vm5, %v2116_v53  ;;  %8316 = vmatpush3.msra.mxu0 %v9757_v11 }
 0xc50   :  { %v8345_v2 = vpop.f32.mrb[22].mxu1  ;;  %v8684_v3 = vpack.c.bf16 %v9033_v63, %v9032_v1 }
 0xc51   :  { %v2866_v4 = vmul.f32 0.15811388, %v8345_v2  ;;  %v2856_v5 = vpop.f32.mrb[23].mxu1 }
 0xc52   :  { %v2865_v6 = vmul.f32 0.15811388, %v2856_v5  ;;  %8685 = vmatprep.subr.bf16.mxu0 %v8684_v3 }
 0xc53   :  { %v2870_v7 = vsel %vm596_vm7, %v2866_v4, -inf }
 0xc54   :  { %v9218_v8 = vpop.eup %9217  ;;  %2871 = vmax.xlane.f32.xlu1 %v2870_v7  ;;  %v2867_v9 = vsel %vm596_vm7, %v2865_v6, -inf }
 0xc55   :  { %v9220_v0 = vpop.eup %9219  ;;  %2868 = vmax.xlane.f32.xlu0 %v2867_v9  ;;  %v2602_v12 = vmul.f32 %v9218_v8, %v9216_v44  ;;  %v9974_v44 = vadd.f32 %v9958_v62, %v3345_v41  ;;  %v10022_v41 = vld [vmem:[%s10962_s12] ss:$0 sm:$0xff] }
 0xc56   :  { %8318 = vmatmul.mubr.msk.f32.vlgmr.msra.gmra.mrb[22].mxu0 %vm510_vm5, %v8295_v52  ;;  %v2603_v11 = vmul.f32 %v9220_v0, %v9214_v10 }
 0xc57   :  { %8687 = vmatpush3.bf16.msra.mxu0 %v8684_v3  ;;  %8331 = vmatprep.mubr.msk.f32.mxu0 %vm596_vm7, %v2602_v12  ;;  %v3364_v46 = vsel %vm316_vm4, %v9974_v44, 0.0 }
 0xc58   :  { %8334 = vmatprep.subr.mxu0 %v9829_v24 }
 0xc5a   :  { %8332 = vmatmul.mubr.msk.f32.vlgmr.msra.gmra.mrb[24].mxu0 %vm596_vm7, %v2603_v11 }
 0xc5b   :  { %8335 = vmatpush3.msra.mxu0 %v9829_v24 }
 0xc8b   :  { %v8364_v13 = vpop.f32.mrb[24].mxu1 }
 0xc8c   :  { %v3141_v14 = vpop.f32.mrb[25].mxu1  ;;  %v3151_v16 = vmul.f32 0.15811388, %v8364_v13 }
 0xc8d   :  { %v3150_v15 = vmul.f32 0.15811388, %v3141_v14 }
 0xc8e   :  { %v3155_v18 = vsel %vm596_vm7, %v3151_v16, -inf }
 0xc8f   :  { %v3152_v17 = vsel %vm596_vm7, %v3150_v15, -inf }
 0xc90   :  { %3153 = vmax.xlane.f32.xlu1 %v3152_v17 }
 0xc94   :  { %3156 = vmax.xlane.f32.xlu1 %v3155_v18 }
 0xce1   :  { %v2872_v19 = vpop.xlane.xlu1 %2871 }
 0xce2   :  { %v2874_v27 = vsub.f32 %v2866_v4, %v2872_v19  ;;  %v2869_v26 = vpop.xlane.xlu0 %2868 }
 0xce3   :  { %v2873_v20 = vsub.f32 %v2865_v6, %v2869_v26  ;;  %v3436_v26 = vld [vmem:[%s10964_s14 + $0x18] sm:$0xff] }
 0xce4   :  { %v2877_v21 = vmul.f32 1.442695, %v2874_v27  ;;  %v3434_v27 = vld [vmem:[%s10964_s14 + $0x8] sm:$0xff] }
 0xce5   :  { %v2875_v22 = vmul.f32 1.442695, %v2873_v20  ;;  %v8708_v20 = vpack.c.bf16 %v3436_v26, %v3434_v27 }
 0xce6   :  { %9221 = vpow2.f32 %v2877_v21 }
 0xce7   :  { %9223 = vpow2.f32 %v2875_v22 }
 0xcf0   :  { %v9222_v23 = vpop.eup %9221 }
 0xcf1   :  { %v2882_v24 = vsel %vm596_vm7, %v9222_v23, 0.0  ;;  %v9224_v25 = vpop.eup %9223 }
 0xcf2   :  { %2883 = vadd.xlane.f32.xlu0 %v2882_v24  ;;  %v2879_v45 = vsel %vm596_vm7, %v9224_v25, 0.0 }
 0xcf6   :  { %2880 = vadd.xlane.f32.xlu0 %v2879_v45 }
 0xd0c   :  { %9040 = vrot.lane.b32.xlu0 %v9784_v28, %s10981_s24  ;;  %s11014_s24 = smov 56  }
 0xd1d   :  { %v3154_v47 = vpop.xlane.xlu1 %3153 }
 0xd1e   :  { %v3158_v61 = vsub.f32 %v3150_v15, %v3154_v47  ;;  %v3435_v47 = vld [vmem:[%s10964_s14 + $0x10] sm:$0xff] }
 0xd20   :  { %v3160_v31 = vmul.f32 1.442695, %v3158_v61  ;;  %v3438_v61 = vld [vmem:[%s10964_s14 + $0x28] sm:$0xff] }
 0xd21   :  { %v3157_v29 = vpop.xlane.xlu1 %3156 }
 0xd22   :  { %v3159_v43 = vsub.f32 %v3151_v16, %v3157_v29  ;;  %v3440_v29 = vld [vmem:[%s10964_s14 + $0x38] sm:$0xff] }
 0xd24   :  { %v3162_v48 = vmul.f32 1.442695, %v3159_v43 }
 0xd26   :  { %9225 = vpow2.f32 %v3162_v48 }
 0xd27   :  { %9227 = vpow2.f32 %v3160_v31 }
 0xd2b   :  { %3362 = vadd.xlane.f32.xlu0 %v3361_v33  ;;  %v8712_v33 = vpack.c.bf16 %v3440_v29, %v3438_v61  ;;  %v3783_v61 = vld [vmem:[%s10966_s16 + $0x58] sm:$0xff] }
 0xd2d   :  { %v8333_v34 = vpop.f32.mrb[24].mxu0 }
 0xd2e   :  { %v2682_v37 = vpop.f32.mrb[25].mxu0 }
 0xd2f   :  { %8336 = vmatprep.mubr.msk.f32.mxu0 %vm510_vm5, %v2682_v37  ;;  %v3439_v37 = vld [vmem:[%s10964_s14 + $0x30] sm:$0xff] }
 0xd30   :  { %v9226_v35 = vpop.eup %9225  ;;  %8337 = vmatmul.mubr.msk.f32.vlgmr.msra.gmra.mrb[22].mxu0 %vm510_vm5, %v8333_v34  ;;  %v3437_v34 = vld [vmem:[%s10964_s14 + $0x20] sm:$0xff] }
 0xd31   :  { %v3167_v38 = vsel %vm596_vm7, %v9226_v35, 0.0  ;;  %v9228_v10 = vpop.eup %9227 }
 0xd32   :  { %3168 = vadd.xlane.f32.xlu1 %v3167_v38  ;;  %v3164_v40 = vsel %vm596_vm7, %v9228_v10, 0.0 }
 0xd36   :  { %3165 = vadd.xlane.f32.xlu1 %v3164_v40  ;;  %v9445_v40 = vmov 0.0  }
 0xd47   :  { %9045 = vrot.lane.b32.xlu1 %v9784_v28, %s10983_s30  ;;  %s11015_s30 = smov 96  }
 0xd6b   :  { %3365 = vadd.xlane.f32.xlu1 %v3364_v46  ;;  %v3442_v46 = vld [vmem:[%s10964_s14 + $0x48] sm:$0xff] }
 0xd7f   :  { %v2884_v50 = vpop.xlane.xlu0 %2883 }
 0xd80   :  { %9229 = vrcp.f32 %v2884_v50 }
 0xd83   :  { %v2881_v51 = vpop.xlane.xlu0 %2880 }
 0xd84   :  { %9231 = vrcp.f32 %v2881_v51 }
 0xd87   :  { %v9041_v52 = vpop.permute.xlu0 %9040 }
 0xd88   :  { %v9043_v53 = vunpack.i.h.bf16 %v9041_v52  ;;  %v9042_v57 = vunpack.i.l.bf16 %v9041_v52  ;;  %v10031_v52 = vld [vmem:[%s10963_s13] ss:$0 sm:$0xff] }
 0xd8a   :  { %v8694_v58 = vpack.c.bf16 %v9043_v53, %v9042_v57  ;;  %v9230_v28 = vpop.eup %9229  ;;  %v3441_v53 = vld [vmem:[%s10964_s14 + $0x40] sm:$0xff] }
 0xd8b   :  { %v2888_v49 = vmul.f32 %v9230_v28, %v9222_v23 }
 0xd8c   :  { %8695 = vmatprep.subr.bf16.mxu0 %v8694_v58 }
 0xd8d   :  { %8697 = vmatpush3.bf16.msra.mxu0 %v8694_v58 }
 0xd8e   :  { %v9232_v59 = vpop.eup %9231  ;;  %8353 = vmatprep.subr.mxu0 %v9850_v55 }
 0xd8f   :  { %v2887_v39 = vmul.f32 %v9232_v59, %v9224_v25 }
 0xd91   :  { %8350 = vmatprep.mubr.msk.f32.mxu0 %vm596_vm7, %v2887_v39 }
 0xd92   :  { %8351 = vmatmul.mubr.msk.f32.vlgmr.msra.gmra.mrb[26].mxu0 %vm596_vm7, %v2888_v49 }
 0xd93   :  { %8354 = vmatpush3.msra.mxu0 %v9850_v55 }
 0xdb8   :  { %v3363_v60 = vpop.xlane.xlu0 %3362 }
 0xdb9   :  { %v3373_v63 = vmul.f32 0.025, %v3363_v60 }
 0xdbb   :  { %v3377_v1 = vsub.f32 %v9961_v32, %v3373_v63 }
 0xdbd   :  { %v3381_v2 = vmul.f32 %v3377_v1, %v3377_v1 }
 0xdbf   :  { %v3385_v3 = vsel %vm316_vm4, %v3381_v2, 0.0  ;;  %v3169_v4 = vpop.xlane.xlu1 %3168 }
 0xdc0   :  { %3386 = vadd.xlane.f32.xlu0 %v3385_v3 }
 0xdc3   :  { %v3166_v5 = vpop.xlane.xlu1 %3165 }
 0xdc4   :  { %9233 = vrcp.f32 %v3166_v5 }
 0xdc5   :  { %9235 = vrcp.f32 %v3169_v4 }
 0xdc7   :  { %v9046_v6 = vpop.permute.xlu1 %9045 }
 0xdc8   :  { %v9048_v7 = vunpack.i.h.bf16 %v9046_v6  ;;  %v9047_v8 = vunpack.i.l.bf16 %v9046_v6  ;;  %v3773_v6 = vld [vmem:[%s10966_s16 + $0x8] sm:$0xff] }
 0xdca   :  { %v8704_v9 = vpack.c.bf16 %v9048_v7, %v9047_v8  ;;  %v3774_v7 = vld [vmem:[%s10966_s16 + $0x10] sm:$0xff]  ;;  %v9446_v8 = vmov 0.0|0.0  }
 0xdcc   :  { %8705 = vmatprep.subr.bf16.mxu0 %v8704_v9 }
 0xdce   :  { %v9234_v14 = vpop.eup %9233 }
 0xdcf   :  { %v9236_v17 = vpop.eup %9235  ;;  %v3172_v18 = vmul.f32 %v9234_v14, %v9228_v10  ;;  %v8714_v10 = vpack.c.bf16 %v3439_v37, %v3437_v34  ;;  %v3788_v37 = vld [vmem:[%s10966_s16 + $0x80] sm:$0xff] }
 0xdd0   :  { %v3173_v19 = vmul.f32 %v9236_v17, %v9226_v35 }
 0xdf8   :  { %v3366_v0 = vpop.xlane.xlu1 %3365 }
 0xdf9   :  { %v3374_v12 = vmul.f32 0.025, %v3366_v0  ;;  %v3775_v0 = vld [vmem:[%s10966_s16 + $0x18] sm:$0xff] }
 0xdfb   :  { %v3378_v11 = vsub.f32 %v9974_v44, %v3374_v12  ;;  %v8720_v12 = vpack.c.bf16 %v3775_v0, %v3774_v7 }
 0xdfd   :  { %v3382_v55 = vmul.f32 %v3378_v11, %v3378_v11 }
 0xdff   :  { %v3388_v13 = vsel %vm316_vm4, %v3382_v55, 0.0  ;;  %v3777_v55 = vld [vmem:[%s10966_s16 + $0x28] sm:$0xff] }
 0xe00   :  { %3389 = vadd.xlane.f32.xlu0 %v3388_v13 }
 0xe4d   :  { %v3387_v21 = vpop.xlane.xlu0 %3386 }
 0xe4e   :  { %v3397_v22 = vmul.f32 0.025, %v3387_v21 }
 0xe50   :  { %v3401_v24 = vadd.f32 1e-05, %v3397_v22  ;;  %v3778_v22 = vld [vmem:[%s10966_s16 + $0x30] sm:$0xff] }
 0xe52   :  { %9237 = vrsqrt.f32 %v3401_v24 }
 0xe5c   :  { %v9238_v30 = vpop.eup %9237 }
 0xe5d   :  { %v3409_v35 = vmul.f32 %v9238_v30, %v3377_v1  ;;  %v3784_v30 = vld [vmem:[%s10966_s16 + $0x60] sm:$0xff] }
 0xe5f   :  { %v3419_v50 = vmul.f32 %v10022_v41, %v3409_v35  ;;  %v3789_v35 = vld [vmem:[%s10966_s16 + $0x88] sm:$0xff] }
 0xe61   :  { %v3429_v57 = vadd.f32 %v10031_v52, %v3419_v50 }
 0xe65   :  { %v8352_v15 = vpop.f32.mrb[26].mxu0 }
 0xe66   :  { %v2967_v16 = vpop.f32.mrb[27].mxu0 }
 0xe67   :  { %8355 = vmatprep.mubr.msk.f32.mxu0 %vm510_vm5, %v2967_v16 }
 0xe68   :  { %8356 = vmatmul.mubr.msk.f32.vlgmr.msra.gmra.mrb[22].mxu0 %vm510_vm5, %v8352_v15 }
 0xe69   :  { %8707 = vmatpush3.bf16.msra.mxu0 %v8704_v9  ;;  %8369 = vmatprep.mubr.msk.f32.mxu0 %vm596_vm7, %v3172_v18 }
 0xe6a   :  { %8372 = vmatprep.subr.mxu0 %v9884_v36 }
 0xe6c   :  { %8370 = vmatmul.mubr.msk.f32.vlgmr.msra.gmra.mrb[28].mxu0 %vm596_vm7, %v3173_v19 }
 0xe6d   :  { %8373 = vmatpush3.msra.mxu0 %v9884_v36  ;;  %v3433_v36 = vld [vmem:[%s10964_s14] sm:$0xff] }
 0xe6e   :  { %8709 = vmatprep.subr.bf16.mxu0 %v8708_v20  ;;  %v8710_v31 = vpack.c.bf16 %v3435_v47, %v3433_v36  ;;  %v3782_v47 = vld [vmem:[%s10966_s16 + $0x50] sm:$0xff] }
 0xe6f   :  { %v8732_v29 = vpack.c.bf16 %v3783_v61, %v3782_v47 }
 0xe8d   :  { %v3390_v23 = vpop.xlane.xlu0 %3389 }
 0xe8e   :  { %v3398_v25 = vmul.f32 0.025, %v3390_v23  ;;  %v3779_v23 = vld [vmem:[%s10966_s16 + $0x38] sm:$0xff] }
 0xe8f   :  { %v8726_v24 = vpack.c.bf16 %v3779_v23, %v3778_v22 }
 0xe90   :  { %v3402_v45 = vadd.f32 1e-05, %v3398_v25  ;;  %v3780_v25 = vld [vmem:[%s10966_s16 + $0x40] sm:$0xff] }
 0xe92   :  { %9239 = vrsqrt.f32 %v3402_v45  ;;  %v3781_v45 = vld [vmem:[%s10966_s16 + $0x48] sm:$0xff] }
 0xe93   :  { %v8729_v36 = vpack.c.bf16 %v3781_v45, %v3780_v25 }
 0xe9c   :  { %v9240_v38 = vpop.eup %9239 }
 0xe9d   :  { %v3410_v51 = vmul.f32 %v9240_v38, %v3378_v11  ;;  %v3776_v11 = vld [vmem:[%s10966_s16 + $0x20] sm:$0xff]  ;;  %v8741_v38 = vpack.c.bf16 %v3789_v35, %v3788_v37 }
 0xe9e   :  { %v8723_v13 = vpack.c.bf16 %v3777_v55, %v3776_v11 }
 0xe9f   :  { %v3420_v58 = vmul.f32 %v10022_v41, %v3410_v51  ;;  %v3445_v51 = vlaneseq }
 0xea1   :  { %v3430_v28 = vadd.f32 %v10031_v52, %v3420_v58  ;;  %v3443_v58 = vld [vmem:[%s10965_s15] sm:$0x3] }
 0xf3f   :  { %v8371_v43 = vpop.f32.mrb[28].mxu0 }
 0xf40   :  { %v3252_v48 = vpop.f32.mrb[29].mxu0 }
 0xf41   :  { %8374 = vmatprep.mubr.msk.f32.mxu0 %vm510_vm5, %v3252_v48  ;;  %v3786_v48 = vld [vmem:[%s10966_s16 + $0x70] sm:$0xff] }
 0xf42   :  { %8375 = vmatmul.mubr.msk.f32.vlgmr.msra.gmra.mrb[22].mxu0 %vm510_vm5, %v8371_v43  ;;  %v3785_v43 = vld [vmem:[%s10966_s16 + $0x68] sm:$0xff] }
 0xf43   :  { %8711 = vmatpush1.bf16.msra.mxu0 %v8710_v31  ;;  %3531 = vmatprep.mubr.f32.mxu0 %v9445_v40  ;;  %v8735_v31 = vpack.c.bf16 %v3785_v43, %v3784_v30 }
 0xf44   :  { %8713 = vmatprep.subr.bf16.mxu0 %v8712_v33  ;;  %v3787_v33 = vld [vmem:[%s10966_s16 + $0x78] sm:$0xff] }
 0xf45   :  { %v8738_v34 = vpack.c.bf16 %v3787_v33, %v3786_v48 }
 0xf47   :  { %8715 = vmatpush1.bf16.msra.mxu0 %v8714_v10  ;;  %v3790_v10 = vld [vmem:[%s10966_s16 + $0x90] sm:$0xff] }
 0xf48   :  { %3475 = vmatprep.subr.mxu0 %v3442_v46  ;;  %v3791_v46 = vld [vmem:[%s10966_s16 + $0x98] sm:$0xff] }
 0xf49   :  { %v8744_v50 = vpack.c.bf16 %v3791_v46, %v3790_v10 }
 0xf4b   :  { %3476 = vmatpush1.msra.mxu0 %v3441_v53  ;;  %v10145_v53 = vshrl.u32 %v3445_v51, 7 }
 0xf4c   :  { %7735 = vmatmul.mubr.msk.f32.vlgmr.msra.gmra.mrb[30].mxu0 %vm316_vm4, %v3429_v57  ;;  %8716 = vmatprep.subr.bf16.mxu0 %v9446_v8 }
 0xf4d   :  { %3537 = vmatprep.mubr.f32.mxu0 %v9445_v40  ;;  %v3451_v57 = vsub.s32 1, %v10145_v53 }
 0xf50   :  { %7736 = vmatmul.mubr.msk.f32.gmra.mrb[32].mxu0 %vm316_vm4, %v3430_v28  ;;  %v3447_v28 = vsub.s32 0, %v10145_v53 }
 0xf51   :  { %3543 = vmatprep.mubr.f32.mxu0 %v9445_v40 }
0x1015   :  { %v8376_v59 = vpop.f32.mrb[22].mxu0 }
0x1016   :  { %v3333_v39 = vpop.f32.mrb[23].mxu0  ;;  %v3347_v49 = vadd.f32 %v8376_v59, %v9626_v54  ;;  %v10154_v59 = vrot.slane %v3443_v58, %v3451_v57 }
0x1017   :  { %v3346_v60 = vadd.f32 %v3333_v39, %v9617_v42  ;;  %v10158_v39 = vrot.slane %v3443_v58, %v3447_v28 }
0x1018   :  { %v10049_v1 = vadd.f32 %v9958_v62, %v3347_v49 }
0x1019   :  { %v10046_v63 = vadd.f32 %v9958_v62, %v3346_v60  ;;  %v3772_v62 = vld [vmem:[%s10966_s16] sm:$0xff] }
0x101a   :  { %v3370_v4 = vsel %vm316_vm4, %v10049_v1, 0.0  ;;  %v8717_v9 = vpack.c.bf16 %v3773_v6, %v3772_v62 }
0x101b   :  { %v3367_v2 = vsel %vm316_vm4, %v10046_v63, 0.0 }
0x101c   :  { %3368 = vadd.xlane.f32.xlu0 %v3367_v2  ;;  %8718 = vmatpush1.bf16.msra.mxu0 %v8717_v9 }
0x101d   :  { %8719 = vmatprep.subr.bf16.mxu0 %v9446_v8 }
0x101f   :  { %v10053_v3 = vpop.f32.mrb[30].mxu0 }
0x1020   :  { %v10057_v5 = vpop.f32.mrb[31].mxu0  ;;  %3371 = vadd.xlane.f32.xlu0 %v3370_v4  ;;  %8721 = vmatpush1.bf16.msra.mxu0 %v8720_v12  ;;  %v10166_v60 = vadd.f32 %v10053_v3, %v10158_v39 }
0x1021   :  { %8722 = vmatprep.subr.bf16.mxu0 %v9446_v8  ;;  %v10162_v49 = vadd.f32 %v10057_v5, %v10154_v59 }
0x1022   :  { %v10176_v62 = vmul.f32 0.70710677, %v10166_v60 }
0x1023   :  { %v10059_v54 = vpop.f32.mrb[32].mxu0  ;;  %v10169_v2 = vmul.f32 0.70710677, %v10162_v49 }
0x1024   :  { %v10061_v42 = vpop.f32.mrb[33].mxu0  ;;  %8724 = vmatpush1.bf16.msra.mxu0 %v8723_v13  ;;  %v10180_v6 = vadd.f32 %v10059_v54, %v10158_v39  ;;  %v3588_v3 = vand.u32 2147483647, %v10176_v62  ;;  %vm3572_vm9 = vcmp.lt.f32.partialorder %v10176_v62, 0.0 }
0x1025   :  { %8725 = vmatprep.subr.bf16.mxu0 %v9446_v8  ;;  %v10173_v4 = vadd.f32 %v10061_v42, %v10154_v59  ;;  %v3589_v5 = vand.u32 2147483647, %v10169_v2  ;;  %vm3573_vm8 = vcmp.lt.f32.partialorder %v10169_v2, 0.0 }
0x1026   :  { %v10188_v9 = vmul.f32 0.70710677, %v10180_v6  ;;  %v3596_v12 = vmul.f32 0.3275911, %v3588_v3 }
0x1027   :  { %v10184_v7 = vmul.f32 0.70710677, %v10173_v4  ;;  %v3597_v0 = vmul.f32 0.3275911, %v3589_v5 }
0x1028   :  { %8727 = vmatpush1.bf16.msra.mxu0 %v8726_v24  ;;  %v3590_v11 = vand.u32 2147483647, %v10188_v9  ;;  %v3604_v54 = vadd.f32 1.0, %v3596_v12  ;;  %vm3574_vm11 = vcmp.lt.f32.partialorder %v10188_v9, 0.0 }
0x1029   :  { %8728 = vmatprep.subr.bf16.mxu0 %v9446_v8  ;;  %v3591_v42 = vand.u32 2147483647, %v10184_v7  ;;  %v3605_v55 = vadd.f32 1.0, %v3597_v0  ;;  %vm3575_vm10 = vcmp.lt.f32.partialorder %v10184_v7, 0.0 }
0x102b   :  { %v3599_v13 = vmul.f32 0.3275911, %v3591_v42  ;;  %9241 = vrcp.f32 %v3605_v55  ;;  %v3703_v10 = vsub.f32 0.0, %v3591_v42 }
0x102c   :  { %8730 = vmatpush1.bf16.msra.mxu0 %v8729_v36  ;;  %9243 = vrcp.f32 %v3604_v54 }
0x102d   :  { %8731 = vmatprep.subr.bf16.mxu0 %v9446_v8 }
0x1030   :  { %8733 = vmatpush1.bf16.msra.mxu0 %v8732_v29 }
0x1031   :  { %8734 = vmatprep.subr.bf16.mxu0 %v9446_v8 }
0x1034   :  { %8736 = vmatpush1.bf16.msra.mxu0 %v8735_v31  ;;  %v3701_v31 = vsub.f32 0.0, %v3589_v5 }
0x1035   :  { %8737 = vmatprep.subr.bf16.mxu0 %v9446_v8 }
0x1038   :  { %8739 = vmatpush1.bf16.msra.mxu0 %v8738_v34  ;;  %v3700_v34 = vsub.f32 0.0, %v3588_v3 }
0x1039   :  { %8740 = vmatprep.subr.bf16.mxu0 %v9446_v8 }
0x103a   :  { %v3708_v58 = vmul.f32 %v3700_v34, %v3588_v3 }
0x103c   :  { %8742 = vmatpush1.bf16.msra.mxu0 %v8741_v38  ;;  %v3709_v38 = vmul.f32 %v3701_v31, %v3589_v5 }
0x103d   :  { %8743 = vmatprep.subr.bf16.mxu0 %v9446_v8 }
0x103e   :  { %v3718_v55 = vmul.f32 1.442695, %v3709_v38 }
0x1040   :  { %8745 = vmatpush1.bf16.msra.mxu0 %v8744_v50  ;;  %v3702_v50 = vsub.f32 0.0, %v3590_v11 }
0x10a9   :  { %v3369_v14 = vpop.xlane.xlu0 %3368 }
0x10aa   :  { %v3375_v15 = vmul.f32 0.025, %v3369_v14  ;;  %v3598_v14 = vmul.f32 0.3275911, %v3590_v11 }
0x10ac   :  { %v10086_v16 = vsub.f32 %v10046_v63, %v3375_v15  ;;  %v3607_v15 = vadd.f32 1.0, %v3599_v13  ;;  %v3711_v13 = vmul.f32 %v3703_v10, %v3591_v42 }
0x10ad   :  { %v3372_v17 = vpop.xlane.xlu0 %3371 }
0x10ae   :  { %v3376_v18 = vmul.f32 0.025, %v3372_v17  ;;  %v3383_v19 = vmul.f32 %v10086_v16, %v10086_v16  ;;  %v3606_v17 = vadd.f32 1.0, %v3598_v14  ;;  %9245 = vrcp.f32 %v3607_v15 }
0x10af   :  { %v3710_v14 = vmul.f32 %v3702_v50, %v3590_v11 }
0x10b0   :  { %v10091_v27 = vsub.f32 %v10049_v1, %v3376_v18  ;;  %v3391_v26 = vsel %vm316_vm4, %v3383_v19, 0.0  ;;  %9247 = vrcp.f32 %v3606_v17  ;;  %v9242_v18 = vpop.eup %9241  ;;  %v3716_v17 = vmul.f32 1.442695, %v3708_v58 }
0x10b1   :  { %3392 = vadd.xlane.f32.xlu0 %v3391_v26  ;;  %v9244_v19 = vpop.eup %9243  ;;  %v3629_v26 = vmul.f32 1.0614054, %v9242_v18  ;;  %9249 = vpow2.f32 %v3718_v55  ;;  %v3720_v5 = vmul.f32 1.442695, %v3710_v14  ;;  %v9447_v55 = vmov 1.0  }
0x10b2   :  { %v3384_v20 = vmul.f32 %v10091_v27, %v10091_v27  ;;  %9251 = vpow2.f32 %v3716_v17  ;;  %v3580_v17 = vsel %vm3572_vm9, -1.0, %v9447_v55  ;;  %v3583_v62 = vsel %vm3575_vm10, -1.0, %v9447_v55 }
0x10b3   :  { %v3637_v23 = vadd.f32 -1.4531521, %v3629_v26  ;;  %vm7500_vm10 = vcmask 1040384  }
0x10b4   :  { %v3394_v21 = vsel %vm316_vm4, %v3384_v20, 0.0 }
0x10b5   :  { %3395 = vadd.xlane.f32.xlu1 %v3394_v21  ;;  %v3628_v21 = vmul.f32 1.0614054, %v9244_v19  ;;  %v3645_v36 = vmul.f32 %v9242_v18, %v3637_v23  ;;  %v3722_v23 = vmul.f32 1.442695, %v3711_v13 }
0x10b7   :  { %v3636_v25 = vadd.f32 -1.4531521, %v3628_v21  ;;  %v3653_v30 = vadd.f32 1.4214138, %v3645_v36  ;;  %9253 = vpow2.f32 %v3722_v23 }
0x10b8   :  { %v9246_v20 = vpop.eup %9245  ;;  %9255 = vpow2.f32 %v3720_v5 }
0x10b9   :  { %v3631_v24 = vmul.f32 1.0614054, %v9246_v20  ;;  %v3644_v61 = vmul.f32 %v9244_v19, %v3636_v25  ;;  %v3661_v37 = vmul.f32 %v9242_v18, %v3653_v30 }
0x10ba   :  { %v10192_v22 = vpop.eup %9247 }
0x10bb   :  { %v3630_v45 = vmul.f32 1.0614054, %v10192_v22  ;;  %v3639_v47 = vadd.f32 -1.4531521, %v3631_v24  ;;  %v3652_v48 = vadd.f32 1.4214138, %v3644_v61 }
0x10bc   :  { %v3669_v0 = vadd.f32 -0.28449672, %v3661_v37 }
0x10bd   :  { %v3638_v29 = vadd.f32 -1.4531521, %v3630_v45  ;;  %v3647_v43 = vmul.f32 %v9246_v20, %v3639_v47  ;;  %v3660_v46 = vmul.f32 %v9244_v19, %v3652_v48 }
0x10be   :  { %v3677_v26 = vmul.f32 %v9242_v18, %v3669_v0 }
0x10bf   :  { %v3646_v33 = vmul.f32 %v10192_v22, %v3638_v29  ;;  %v3655_v35 = vadd.f32 1.4214138, %v3647_v43  ;;  %v3668_v54 = vadd.f32 -0.28449672, %v3660_v46 }
0x10c0   :  { %v3685_v36 = vadd.f32 0.2548296, %v3677_v26 }
0x10c1   :  { %v3654_v51 = vadd.f32 1.4214138, %v3646_v33  ;;  %v3663_v12 = vmul.f32 %v9246_v20, %v3655_v35  ;;  %v3676_v24 = vmul.f32 %v9244_v19, %v3668_v54  ;;  %v9250_v33 = vpop.eup %9249 }
0x10c2   :  { %v3693_v30 = vmul.f32 %v9242_v18, %v3685_v36  ;;  %v9252_v10 = vpop.eup %9251 }
0x10c3   :  { %v3662_v15 = vmul.f32 %v10192_v22, %v3654_v51  ;;  %v3671_v21 = vadd.f32 -0.28449672, %v3663_v12  ;;  %v3684_v42 = vadd.f32 0.2548296, %v3676_v24  ;;  %v9254_v46 = vpop.eup %9253 }
0x10c4   :  { %v3733_v35 = vmul.f32 %v9250_v33, %v3693_v30  ;;  %v9256_v18 = vpop.eup %9255 }
0x10c5   :  { %v3670_v45 = vadd.f32 -0.28449672, %v3662_v15  ;;  %v3679_v3 = vmul.f32 %v9246_v20, %v3671_v21  ;;  %v3692_v34 = vmul.f32 %v9244_v19, %v3684_v42  ;;  %v3581_v19 = vsel %vm3573_vm8, -1.0, %v9447_v55 }
0x10c6   :  { %v3741_v58 = vsub.f32 1.0, %v3733_v35  ;;  %v3559_v42 = vmul.f32 0.5, %v10173_v4 }
0x10c7   :  { %v3678_v29 = vmul.f32 %v10192_v22, %v3670_v45  ;;  %v3687_v43 = vadd.f32 0.2548296, %v3679_v3  ;;  %v3732_v50 = vmul.f32 %v9252_v10, %v3692_v34  ;;  %v3582_v45 = vsel %vm3574_vm11, -1.0, %v9447_v55 }
0x10c8   :  { %v3749_v14 = vmul.f32 %v3741_v58, %v3581_v19  ;;  %vm7504_vm11 = vcmask 320512  }
0x10c9   :  { %v3686_v37 = vadd.f32 0.2548296, %v3678_v29  ;;  %v3695_v38 = vmul.f32 %v9246_v20, %v3687_v43  ;;  %v3740_v13 = vsub.f32 1.0, %v3732_v50  ;;  %v3558_v29 = vmul.f32 0.5, %v10180_v6 }
0x10ca   :  { %v3757_v24 = vadd.f32 1.0, %v3749_v14 }
0x10cb   :  { %v3694_v51 = vmul.f32 %v10192_v22, %v3686_v37  ;;  %v3735_v0 = vmul.f32 %v9254_v46, %v3695_v38  ;;  %v3748_v26 = vmul.f32 %v3740_v13, %v3580_v17 }
0x10cd   :  { %v3734_v54 = vmul.f32 %v9256_v18, %v3694_v51  ;;  %v3743_v15 = vsub.f32 1.0, %v3735_v0  ;;  %v3756_v9 = vadd.f32 1.0, %v3748_v26 }
0x10cf   :  { %v3742_v7 = vsub.f32 1.0, %v3734_v54 }
0x10d1   :  { %v3750_v3 = vmul.f32 %v3742_v7, %v3582_v45 }
0x113e   :  { %v3393_v25 = vpop.xlane.xlu0 %3392 }
0x113f   :  { %v3399_v47 = vmul.f32 0.025, %v3393_v25  ;;  %v3557_v25 = vmul.f32 0.5, %v10162_v49  ;;  %v3758_v49 = vadd.f32 1.0, %v3750_v3 }
0x1141   :  { %v3403_v61 = vadd.f32 1e-05, %v3399_v47  ;;  %v3765_v47 = vmul.f32 %v3757_v24, %v3557_v25 }
0x1142   :  { %v3396_v11 = vpop.xlane.xlu1 %3395 }
0x1143   :  { %9257 = vrsqrt.f32 %v3403_v61  ;;  %v3400_v31 = vmul.f32 0.025, %v3396_v11  ;;  %v3556_v61 = vmul.f32 0.5, %v10166_v60 }
0x1145   :  { %v3404_v48 = vadd.f32 1e-05, %v3400_v31 }
0x1147   :  { %9259 = vrsqrt.f32 %v3404_v48 }
0x114d   :  { %v9258_v12 = vpop.eup %9257 }
0x114e   :  { %v3411_v20 = vmul.f32 %v9258_v12, %v10086_v16  ;;  %v3751_v16 = vmul.f32 %v3743_v15, %v3583_v62 }
0x1150   :  { %v3421_v2 = vmul.f32 %v10022_v41, %v3411_v20 }
0x1151   :  { %v9260_v22 = vpop.eup %9259 }
0x1152   :  { %v3431_v21 = vadd.f32 %v10031_v52, %v3421_v2  ;;  %v3412_v23 = vmul.f32 %v9260_v22, %v10091_v27  ;;  %v3759_v27 = vadd.f32 1.0, %v3751_v16 }
0x1154   :  { %7737 = vmatmul.mubr.msk.f32.gmra.mrb[34].mxu0 %vm316_vm4, %v3431_v21  ;;  %v3422_v5 = vmul.f32 %v10022_v41, %v3412_v23  ;;  %v3764_v41 = vmul.f32 %v3756_v9, %v3556_v61  ;;  %v3767_v11 = vmul.f32 %v3759_v27, %v3559_v42 }
0x1155   :  { %3549 = vmatprep.mubr.f32.mxu0 %v9445_v40 }
0x1156   :  { %v3432_v36 = vadd.f32 %v10031_v52, %v3422_v5  ;;  %v3766_v52 = vmul.f32 %v3758_v49, %v3558_v29 }
0x1158   :  { %7738 = vmatmul.mubr.msk.f32.gmra.mrb[36].mxu0 %vm316_vm4, %v3432_v36 }
0x1159   :  { %7739 = vmatprep.mubr.msk.f32.mxu0 %vm3792_vm12, %v3765_v47 }
0x115c   :  { %3870 = vmatmul.mubr.f32.vlgmr.msra.gmra.mrb[38].mxu0 %v3764_v41 }
0x115d   :  { %7740 = vmatprep.mubr.msk.f32.mxu0 %vm3792_vm12, %v3767_v11 }
0x1160   :  { %3875 = vmatmul.mubr.f32.gmra.mrb[40].mxu0 %v3766_v52 }
0x1227   :  { %v3545_v30 = vpop.f32.mrb[34].mxu0 }
0x1228   :  { %v10223_v43 = vadd.f32 %v3545_v30, %v10158_v39  ;;  %v3547_v60 = vpop.f32.mrb[35].mxu0 }
0x1229   :  { %v10226_v31 = vadd.f32 %v3547_v60, %v10154_v59 }
0x122a   :  { %v10229_v4 = vmul.f32 0.70710677, %v10223_v43 }
0x122b   :  { %v10232_v48 = vmul.f32 0.70710677, %v10226_v31  ;;  %v3551_v6 = vpop.f32.mrb[36].mxu0 }
0x122c   :  { %v3592_v33 = vand.u32 2147483647, %v10229_v4  ;;  %v10236_v34 = vadd.f32 %v3551_v6, %v10158_v39  ;;  %v3553_v37 = vpop.f32.mrb[37].mxu0  ;;  %vm3576_vm13 = vcmp.lt.f32.partialorder %v10229_v4, 0.0 }
0x122d   :  { %v3593_v35 = vand.u32 2147483647, %v10232_v48  ;;  %v10240_v38 = vadd.f32 %v3553_v37, %v10154_v59  ;;  %v10252_v59 = vld [vmem:[%s10967_s17] ss:$0 sm:$0xff]  ;;  %vm3577_vm14 = vcmp.lt.f32.partialorder %v10232_v48, 0.0 }
0x122e   :  { %v3600_v10 = vmul.f32 0.3275911, %v3592_v33  ;;  %v10243_v50 = vmul.f32 0.70710677, %v10236_v34  ;;  %v3704_v26 = vsub.f32 0.0, %v3592_v33 }
0x122f   :  { %v3601_v46 = vmul.f32 0.3275911, %v3593_v35  ;;  %v10246_v58 = vmul.f32 0.70710677, %v10240_v38  ;;  %v3871_v0 = vpop.f32.mrb[38].mxu0  ;;  %v3705_v7 = vsub.f32 0.0, %v3593_v35 }
0x1230   :  { %v3608_v51 = vadd.f32 1.0, %v3600_v10  ;;  %v3594_v39 = vand.u32 2147483647, %v10243_v50  ;;  %v3873_v12 = vpop.f32.mrb[39].mxu0  ;;  %v3890_v54 = vadd.f32 %v3871_v0, %v9961_v32  ;;  %v3712_v24 = vmul.f32 %v3704_v26, %v3592_v33 }
0x1231   :  { %v3609_v18 = vadd.f32 1.0, %v3601_v46  ;;  %v3595_v20 = vand.u32 2147483647, %v10246_v58  ;;  %v3713_v5 = vmul.f32 %v3705_v7, %v3593_v35  ;;  %vm3578_vm15 = vcmp.lt.f32.partialorder %v10243_v50, 0.0 }
0x1232   :  { %9261 = vrcp.f32 %v3608_v51  ;;  %v3602_v19 = vmul.f32 0.3275911, %v3594_v39  ;;  %v10258_v17 = vadd.f32 %v10252_v59, %v3890_v54  ;;  %v3706_v25 = vsub.f32 0.0, %v3594_v39 }
0x1233   :  { %9263 = vrcp.f32 %v3609_v18  ;;  %v3876_v13 = vpop.f32.mrb[40].mxu0  ;;  %v3603_v22 = vmul.f32 0.3275911, %v3595_v20  ;;  %v3724_v3 = vmul.f32 1.442695, %v3712_v24  ;;  %v3707_v27 = vsub.f32 0.0, %v3595_v20 }
0x1234   :  { %v3878_v14 = vpop.f32.mrb[41].mxu0  ;;  %v3610_v15 = vadd.f32 1.0, %v3602_v19  ;;  %v3891_v2 = vadd.f32 %v3876_v13, %v9974_v44  ;;  %v3909_v23 = vsel %vm316_vm4, %v10258_v17, 0.0  ;;  %v3726_v42 = vmul.f32 1.442695, %v3713_v5 }
0x1235   :  { %v3611_v21 = vadd.f32 1.0, %v3603_v22  ;;  %3910 = vadd.xlane.f32.xlu0 %v3909_v23  ;;  %v3714_v41 = vmul.f32 %v3706_v25, %v3594_v39  ;;  %v3715_v6 = vmul.f32 %v3707_v27, %v3595_v20  ;;  %v3584_v27 = vsel %vm3576_vm13, -1.0, %v9447_v55 }
0x1236   :  { %9265 = vrcp.f32 %v3610_v15  ;;  %v10261_v62 = vadd.f32 %v10252_v59, %v3891_v2  ;;  %vm3579_vm0 = vcmp.lt.f32.partialorder %v10246_v58, 0.0  ;;  %vm7617_vm13 = vcmask 25600  }
0x1237   :  { %9267 = vrcp.f32 %v3611_v21  ;;  %v3728_v37 = vmul.f32 1.442695, %v3714_v41  ;;  %v3730_v19 = vmul.f32 1.442695, %v3715_v6  ;;  %v3561_v6 = vmul.f32 0.5, %v10226_v31 }
0x1238   :  { %v3912_v32 = vsel %vm316_vm4, %v10261_v62, 0.0  ;;  %9269 = vpow2.f32 %v3724_v3  ;;  %v3587_v50 = vsel %vm3579_vm0, -1.0, %v9447_v55 }
0x1239   :  { %3913 = vadd.xlane.f32.xlu1 %v3912_v32  ;;  %9271 = vpow2.f32 %v3726_v42 }
0x123a   :  { %9273 = vpow2.f32 %v3728_v37 }
0x123b   :  { %9275 = vpow2.f32 %v3730_v19 }
0x123c   :  { %v9262_v44 = vpop.eup %9261 }
0x123d   :  { %v9264_v16 = vpop.eup %9263  ;;  %v3632_v45 = vmul.f32 1.0614054, %v9262_v44 }
0x123e   :  { %v3633_v9 = vmul.f32 1.0614054, %v9264_v16 }
0x123f   :  { %v3640_v36 = vadd.f32 -1.4531521, %v3632_v45 }
0x1240   :  { %v3641_v47 = vadd.f32 -1.4531521, %v3633_v9  ;;  %v9266_v61 = vpop.eup %9265 }
0x1241   :  { %v3648_v49 = vmul.f32 %v9262_v44, %v3640_v36  ;;  %v3634_v29 = vmul.f32 1.0614054, %v9266_v61  ;;  %v9268_v30 = vpop.eup %9267 }
0x1242   :  { %v3649_v11 = vmul.f32 %v9264_v16, %v3641_v47  ;;  %v3635_v35 = vmul.f32 1.0614054, %v9268_v30  ;;  %v9270_v7 = vpop.eup %9269 }
0x1243   :  { %v3656_v52 = vadd.f32 1.4214138, %v3648_v49  ;;  %v3642_v33 = vadd.f32 -1.4531521, %v3634_v29  ;;  %v9272_v5 = vpop.eup %9271 }
0x1244   :  { %v3657_v60 = vadd.f32 1.4214138, %v3649_v11  ;;  %v3643_v0 = vadd.f32 -1.4531521, %v3635_v35  ;;  %v9274_v49 = vpop.eup %9273  ;;  %v3560_v35 = vmul.f32 0.5, %v10223_v43  ;;  %v3562_v43 = vmul.f32 0.5, %v10236_v34 }
0x1245   :  { %v3664_v10 = vmul.f32 %v9262_v44, %v3656_v52  ;;  %v3650_v51 = vmul.f32 %v9266_v61, %v3642_v33  ;;  %v9276_v48 = vpop.eup %9275 }
0x1246   :  { %v3665_v46 = vmul.f32 %v9264_v16, %v3657_v60  ;;  %v3651_v13 = vmul.f32 %v9268_v30, %v3643_v0 }
0x1247   :  { %v3672_v18 = vadd.f32 -0.28449672, %v3664_v10  ;;  %v3658_v39 = vadd.f32 1.4214138, %v3650_v51 }
0x1248   :  { %v3673_v12 = vadd.f32 -0.28449672, %v3665_v46  ;;  %v3659_v2 = vadd.f32 1.4214138, %v3651_v13 }
0x1249   :  { %v3680_v54 = vmul.f32 %v9262_v44, %v3672_v18  ;;  %v3666_v15 = vmul.f32 %v9266_v61, %v3658_v39 }
0x124a   :  { %v3681_v14 = vmul.f32 %v9264_v16, %v3673_v12  ;;  %v3667_v21 = vmul.f32 %v9268_v30, %v3659_v2  ;;  %v3563_v12 = vmul.f32 0.5, %v10240_v38 }
0x124b   :  { %v3688_v22 = vadd.f32 0.2548296, %v3680_v54  ;;  %v3674_v26 = vadd.f32 -0.28449672, %v3666_v15 }
0x124c   :  { %v3689_v20 = vadd.f32 0.2548296, %v3681_v14  ;;  %v3675_v25 = vadd.f32 -0.28449672, %v3667_v21  ;;  %v7748_v21 = vld [vmem:[%s10958_s8 + $0x28] sm:$0xff] }
0x124d   :  { %v3696_v23 = vmul.f32 %v9262_v44, %v3688_v22  ;;  %v3682_v24 = vmul.f32 %v9266_v61, %v3674_v26  ;;  %v3585_v44 = vsel %vm3577_vm14, -1.0, %v9447_v55 }
0x124e   :  { %v3697_v32 = vmul.f32 %v9264_v16, %v3689_v20  ;;  %v3683_v3 = vmul.f32 %v9268_v30, %v3675_v25  ;;  %v7752_v25 = vld [vmem:[%s10958_s8 + $0x48] sm:$0xff] }
0x124f   :  { %v3736_v45 = vmul.f32 %v9270_v7, %v3696_v23  ;;  %v3690_v36 = vadd.f32 0.2548296, %v3682_v24  ;;  %v7749_v23 = vld [vmem:[%s10958_s8 + $0x30] sm:$0xff]  ;;  %v7751_v24 = vld [vmem:[%s10958_s8 + $0x40] sm:$0xff] }
0x1250   :  { %v3737_v9 = vmul.f32 %v9272_v5, %v3697_v32  ;;  %v3691_v16 = vadd.f32 0.2548296, %v3683_v3  ;;  %v8746_v7 = vpack.c.bf16 %v7749_v23, %v7748_v21  ;;  %v7750_v32 = vld [vmem:[%s10958_s8 + $0x38] sm:$0xff] }
0x1251   :  { %v3744_v47 = vsub.f32 1.0, %v3736_v45  ;;  %v3698_v41 = vmul.f32 %v9266_v61, %v3690_v36  ;;  %v3586_v61 = vsel %vm3578_vm15, -1.0, %v9447_v55  ;;  %v8750_v5 = vpack.c.bf16 %v7751_v24, %v7750_v32 }
0x1252   :  { %v3745_v42 = vsub.f32 1.0, %v3737_v9  ;;  %v3699_v52 = vmul.f32 %v9268_v30, %v3691_v16  ;;  %8747 = vmatprep.subr.bf16.mxu1 %v8746_v7 }
0x1253   :  { %v3752_v11 = vmul.f32 %v3744_v47, %v3584_v27  ;;  %v3738_v4 = vmul.f32 %v9274_v49, %v3698_v41  ;;  %8749 = vmatpush3.bf16.msra.mxu1 %v8746_v7 }
0x1254   :  { %v3753_v29 = vmul.f32 %v3745_v42, %v3585_v44  ;;  %v3739_v10 = vmul.f32 %v9276_v48, %v3699_v52  ;;  %8751 = vmatprep.subr.bf16.mxu1 %v8750_v5 }
0x1255   :  { %v3760_v60 = vadd.f32 1.0, %v3752_v11  ;;  %v3746_v37 = vsub.f32 1.0, %v3738_v4 }
0x1256   :  { %v3761_v33 = vadd.f32 1.0, %v3753_v29  ;;  %v3747_v0 = vsub.f32 1.0, %v3739_v10 }
0x1257   :  { %v3754_v51 = vmul.f32 %v3746_v37, %v3586_v61  ;;  %v3768_v18 = vmul.f32 %v3760_v60, %v3560_v35  ;;  %8753 = vmatpush3.bf16.msra.mxu1 %v8750_v5 }
0x1258   :  { %v3769_v46 = vmul.f32 %v3761_v33, %v3561_v6  ;;  %v3755_v30 = vmul.f32 %v3747_v0, %v3587_v50  ;;  %8385 = vmatprep.subr.mxu1 %v7752_v25  ;;  %v7747_v33 = vld [vmem:[%s10957_s7 + $0x1] ss:$0 sm:$0xff]  ;;  %s11018_s7 = smov 16  }
0x1259   :  { %v3762_v31 = vadd.f32 1.0, %v3754_v51 }
0x125a   :  { %7741 = vmatprep.mubr.msk.f32.mxu0 %vm3792_vm12, %v3769_v46  ;;  %v3763_v19 = vadd.f32 1.0, %v3755_v30 }
0x125b   :  { %3880 = vmatmul.mubr.f32.gmra.mrb[42].mxu0 %v3768_v18  ;;  %v3770_v13 = vmul.f32 %v3762_v31, %v3562_v43  ;;  %8386 = vmatpush3.msra.mxu1 %v7752_v25 }
0x125c   :  { %v3771_v39 = vmul.f32 %v3763_v19, %v3563_v12 }
0x125e   :  { %7742 = vmatprep.mubr.msk.f32.mxu0 %vm3792_vm12, %v3771_v39  ;;  %v10327_v39 = vld [vmem:[%s10959_s9 + $0x1] ss:$0 sm:$0xff]  ;;  %s11013_s9 = smov 104  }
0x125f   :  { %3885 = vmatmul.mubr.f32.gmra.mrb[44].mxu0 %v3770_v13 }
0x12c2   :  { %v3911_v58 = vpop.xlane.xlu0 %3910 }
0x12c3   :  { %v3921_v54 = vmul.f32 0.025, %v3911_v58 }
0x12c5   :  { %v3925_v2 = vsub.f32 %v10258_v17, %v3921_v54 }
0x12c6   :  { %v3914_v14 = vpop.xlane.xlu1 %3913 }
0x12c7   :  { %v3922_v15 = vmul.f32 0.025, %v3914_v14  ;;  %v3929_v20 = vmul.f32 %v3925_v2, %v3925_v2 }
0x12c9   :  { %v3926_v22 = vsub.f32 %v10261_v62, %v3922_v15  ;;  %v3933_v38 = vsel %vm316_vm4, %v3929_v20, 0.0 }
0x12ca   :  { %3934 = vadd.xlane.f32.xlu0 %v3933_v38 }
0x12cb   :  { %v3930_v26 = vmul.f32 %v3926_v22, %v3926_v22 }
0x12cd   :  { %v3936_v34 = vsel %vm316_vm4, %v3930_v26, 0.0 }
0x12ce   :  { %3937 = vadd.xlane.f32.xlu1 %v3936_v34 }
0x132e   :  { %v3881_v45 = vpop.f32.mrb[42].mxu0 }
0x132f   :  { %v3892_v9 = vadd.f32 %v3881_v45, %v10046_v63  ;;  %v3883_v36 = vpop.f32.mrb[43].mxu0 }
0x1331   :  { %v10302_v3 = vadd.f32 %v10252_v59, %v3892_v9 }
0x1332   :  { %v3886_v27 = vpop.f32.mrb[44].mxu0 }
0x1333   :  { %v3915_v47 = vsel %vm316_vm4, %v10302_v3, 0.0  ;;  %v3893_v42 = vadd.f32 %v3886_v27, %v10049_v1  ;;  %v3888_v41 = vpop.f32.mrb[45].mxu0  ;;  %v7746_v1 = vld [vmem:[%s11008_s28 + $0x1] ss:$0 sm:$0xff] }
0x1334   :  { %3916 = vadd.xlane.f32.xlu0 %v3915_v47 }
0x1335   :  { %v10308_v49 = vadd.f32 %v10252_v59, %v3893_v42 }
0x1337   :  { %v3918_v44 = vsel %vm316_vm4, %v10308_v49, 0.0 }
0x1338   :  { %3919 = vadd.xlane.f32.xlu1 %v3918_v44 }
0x1357   :  { %v3935_v63 = vpop.xlane.xlu0 %3934 }
0x1358   :  { %v3945_v16 = vmul.f32 0.025, %v3935_v63 }
0x135a   :  { %v3949_v4 = vadd.f32 1e-05, %v3945_v16 }
0x135b   :  { %v3938_v11 = vpop.xlane.xlu1 %3937 }
0x135c   :  { %v3946_v29 = vmul.f32 0.025, %v3938_v11  ;;  %9277 = vrsqrt.f32 %v3949_v4 }
0x135e   :  { %v3950_v52 = vadd.f32 1e-05, %v3946_v29 }
0x1360   :  { %9279 = vrsqrt.f32 %v3950_v52 }
0x1366   :  { %v9278_v60 = vpop.eup %9277 }
0x1367   :  { %v3957_v59 = vmul.f32 %v9278_v60, %v3925_v2 }
0x1369   :  { %v3967_v37 = vmul.f32 %v7746_v1, %v3957_v59 }
0x136a   :  { %v9280_v48 = vpop.eup %9279 }
0x136b   :  { %v3958_v6 = vmul.f32 %v9280_v48, %v3926_v22  ;;  %v3977_v61 = vadd.f32 %v7747_v33, %v3967_v37 }
0x136d   :  { %v3968_v35 = vmul.f32 %v7746_v1, %v3958_v6  ;;  %8387 = vmatprep.mubr.msk.f32.mxu1 %vm316_vm4, %v3977_v61 }
0x136f   :  { %v3978_v10 = vadd.f32 %v7747_v33, %v3968_v35 }
0x1371   :  { %8388 = vmatmul.mubr.msk.f32.vlgmr.msra.gmra.mrb[26].mxu1 %vm316_vm4, %v3978_v10 }
0x13c1   :  { %v3917_v46 = vpop.xlane.xlu0 %3916 }
0x13c2   :  { %v3923_v51 = vmul.f32 0.025, %v3917_v46 }
0x13c4   :  { %v3927_v0 = vsub.f32 %v10302_v3, %v3923_v51 }
0x13c5   :  { %v3920_v50 = vpop.xlane.xlu1 %3919 }
0x13c6   :  { %v3931_v18 = vmul.f32 %v3927_v0, %v3927_v0  ;;  %v3924_v31 = vmul.f32 0.025, %v3920_v50 }
0x13c8   :  { %v3939_v30 = vsel %vm316_vm4, %v3931_v18, 0.0  ;;  %v3928_v12 = vsub.f32 %v10308_v49, %v3924_v31 }
0x13c9   :  { %3940 = vadd.xlane.f32.xlu0 %v3939_v30 }
0x13ca   :  { %v3932_v19 = vmul.f32 %v3928_v12, %v3928_v12 }
0x13cc   :  { %v3942_v43 = vsel %vm316_vm4, %v3932_v19, 0.0 }
0x13cd   :  { %3943 = vadd.xlane.f32.xlu1 %v3942_v43 }
0x1444   :  { %v8389_v13 = vpop.f32.mrb[26].mxu1 }
0x1445   :  { %v10330_v58 = vadd.f32 %v8389_v13, %v10327_v39  ;;  %v4073_v54 = vpop.f32.mrb[27].mxu1 }
0x1446   :  { %v10333_v14 = vadd.f32 %v10327_v39, %v4073_v54 }
0x1448   :  { %v10337_v15 = vpack.i.bf16 %v10330_v58, %v10333_v14 }
0x144a   :  { %9050 = vrot.lane.b32.xlu0 %v10337_v15, %s11011_s2 }
0x144e   :  { %9060 = vrot.lane.b32.xlu0 %v10337_v15, %s11012_s4 }
0x1452   :  { %4298 = vrot.lane.b32.xlu0 %v10333_v14, %s9433_s6 }
0x1456   :  { %v3941_v2 = vpop.xlane.xlu0 %3940  ;;  %4300 = vrot.lane.b32.xlu0 %v10330_v58, %s9433_s6 }
0x1457   :  { %v3947_v22 = vmul.f32 0.025, %v3941_v2 }
0x1459   :  { %v3951_v20 = vadd.f32 1e-05, %v3947_v22 }
0x145a   :  { %4662 = vrot.lane.b32.xlu0 %v10333_v14, %s9437_s26  ;;  %v3944_v26 = vpop.xlane.xlu1 %3943 }
0x145b   :  { %9281 = vrsqrt.f32 %v3951_v20  ;;  %v3948_v38 = vmul.f32 0.025, %v3944_v26 }
0x145d   :  { %v3952_v34 = vadd.f32 1e-05, %v3948_v38 }
0x145f   :  { %9283 = vrsqrt.f32 %v3952_v34 }
0x1465   :  { %v9282_v21 = vpop.eup %9281 }
0x1466   :  { %v3959_v23 = vmul.f32 %v9282_v21, %v3927_v0 }
0x1468   :  { %v3969_v7 = vmul.f32 %v7746_v1, %v3959_v23 }
0x1469   :  { %v9284_v24 = vpop.eup %9283 }
0x146a   :  { %v3979_v32 = vadd.f32 %v7747_v33, %v3969_v7  ;;  %v3960_v5 = vmul.f32 %v9284_v24, %v3928_v12 }
0x146c   :  { %8390 = vmatprep.mubr.msk.f32.mxu1 %vm316_vm4, %v3979_v32  ;;  %v3970_v25 = vmul.f32 %v7746_v1, %v3960_v5 }
0x146e   :  { %v3980_v45 = vadd.f32 %v7747_v33, %v3970_v25 }
0x1470   :  { %8391 = vmatmul.mubr.msk.f32.gmra.mrb[28].mxu1 %vm316_vm4, %v3980_v45 }
0x1471   :  { %8397 = vmatprep.mubr.msk.f32.mxu1 %vm510_vm5, %v10333_v14 }
0x14bc   :  { %v9051_v9 = vpop.permute.xlu0 %9050 }
0x14bd   :  { %v9053_v36 = vunpack.i.h.bf16 %v9051_v9  ;;  %v9052_v47 = vunpack.i.l.bf16 %v9051_v9 }
0x14bf   :  { %v8754_v27 = vpack.c.bf16 %v9053_v36, %v9052_v47 }
0x14c0   :  { %v9061_v42 = vpop.permute.xlu0 %9060 }
0x14c1   :  { %8756 = vmatprep.subr.msk.bf16.mxu1 %vm9687_vm6, %v8754_v27  ;;  %v9063_v31 = vunpack.i.h.bf16 %v9061_v42  ;;  %v9062_v12 = vunpack.i.l.bf16 %v9061_v42 }
0x14c2   :  { %8759 = vmatpush3.bf16.xpose.msk.msra.mxu1 %vm9687_vm6, %v8754_v27 }
0x14c3   :  { %v8764_v2 = vpack.c.bf16 %v9063_v31, %v9062_v12 }
0x14c4   :  { %v4299_v41 = vpop.permute.xlu0 %4298 }
0x14c8   :  { %v4301_v44 = vpop.permute.xlu0 %4300 }
0x14c9   :  { %8398 = vmatmul.mubr.msk.f32.vlgmr.msra.gmra.mrb[30].mxu1 %vm510_vm5, %v10330_v58 }
0x14cc   :  { %v4663_v63 = vpop.permute.xlu0 %4662 }
0x14cd   :  { %8435 = vmatprep.mubr.msk.f32.mxu0 %vm510_vm5, %v4663_v63 }
0x1543   :  { %v10360_v16 = vpop.f32.mrb[28].mxu1 }
0x1544   :  { %v10362_v11 = vpop.f32.mrb[29].mxu1 }
0x159c   :  { %v8399_v29 = vpop.f32.mrb[30].mxu1 }
0x159d   :  { %v4178_v4 = vpop.f32.mrb[31].mxu1  ;;  %v4188_v60 = vmul.f32 0.15811388, %v8399_v29 }
0x159e   :  { %v4187_v52 = vmul.f32 0.15811388, %v4178_v4 }
0x159f   :  { %v4192_v48 = vsel %vm596_vm7, %v4188_v60, -inf }
0x15a0   :  { %v4189_v1 = vsel %vm596_vm7, %v4187_v52, -inf }
0x15a1   :  { %4190 = vmax.xlane.f32.xlu1 %v4189_v1 }
0x15a5   :  { %4193 = vmax.xlane.f32.xlu1 %v4192_v48 }
0x162e   :  { %v4191_v59 = vpop.xlane.xlu1 %4190 }
0x162f   :  { %v4195_v6 = vsub.f32 %v4187_v52, %v4191_v59 }
0x1631   :  { %v4197_v35 = vmul.f32 1.442695, %v4195_v6 }
0x1632   :  { %v4194_v33 = vpop.xlane.xlu1 %4193 }
0x1633   :  { %v4196_v37 = vsub.f32 %v4188_v60, %v4194_v33 }
0x1635   :  { %v4199_v61 = vmul.f32 1.442695, %v4196_v37 }
0x1637   :  { %9285 = vpow2.f32 %v4199_v61 }
0x1638   :  { %9287 = vpow2.f32 %v4197_v35 }
0x1641   :  { %v9286_v10 = vpop.eup %9285 }
0x1642   :  { %v4204_v46 = vsel %vm596_vm7, %v9286_v10, 0.0  ;;  %v9288_v51 = vpop.eup %9287 }
0x1643   :  { %4205 = vadd.xlane.f32.xlu1 %v4204_v46  ;;  %v4201_v0 = vsel %vm596_vm7, %v9288_v51, 0.0 }
0x1647   :  { %4202 = vadd.xlane.f32.xlu1 %v4201_v0 }
0x1658   :  { %9055 = vrot.lane.b32.xlu1 %v10337_v15, %s9435_s25 }
0x165c   :  { %9065 = vrot.lane.b32.xlu1 %v10337_v15, %s9436_s5 }
0x1660   :  { %4664 = vrot.lane.b32.xlu1 %v10330_v58, %s9437_s26 }
0x16d0   :  { %v4206_v18 = vpop.xlane.xlu1 %4205 }
0x16d1   :  { %9289 = vrcp.f32 %v4206_v18 }
0x16d4   :  { %v4203_v50 = vpop.xlane.xlu1 %4202 }
0x16d5   :  { %9291 = vrcp.f32 %v4203_v50 }
0x16d8   :  { %v9056_v30 = vpop.permute.xlu1 %9055 }
0x16d9   :  { %v9058_v19 = vunpack.i.h.bf16 %v9056_v30  ;;  %v9057_v43 = vunpack.i.l.bf16 %v9056_v30 }
0x16db   :  { %v8760_v13 = vpack.c.bf16 %v9058_v19, %v9057_v43  ;;  %v9290_v26 = vpop.eup %9289  ;;  %v10427_v19 = vadd.f32 %v10327_v39, %v10362_v11 }
0x16dc   :  { %v9066_v54 = vpop.permute.xlu1 %9065  ;;  %v4210_v23 = vmul.f32 %v9290_v26, %v9286_v10 }
0x16dd   :  { %v9068_v22 = vunpack.i.h.bf16 %v9066_v54  ;;  %v9067_v20 = vunpack.i.l.bf16 %v9066_v54  ;;  %8761 = vmatprep.subr.bf16.mxu1 %v8760_v13 }
0x16de   :  { %8763 = vmatpush3.bf16.msra.mxu1 %v8760_v13 }
0x16df   :  { %v9292_v38 = vpop.eup %9291  ;;  %v8774_v34 = vpack.c.bf16 %v9068_v22, %v9067_v20  ;;  %8766 = vmatprep.subr.msk.bf16.mxu1 %vm9687_vm6, %v8764_v2 }
0x16e0   :  { %v4209_v21 = vmul.f32 %v9292_v38, %v9288_v51  ;;  %v4665_v7 = vpop.permute.xlu1 %4664 }
0x16e1   :  { %8776 = vmatprep.subr.msk.bf16.mxu0 %vm9687_vm6, %v8774_v34 }
0x16e2   :  { %8404 = vmatprep.mubr.msk.f32.mxu1 %vm596_vm7, %v4209_v21  ;;  %8779 = vmatpush3.bf16.xpose.msk.msra.mxu0 %vm9687_vm6, %v8774_v34 }
0x16e3   :  { %8405 = vmatmul.mubr.msk.f32.vlgmr.msra.gmra.mrb[32].mxu1 %vm596_vm7, %v4210_v23 }
0x16e4   :  { %8411 = vmatprep.mubr.msk.f32.mxu1 %vm510_vm5, %v4299_v41 }
0x16e7   :  { %8769 = vmatpush3.bf16.xpose.msk.msra.mxu1 %vm9687_vm6, %v8764_v2 }
0x16e9   :  { %8436 = vmatmul.mubr.msk.f32.vlgmr.msra.gmra.mrb[46].mxu0 %vm510_vm5, %v4665_v7 }
0x16ee   :  { %8412 = vmatmul.mubr.msk.f32.vlgmr.msra.gmra.mrb[34].mxu1 %vm510_vm5, %v4301_v44 }
0x17b6   :  { %v10387_v32 = vpop.f32.mrb[32].mxu1 }
0x17b7   :  { %v10389_v24 = vpop.f32.mrb[33].mxu1 }
0x17bc   :  { %v8437_v5 = vpop.f32.mrb[46].mxu0 }
0x17bd   :  { %v4744_v25 = vpop.f32.mrb[47].mxu0  ;;  %v10399_v41 = vmul.f32 0.15811388, %v8437_v5 }
0x17be   :  { %v4753_v30 = vmul.f32 0.15811388, %v4744_v25 }
0x17bf   :  { %v4758_v44 = vsel %vm596_vm7, %v10399_v41, -inf }
0x17c0   :  { %v4755_v12 = vsel %vm596_vm7, %v4753_v30, -inf }
0x17c1   :  { %v8413_v45 = vpop.f32.mrb[34].mxu1 }
0x17c2   :  { %v4390_v9 = vmul.f32 0.15811388, %v8413_v45  ;;  %v4380_v36 = vpop.f32.mrb[35].mxu1 }
0x17c3   :  { %v4389_v47 = vmul.f32 0.15811388, %v4380_v36 }
0x17c4   :  { %v4394_v27 = vsel %vm596_vm7, %v4390_v9, -inf }
0x17c5   :  { %4395 = vmax.xlane.f32.xlu1 %v4394_v27  ;;  %v4391_v42 = vsel %vm596_vm7, %v4389_v47, -inf }
0x17c6   :  { %4392 = vmax.xlane.f32.xlu0 %v4391_v42 }
0x17d6   :  { %9075 = vrot.lane.b32.xlu1 %v10337_v15, %s9439_s27 }
0x17da   :  { %4947 = vrot.lane.b32.xlu1 %v10333_v14, %s11013_s9 }
0x17de   :  { %4949 = vrot.lane.b32.xlu1 %v10330_v58, %s11013_s9 }
0x1802   :  { %4759 = vmax.xlane.f32.xlu1 %v4758_v44 }
0x1813   :  { %9085 = vrot.lane.b32.xlu1 %v10337_v15, %s11014_s24 }
0x1817   :  { %5232 = vrot.lane.b32.xlu1 %v10333_v14, %s11015_s30 }
0x181b   :  { %5234 = vrot.lane.b32.xlu1 %v10330_v58, %s11015_s30 }
0x1852   :  { %v4396_v63 = vpop.xlane.xlu1 %4395 }
0x1853   :  { %v4398_v29 = vsub.f32 %v4390_v9, %v4396_v63  ;;  %v4393_v4 = vpop.xlane.xlu0 %4392 }
0x1854   :  { %v4397_v52 = vsub.f32 %v4389_v47, %v4393_v4 }
0x1855   :  { %v4401_v60 = vmul.f32 1.442695, %v4398_v29  ;;  %v10449_v29 = vadd.f32 %v10360_v16, %v10327_v39  ;;  %v10466_v39 = vld [vmem:[%s10960_s10 + $0x30] sm:$0xff]  ;;  %v10471_v16 = vld [vmem:[%s10960_s10 + $0x28] sm:$0xff] }
0x1856   :  { %v4399_v1 = vmul.f32 1.442695, %v4397_v52  ;;  %v9076_v48 = vpop.permute.xlu1 %9075 }
0x1857   :  { %9293 = vpow2.f32 %v4401_v60  ;;  %v9078_v59 = vunpack.i.h.bf16 %v9076_v48  ;;  %v9077_v6 = vunpack.i.l.bf16 %v9076_v48  ;;  %v10453_v4 = vpack.i.bf16 %v10449_v29, %v10427_v19 }
0x1858   :  { %9295 = vpow2.f32 %v4399_v1 }
0x1859   :  { %v8784_v33 = vpack.c.bf16 %v9078_v59, %v9077_v6 }
0x185a   :  { %v4948_v37 = vpop.permute.xlu1 %4947 }
0x185b   :  { %8786 = vmatprep.subr.msk.bf16.mxu0 %vm9687_vm6, %v8784_v33  ;;  %8454 = vmatprep.mubr.msk.f32.mxu0 %vm510_vm5, %v4948_v37 }
0x185c   :  { %8789 = vmatpush3.bf16.xpose.msk.msra.mxu0 %vm9687_vm6, %v8784_v33 }
0x185e   :  { %v4950_v14 = vpop.permute.xlu1 %4949 }
0x1861   :  { %v9294_v58 = vpop.eup %9293 }
0x1862   :  { %v4406_v35 = vsel %vm596_vm7, %v9294_v58, 0.0  ;;  %v9296_v61 = vpop.eup %9295 }
0x1863   :  { %8455 = vmatmul.mubr.msk.f32.vlgmr.msra.gmra.mrb[48].mxu0 %vm510_vm5, %v4950_v14  ;;  %4407 = vadd.xlane.f32.xlu0 %v4406_v35  ;;  %v4403_v10 = vsel %vm596_vm7, %v9296_v61, 0.0 }
0x1867   :  { %4404 = vadd.xlane.f32.xlu0 %v4403_v10 }
0x187d   :  { %9070 = vrot.lane.b32.xlu0 %v10337_v15, %s11016_s0 }
0x188f   :  { %v4760_v46 = vpop.xlane.xlu1 %4759 }
0x1890   :  { %v4762_v23 = vsub.f32 %v10399_v41, %v4760_v46 }
0x1892   :  { %v4765_v25 = vmul.f32 1.442695, %v4762_v23 }
0x1893   :  { %v9086_v51 = vpop.permute.xlu1 %9085 }
0x1894   :  { %v9088_v0 = vunpack.i.h.bf16 %v9086_v51  ;;  %v9087_v18 = vunpack.i.l.bf16 %v9086_v51 }
0x1896   :  { %v8794_v50 = vpack.c.bf16 %v9088_v0, %v9087_v18 }
0x1897   :  { %v5233_v31 = vpop.permute.xlu1 %5232 }
0x1898   :  { %8796 = vmatprep.subr.msk.bf16.mxu0 %vm9687_vm6, %v8794_v50  ;;  %8473 = vmatprep.mubr.msk.f32.mxu0 %vm510_vm5, %v5233_v31 }
0x1899   :  { %8799 = vmatpush3.bf16.xpose.msk.msra.mxu0 %vm9687_vm6, %v8794_v50 }
0x189b   :  { %v5235_v43 = vpop.permute.xlu1 %5234 }
0x189c   :  { %4756 = vmax.xlane.f32.xlu0 %v4755_v12 }
0x18a0   :  { %8474 = vmatmul.mubr.msk.f32.vlgmr.msra.gmra.mrb[50].mxu0 %vm510_vm5, %v5235_v43 }
0x18a1   :  { %8492 = vmatprep.mubr.msk.f32.mxu0 %vm510_vm5, %v10427_v19 }
0x18f0   :  { %v4408_v13 = vpop.xlane.xlu0 %4407 }
0x18f1   :  { %9297 = vrcp.f32 %v4408_v13 }
0x18f4   :  { %v4405_v54 = vpop.xlane.xlu0 %4404 }
0x18f5   :  { %9299 = vrcp.f32 %v4405_v54 }
0x18f8   :  { %v9071_v2 = vpop.permute.xlu0 %9070 }
0x18f9   :  { %v9073_v22 = vunpack.i.h.bf16 %v9071_v2  ;;  %v9072_v20 = vunpack.i.l.bf16 %v9071_v2 }
0x18fb   :  { %v8770_v26 = vpack.c.bf16 %v9073_v22, %v9072_v20  ;;  %v9298_v38 = vpop.eup %9297 }
0x18fc   :  { %v4412_v21 = vmul.f32 %v9298_v38, %v9294_v58 }
0x18fd   :  { %8771 = vmatprep.subr.bf16.mxu1 %v8770_v26 }
0x18fe   :  { %8773 = vmatpush3.bf16.msra.mxu1 %v8770_v26 }
0x18ff   :  { %v9300_v34 = vpop.eup %9299  ;;  %8421 = vmatprep.subr.mxu1 %v10466_v39 }
0x1900   :  { %v4411_v11 = vmul.f32 %v9300_v34, %v9296_v61 }
0x1902   :  { %8418 = vmatprep.mubr.msk.f32.mxu1 %vm596_vm7, %v4411_v11 }
0x1903   :  { %8419 = vmatmul.mubr.msk.f32.vlgmr.msra.gmra.mrb[36].mxu1 %vm596_vm7, %v4412_v21 }
0x1904   :  { %8422 = vmatpush3.msra.mxu1 %v10466_v39 }
0x1905   :  { %8426 = vmatprep.subr.mxu1 %v10471_v16 }
0x1929   :  { %v4757_v7 = vpop.xlane.xlu0 %4756 }
0x192a   :  { %v4761_v5 = vsub.f32 %v4753_v30, %v4757_v7 }
0x192c   :  { %v4763_v45 = vmul.f32 1.442695, %v4761_v5 }
0x192e   :  { %9301 = vpow2.f32 %v4763_v45 }
0x192f   :  { %9303 = vpow2.f32 %v4765_v25  ;;  %v10519_v25 = vld [vmem:[%s10960_s10 + $0x38] sm:$0xff] }
0x1936   :  { %v8456_v9 = vpop.f32.mrb[48].mxu0 }
0x1937   :  { %v10435_v36 = vmul.f32 0.15811388, %v8456_v9  ;;  %v5029_v47 = vpop.f32.mrb[49].mxu0 }
0x1938   :  { %v10437_v27 = vpop.eup %9301  ;;  %v5038_v52 = vmul.f32 0.15811388, %v5029_v47 }
0x1939   :  { %v5043_v42 = vsel %vm596_vm7, %v10435_v36, -inf  ;;  %v4767_v44 = vsel %vm596_vm7, %v10437_v27, 0.0  ;;  %v10443_v63 = vpop.eup %9303 }
0x193a   :  { %5044 = vmax.xlane.f32.xlu1 %v5043_v42  ;;  %4768 = vadd.xlane.f32.xlu0 %v4767_v44  ;;  %v4770_v41 = vsel %vm596_vm7, %v10443_v63, 0.0  ;;  %v5040_v60 = vsel %vm596_vm7, %v5038_v52, -inf }
0x193e   :  { %4771 = vadd.xlane.f32.xlu0 %v4770_v41 }
0x194b   :  { %9095 = vrot.lane.b32.xlu1 %v10453_v4, %s11011_s2 }
0x194f   :  { %9100 = vrot.lane.b32.xlu1 %v10453_v4, %s11012_s4 }
0x1953   :  { %5717 = vrot.lane.b32.xlu1 %v10427_v19, %s9433_s6 }
0x1954   :  { %9080 = vrot.lane.b32.xlu0 %v10337_v15, %s11017_s29 }
0x1973   :  { %v10477_v1 = vpop.f32.mrb[50].mxu0  ;;  %5041 = vmax.xlane.f32.xlu0 %v5040_v60 }
0x1974   :  { %v5314_v48 = vpop.f32.mrb[51].mxu0  ;;  %v5324_v47 = vmul.f32 0.15811388, %v10477_v1 }
0x1975   :  { %v10479_v59 = vmul.f32 0.15811388, %v5314_v48 }
0x1977   :  { %v5325_v6 = vsel %vm596_vm7, %v10479_v59, -inf }
0x1978   :  { %5326 = vmax.xlane.f32.xlu1 %v5325_v6 }
0x1989   :  { %9105 = vrot.lane.b32.xlu1 %v10337_v15, %s11018_s7 }
0x198d   :  { %6081 = vrot.lane.b32.xlu1 %v10427_v19, %s9437_s26 }
0x1991   :  { %6083 = vrot.lane.b32.xlu1 %v10449_v29, %s9437_s26  ;;  %s11019_s26 = smov 24  }
0x19c7   :  { %v5045_v33 = vpop.xlane.xlu1 %5044  ;;  %v4769_v37 = vpop.xlane.xlu0 %4768 }
0x19c8   :  { %9305 = vrcp.f32 %v4769_v37  ;;  %v5047_v38 = vsub.f32 %v10435_v36, %v5045_v33 }
0x19cb   :  { %v9096_v58 = vpop.permute.xlu1 %9095  ;;  %v4772_v61 = vpop.xlane.xlu0 %4771 }
0x19cc   :  { %v9098_v14 = vunpack.i.h.bf16 %v9096_v58  ;;  %v9097_v35 = vunpack.i.l.bf16 %v9096_v58  ;;  %9307 = vrcp.f32 %v4772_v61 }
0x19ce   :  { %v8804_v10 = vpack.c.bf16 %v9098_v14, %v9097_v35 }
0x19cf   :  { %v9101_v46 = vpop.permute.xlu1 %9100  ;;  %v9081_v50 = vpop.permute.xlu0 %9080 }
0x19d0   :  { %v9103_v51 = vunpack.i.h.bf16 %v9101_v46  ;;  %v9102_v0 = vunpack.i.l.bf16 %v9101_v46  ;;  %8806 = vmatprep.subr.msk.bf16.mxu0 %vm9687_vm6, %v8804_v10  ;;  %v9083_v30 = vunpack.i.h.bf16 %v9081_v50  ;;  %v9082_v31 = vunpack.i.l.bf16 %v9081_v50 }
0x19d1   :  { %8809 = vmatpush3.bf16.xpose.msk.msra.mxu0 %vm9687_vm6, %v8804_v10 }
0x19d2   :  { %v8814_v18 = vpack.c.bf16 %v9103_v51, %v9102_v0  ;;  %v8780_v13 = vpack.c.bf16 %v9083_v30, %v9082_v31  ;;  %v9306_v2 = vpop.eup %9305  ;;  %v10539_v0 = vld [vmem:[%s10960_s10 + $0x40] sm:$0xff] }
0x19d3   :  { %v5718_v54 = vpop.permute.xlu1 %5717  ;;  %v4775_v20 = vmul.f32 %v9306_v2, %v10437_v27 }
0x19d4   :  { %8816 = vmatprep.subr.msk.bf16.mxu0 %vm9687_vm6, %v8814_v18 }
0x19d6   :  { %v8420_v12 = vpop.f32.mrb[36].mxu1  ;;  %v9308_v22 = vpop.eup %9307 }
0x19d7   :  { %v4491_v43 = vpop.f32.mrb[37].mxu1  ;;  %v4776_v26 = vmul.f32 %v9308_v22, %v10443_v63 }
0x19d8   :  { %8423 = vmatprep.mubr.msk.f32.mxu1 %vm510_vm5, %v4491_v43  ;;  %8493 = vmatmul.mubr.msk.f32.vlgmr.msra.gmra.mrb[52].mxu0 %vm510_vm5, %v10449_v29 }
0x19d9   :  { %8424 = vmatmul.mubr.msk.f32.vlgmr.msra.gmra.mrb[38].mxu1 %vm510_vm5, %v8420_v12  ;;  %8819 = vmatpush3.bf16.xpose.msk.msra.mxu0 %vm9687_vm6, %v8814_v18 }
0x19da   :  { %8427 = vmatpush3.msra.mxu1 %v10471_v16  ;;  %8506 = vmatprep.mubr.msk.f32.mxu0 %vm510_vm5, %v5718_v54 }
0x19db   :  { %8428 = vmatprep.mubr.msk.f32.mxu1 %vm510_vm5, %v10389_v24  ;;  %8781 = vmatprep.subr.bf16.mxu1 %v8780_v13  ;;  %v5050_v24 = vmul.f32 1.442695, %v5047_v38 }
0x19e1   :  { %8429 = vmatmul.mubr.msk.f32.vlgmr.msra.gmra.mrb[38].mxu1 %vm510_vm5, %v10387_v32 }
0x19e2   :  { %8783 = vmatpush3.bf16.msra.mxu1 %v8780_v13  ;;  %8442 = vmatprep.mubr.msk.f32.mxu1 %vm596_vm7, %v4775_v20 }
0x19e3   :  { %8445 = vmatprep.subr.mxu1 %v10519_v25 }
0x19e5   :  { %8443 = vmatmul.mubr.msk.f32.vlgmr.msra.gmra.mrb[40].mxu1 %vm596_vm7, %v4776_v26 }
0x19e6   :  { %8446 = vmatpush3.msra.mxu1 %v10519_v25 }
0x1a00   :  { %v5042_v34 = vpop.xlane.xlu0 %5041 }
0x1a01   :  { %v5046_v11 = vsub.f32 %v5038_v52, %v5042_v34 }
0x1a03   :  { %v5048_v21 = vmul.f32 1.442695, %v5046_v11 }
0x1a05   :  { %9309 = vpow2.f32 %v5048_v21  ;;  %v5327_v45 = vpop.xlane.xlu1 %5326 }
0x1a06   :  { %9311 = vpow2.f32 %v5050_v24  ;;  %v5331_v9 = vsub.f32 %v10479_v59, %v5327_v45 }
0x1a08   :  { %v5333_v36 = vmul.f32 1.442695, %v5331_v9 }
0x1a09   :  { %v9106_v41 = vpop.permute.xlu1 %9105 }
0x1a0a   :  { %9313 = vpow2.f32 %v5333_v36  ;;  %v9108_v18 = vunpack.i.h.bf16 %v9106_v41  ;;  %v9107_v50 = vunpack.i.l.bf16 %v9106_v41 }
0x1a0c   :  { %v8800_v31 = vpack.c.bf16 %v9108_v18, %v9107_v50 }
0x1a0d   :  { %v6082_v33 = vpop.permute.xlu1 %6081 }
0x1a0f   :  { %v9310_v23 = vpop.eup %9309 }
0x1a10   :  { %v5052_v7 = vsel %vm596_vm7, %v9310_v23, 0.0  ;;  %v9312_v5 = vpop.eup %9311 }
0x1a11   :  { %5053 = vadd.xlane.f32.xlu0 %v5052_v7  ;;  %v5055_v32 = vsel %vm596_vm7, %v9312_v5, 0.0  ;;  %v6084_v26 = vpop.permute.xlu1 %6083 }
0x1a14   :  { %v10528_v27 = vpop.eup %9313 }
0x1a15   :  { %5056 = vadd.xlane.f32.xlu0 %v5055_v32  ;;  %v5337_v42 = vsel %vm596_vm7, %v10528_v27, 0.0 }
0x1a2b   :  { %9090 = vrot.lane.b32.xlu0 %v10337_v15, %s11019_s26  ;;  %v5328_v15 = vsel %vm596_vm7, %v5324_v47, -inf }
0x1a2f   :  { %5719 = vrot.lane.b32.xlu0 %v10449_v29, %s9433_s6 }
0x1a4e   :  { %5329 = vmax.xlane.f32.xlu0 %v5328_v15 }
0x1a52   :  { %5338 = vadd.xlane.f32.xlu0 %v5337_v42 }
0x1a9e   :  { %v5054_v44 = vpop.xlane.xlu0 %5053 }
0x1a9f   :  { %9315 = vrcp.f32 %v5054_v44 }
0x1aa2   :  { %v5057_v63 = vpop.xlane.xlu0 %5056 }
0x1aa3   :  { %9317 = vrcp.f32 %v5057_v63 }
0x1aa6   :  { %v9091_v52 = vpop.permute.xlu0 %9090 }
0x1aa7   :  { %v9093_v60 = vunpack.i.h.bf16 %v9091_v52  ;;  %v9092_v48 = vunpack.i.l.bf16 %v9091_v52 }
0x1aa9   :  { %v8790_v59 = vpack.c.bf16 %v9093_v60, %v9092_v48  ;;  %v9316_v35 = vpop.eup %9315 }
0x1aaa   :  { %v5720_v6 = vpop.permute.xlu0 %5719  ;;  %v5060_v51 = vmul.f32 %v9316_v35, %v9310_v23 }
0x1aab   :  { %8791 = vmatprep.subr.bf16.mxu1 %v8790_v59  ;;  %v8494_v1 = vpop.f32.mrb[52].mxu0  ;;  %8507 = vmatmul.mubr.msk.f32.vlgmr.msra.gmra.mrb[54].mxu0 %vm510_vm5, %v5720_v6 }
0x1aac   :  { %v5597_v37 = vpop.f32.mrb[53].mxu0  ;;  %8530 = vmatprep.mubr.msk.f32.mxu0 %vm510_vm5, %v6082_v33  ;;  %v5607_v22 = vmul.f32 0.15811388, %v8494_v1 }
0x1aad   :  { %v5606_v58 = vmul.f32 0.15811388, %v5597_v37  ;;  %v9318_v46 = vpop.eup %9317 }
0x1aae   :  { %v5061_v30 = vmul.f32 %v9318_v46, %v9312_v5  ;;  %v5611_v20 = vsel %vm596_vm7, %v5607_v22, -inf }
0x1aaf   :  { %v5608_v14 = vsel %vm596_vm7, %v5606_v58, -inf }
0x1ab0   :  { %5609 = vmax.xlane.f32.xlu1 %v5608_v14 }
0x1ab8   :  { %v8444_v61 = vpop.f32.mrb[40].mxu1 }
0x1ab9   :  { %v4855_v10 = vpop.f32.mrb[41].mxu1 }
0x1aba   :  { %8447 = vmatprep.mubr.msk.f32.mxu1 %vm510_vm5, %v4855_v10 }
0x1abb   :  { %8448 = vmatmul.mubr.msk.f32.vlgmr.msra.gmra.mrb[38].mxu1 %vm510_vm5, %v8444_v61 }
0x1abc   :  { %8793 = vmatpush3.bf16.msra.mxu1 %v8790_v59  ;;  %8461 = vmatprep.mubr.msk.f32.mxu1 %vm596_vm7, %v5060_v51 }
0x1abd   :  { %8464 = vmatprep.subr.mxu1 %v10539_v0 }
0x1abf   :  { %8462 = vmatmul.mubr.msk.f32.vlgmr.msra.gmra.mrb[42].mxu1 %vm596_vm7, %v5061_v30 }
0x1ac0   :  { %8465 = vmatpush3.msra.mxu1 %v10539_v0 }
0x1ac1   :  { %8801 = vmatprep.subr.bf16.mxu1 %v8800_v31 }
0x1adb   :  { %v5330_v12 = vpop.xlane.xlu0 %5329 }
0x1adc   :  { %v5332_v43 = vsub.f32 %v5324_v47, %v5330_v12 }
0x1ade   :  { %v5335_v13 = vmul.f32 1.442695, %v5332_v43 }
0x1adf   :  { %v5339_v23 = vpop.xlane.xlu0 %5338 }
0x1ae0   :  { %9319 = vpow2.f32 %v5335_v13 }
0x1aea   :  { %v9320_v54 = vpop.eup %9319 }
0x1aeb   :  { %v5340_v2 = vsel %vm596_vm7, %v9320_v54, 0.0 }
0x1aec   :  { %5341 = vadd.xlane.f32.xlu0 %v5340_v2 }
0x1b02   :  { %9110 = vrot.lane.b32.xlu0 %v10453_v4, %s9436_s5 }
0x1b21   :  { %5612 = vmax.xlane.f32.xlu0 %v5611_v20 }
0x1b3d   :  { %v5610_v38 = vpop.xlane.xlu1 %5609 }
0x1b3e   :  { %v5614_v34 = vsub.f32 %v5606_v58, %v5610_v38 }
0x1b40   :  { %v5616_v11 = vmul.f32 1.442695, %v5614_v34 }
0x1b42   :  { %9321 = vpow2.f32 %v5616_v11 }
0x1b43   :  { %9323 = vrcp.f32 %v5339_v23 }
0x1b4c   :  { %v10550_v24 = vpop.eup %9321 }
0x1b4d   :  { %v5620_v21 = vsel %vm596_vm7, %v10550_v24, 0.0  ;;  %v9324_v41 = vpop.eup %9323 }
0x1b4e   :  { %5621 = vadd.xlane.f32.xlu1 %v5620_v21  ;;  %v5345_v59 = vmul.f32 %v9324_v41, %v10528_v27  ;;  %v10573_v27 = vld [vmem:[%s10960_s10 + $0x48] sm:$0xff] }
0x1b79   :  { %v5342_v7 = vpop.xlane.xlu0 %5341 }
0x1b7a   :  { %9325 = vrcp.f32 %v5342_v7 }
0x1b7d   :  { %v9111_v5 = vpop.permute.xlu0 %9110 }
0x1b7e   :  { %v9113_v32 = vunpack.i.h.bf16 %v9111_v5  ;;  %v9112_v45 = vunpack.i.l.bf16 %v9111_v5  ;;  %v8508_v9 = vpop.f32.mrb[54].mxu0 }
0x1b7f   :  { %v5799_v36 = vpop.f32.mrb[55].mxu0  ;;  %v5809_v42 = vmul.f32 0.15811388, %v8508_v9 }
0x1b80   :  { %v8824_v47 = vpack.c.bf16 %v9113_v32, %v9112_v45  ;;  %v5808_v15 = vmul.f32 0.15811388, %v5799_v36 }
0x1b81   :  { %v5813_v63 = vsel %vm596_vm7, %v5809_v42, -inf }
0x1b82   :  { %8826 = vmatprep.subr.msk.bf16.mxu0 %vm9687_vm6, %v8824_v47  ;;  %v5810_v44 = vsel %vm596_vm7, %v5808_v15, -inf }
0x1b83   :  { %5811 = vmax.xlane.f32.xlu0 %v5810_v44  ;;  %8829 = vmatpush3.bf16.xpose.msk.msra.mxu0 %vm9687_vm6, %v8824_v47 }
0x1b84   :  { %v9326_v48 = vpop.eup %9325 }
0x1b85   :  { %v5346_v6 = vmul.f32 %v9326_v48, %v9320_v54 }
0x1b87   :  { %5814 = vmax.xlane.f32.xlu0 %v5813_v63 }
0x1b8a   :  { %8531 = vmatmul.mubr.msk.f32.vlgmr.msra.gmra.mrb[56].mxu0 %vm510_vm5, %v6084_v26 }
0x1b92   :  { %v8463_v52 = vpop.f32.mrb[42].mxu1 }
0x1b93   :  { %v5140_v60 = vpop.f32.mrb[43].mxu1 }
0x1b94   :  { %8466 = vmatprep.mubr.msk.f32.mxu1 %vm510_vm5, %v5140_v60 }
0x1b95   :  { %8467 = vmatmul.mubr.msk.f32.vlgmr.msra.gmra.mrb[38].mxu1 %vm510_vm5, %v8463_v52 }
0x1b96   :  { %8803 = vmatpush3.bf16.msra.mxu1 %v8800_v31  ;;  %8480 = vmatprep.mubr.msk.f32.mxu1 %vm596_vm7, %v5345_v59 }
0x1b97   :  { %8483 = vmatprep.subr.mxu1 %v10573_v27 }
0x1b99   :  { %8481 = vmatmul.mubr.msk.f32.vlgmr.msra.gmra.mrb[44].mxu1 %vm596_vm7, %v5346_v6 }
0x1b9a   :  { %8484 = vmatpush3.msra.mxu1 %v10573_v27 }
0x1bae   :  { %v5613_v33 = vpop.xlane.xlu0 %5612 }
0x1baf   :  { %v5615_v1 = vsub.f32 %v5607_v22, %v5613_v33 }
0x1bb1   :  { %v5618_v37 = vmul.f32 1.442695, %v5615_v1 }
0x1bb3   :  { %9327 = vpow2.f32 %v5618_v37 }
0x1bbd   :  { %v10566_v58 = vpop.eup %9327 }
0x1bbe   :  { %v5623_v14 = vsel %vm596_vm7, %v10566_v58, 0.0 }
0x1bbf   :  { %5624 = vadd.xlane.f32.xlu0 %v5623_v14 }
0x1bdb   :  { %v5622_v13 = vpop.xlane.xlu1 %5621 }
0x1c10   :  { %v5812_v35 = vpop.xlane.xlu0 %5811 }
0x1c11   :  { %v5816_v61 = vsub.f32 %v5808_v15, %v5812_v35 }
0x1c13   :  { %v5818_v10 = vmul.f32 1.442695, %v5816_v61 }
0x1c14   :  { %v5815_v46 = vpop.xlane.xlu0 %5814 }
0x1c15   :  { %9329 = vpow2.f32 %v5818_v10  ;;  %v5817_v51 = vsub.f32 %v5809_v42, %v5815_v46 }
0x1c17   :  { %v5820_v18 = vmul.f32 1.442695, %v5817_v51 }
0x1c19   :  { %9331 = vpow2.f32 %v5820_v18 }
0x1c1a   :  { %9333 = vrcp.f32 %v5622_v13 }
0x1c1f   :  { %v9330_v50 = vpop.eup %9329 }
0x1c20   :  { %v5822_v30 = vsel %vm596_vm7, %v9330_v50, 0.0 }
0x1c21   :  { %5823 = vadd.xlane.f32.xlu1 %v5822_v30 }
0x1c23   :  { %v9332_v31 = vpop.eup %9331 }
0x1c24   :  { %v5825_v12 = vsel %vm596_vm7, %v9332_v31, 0.0  ;;  %v9334_v38 = vpop.eup %9333 }
0x1c25   :  { %5826 = vadd.xlane.f32.xlu0 %v5825_v12  ;;  %v5628_v21 = vmul.f32 %v9334_v38, %v10550_v24 }
0x1c32   :  { %9115 = vrot.lane.b32.xlu1 %v10453_v4, %s9435_s25 }
0x1c36   :  { %9125 = vrot.lane.b32.xlu1 %v10453_v4, %s9439_s27 }
0x1c3a   :  { %6366 = vrot.lane.b32.xlu1 %v10427_v19, %s11013_s9 }
0x1c3b   :  { %9120 = vrot.lane.b32.xlu0 %v10453_v4, %s11016_s0 }
0x1c3e   :  { %6368 = vrot.lane.b32.xlu1 %v10449_v29, %s11013_s9 }
0x1c4c   :  { %v5625_v23 = vpop.xlane.xlu0 %5624 }
0x1c4d   :  { %9335 = vrcp.f32 %v5625_v23 }
0x1c57   :  { %v9336_v36 = vpop.eup %9335 }
0x1c58   :  { %v5629_v41 = vmul.f32 %v9336_v36, %v10566_v58 }
0x1c5d   :  { %v8532_v43 = vpop.f32.mrb[56].mxu0 }
0x1c5e   :  { %v10589_v54 = vmul.f32 0.15811388, %v8532_v43  ;;  %v6163_v2 = vpop.f32.mrb[57].mxu0 }
0x1c5f   :  { %v6172_v22 = vmul.f32 0.15811388, %v6163_v2 }
0x1c60   :  { %v6177_v20 = vsel %vm596_vm7, %v10589_v54, -inf }
0x1c61   :  { %v6174_v26 = vsel %vm596_vm7, %v6172_v22, -inf }
0x1c62   :  { %6178 = vmax.xlane.f32.xlu1 %v6177_v20  ;;  %6175 = vmax.xlane.f32.xlu0 %v6174_v26 }
0x1c6c   :  { %v8482_v34 = vpop.f32.mrb[44].mxu1 }
0x1c6d   :  { %v5425_v11 = vpop.f32.mrb[45].mxu1 }
0x1c6e   :  { %8485 = vmatprep.mubr.msk.f32.mxu1 %vm510_vm5, %v5425_v11 }
0x1c6f   :  { %8486 = vmatmul.mubr.msk.f32.vlgmr.msra.gmra.mrb[38].mxu1 %vm510_vm5, %v8482_v34 }
0x1c70   :  { %8499 = vmatprep.mubr.msk.f32.mxu1 %vm596_vm7, %v5628_v21 }
0x1c73   :  { %9135 = vrot.lane.b32.xlu1 %v10453_v4, %s11014_s24 }
0x1c77   :  { %6651 = vrot.lane.b32.xlu1 %v10427_v19, %s11015_s30 }
0x1c7b   :  { %6653 = vrot.lane.b32.xlu1 %v10449_v29, %s11015_s30 }
0x1cae   :  { %v5824_v7 = vpop.xlane.xlu1 %5823 }
0x1caf   :  { %9337 = vrcp.f32 %v5824_v7 }
0x1cb2   :  { %v9116_v5 = vpop.permute.xlu1 %9115  ;;  %v5827_v32 = vpop.xlane.xlu0 %5826 }
0x1cb3   :  { %v9118_v24 = vunpack.i.h.bf16 %v9116_v5  ;;  %v9117_v45 = vunpack.i.l.bf16 %v9116_v5  ;;  %9339 = vrcp.f32 %v5827_v32 }
0x1cb5   :  { %v8810_v9 = vpack.c.bf16 %v9118_v24, %v9117_v45 }
0x1cb6   :  { %v9126_v47 = vpop.permute.xlu1 %9125  ;;  %v9121_v15 = vpop.permute.xlu0 %9120 }
0x1cb7   :  { %v9128_v42 = vunpack.i.h.bf16 %v9126_v47  ;;  %v9127_v44 = vunpack.i.l.bf16 %v9126_v47  ;;  %v9123_v63 = vunpack.i.h.bf16 %v9121_v15  ;;  %v9122_v19 = vunpack.i.l.bf16 %v9121_v15  ;;  %8811 = vmatprep.subr.bf16.mxu1 %v8810_v9 }
0x1cb8   :  { %8813 = vmatpush3.bf16.msra.mxu1 %v8810_v9 }
0x1cb9   :  { %v9338_v29 = vpop.eup %9337  ;;  %v8834_v52 = vpack.c.bf16 %v9128_v42, %v9127_v44  ;;  %v8820_v60 = vpack.c.bf16 %v9123_v63, %v9122_v19 }
0x1cba   :  { %v6367_v48 = vpop.permute.xlu1 %6366  ;;  %v5830_v59 = vmul.f32 %v9338_v29, %v9330_v50 }
0x1cbb   :  { %8500 = vmatmul.mubr.msk.f32.vlgmr.msra.gmra.mrb[46].mxu1 %vm596_vm7, %v5629_v41  ;;  %8821 = vmatprep.subr.bf16.mxu1 %v8820_v60 }
0x1cbc   :  { %8836 = vmatprep.subr.msk.bf16.mxu0 %vm9687_vm6, %v8834_v52  ;;  %8549 = vmatprep.mubr.msk.f32.mxu0 %vm510_vm5, %v6367_v48 }
0x1cbd   :  { %v9340_v6 = vpop.eup %9339  ;;  %8823 = vmatpush3.bf16.msra.mxu1 %v8820_v60  ;;  %8513 = vmatprep.mubr.msk.f32.mxu1 %vm596_vm7, %v5830_v59 }
0x1cbe   :  { %v5831_v33 = vmul.f32 %v9340_v6, %v9332_v31  ;;  %8839 = vmatpush3.bf16.xpose.msk.msra.mxu0 %vm9687_vm6, %v8834_v52  ;;  %8516 = vmatprep.subr.mxu1 %v10466_v39  ;;  %v6369_v1 = vpop.permute.xlu1 %6368 }
0x1cc0   :  { %8514 = vmatmul.mubr.msk.f32.vlgmr.msra.gmra.mrb[48].mxu1 %vm596_vm7, %v5831_v33 }
0x1cc1   :  { %8517 = vmatpush3.msra.mxu1 %v10466_v39 }
0x1cc2   :  { %8521 = vmatprep.subr.mxu1 %v10471_v16 }
0x1cc5   :  { %8550 = vmatmul.mubr.msk.f32.vlgmr.msra.gmra.mrb[58].mxu0 %vm510_vm5, %v6369_v1 }
0x1cef   :  { %v6179_v37 = vpop.xlane.xlu1 %6178  ;;  %v6176_v58 = vpop.xlane.xlu0 %6175 }
0x1cf0   :  { %v6181_v14 = vsub.f32 %v10589_v54, %v6179_v37  ;;  %v6180_v35 = vsub.f32 %v6172_v22, %v6176_v58 }
0x1cf2   :  { %v6182_v61 = vmul.f32 1.442695, %v6180_v35  ;;  %v6184_v10 = vmul.f32 1.442695, %v6181_v14 }
0x1cf3   :  { %v9136_v46 = vpop.permute.xlu1 %9135 }
0x1cf4   :  { %v9138_v51 = vunpack.i.h.bf16 %v9136_v46  ;;  %v9137_v18 = vunpack.i.l.bf16 %v9136_v46  ;;  %9341 = vpow2.f32 %v6182_v61 }
0x1cf5   :  { %9343 = vpow2.f32 %v6184_v10 }
0x1cf6   :  { %v8844_v50 = vpack.c.bf16 %v9138_v51, %v9137_v18 }
0x1cf7   :  { %v6652_v30 = vpop.permute.xlu1 %6651 }
0x1cf8   :  { %8846 = vmatprep.subr.msk.bf16.mxu0 %vm9687_vm6, %v8844_v50  ;;  %8568 = vmatprep.mubr.msk.f32.mxu0 %vm510_vm5, %v6652_v30 }
0x1cf9   :  { %8849 = vmatpush3.bf16.xpose.msk.msra.mxu0 %vm9687_vm6, %v8844_v50  ;;  %v10655_v50 = vld [vmem:[%s10961_s11 + $0x1] ss:$0 sm:$0xff] }
0x1cfb   :  { %v6654_v31 = vpop.permute.xlu1 %6653 }
0x1cfe   :  { %v9342_v39 = vpop.eup %9341 }
0x1cff   :  { %v6186_v12 = vsel %vm596_vm7, %v9342_v39, 0.0  ;;  %v9344_v43 = vpop.eup %9343 }
0x1d00   :  { %8569 = vmatmul.mubr.msk.f32.vlgmr.msra.gmra.mrb[60].mxu0 %vm510_vm5, %v6654_v31  ;;  %6187 = vadd.xlane.f32.xlu0 %v6186_v12  ;;  %v6189_v13 = vsel %vm596_vm7, %v9344_v43, 0.0 }
0x1d01   :  { %7128 = vmatprep.mubr.f32.mxu0 %v9445_v40 }
0x1d04   :  { %6190 = vadd.xlane.f32.xlu0 %v6189_v13 }
0x1d1a   :  { %9130 = vrot.lane.b32.xlu0 %v10453_v4, %s11017_s29 }
0x1d42   :  { %v10629_v54 = vpop.f32.mrb[38].mxu1 }
0x1d43   :  { %v10631_v56 = vpop.f32.mrb[39].mxu1 }
0x1d44   :  { %v6936_v18 = vadd.f32 %v10631_v56, %v10258_v17 }
0x1d8d   :  { %v6188_v2 = vpop.xlane.xlu0 %6187 }
0x1d8e   :  { %v8501_v22 = vpop.f32.mrb[46].mxu1  ;;  %9345 = vrcp.f32 %v6188_v2 }
0x1d8f   :  { %v5708_v20 = vpop.f32.mrb[47].mxu1 }
0x1d91   :  { %v6191_v26 = vpop.xlane.xlu0 %6190 }
0x1d92   :  { %9347 = vrcp.f32 %v6191_v26 }
0x1d93   :  { %v8515_v38 = vpop.f32.mrb[48].mxu1 }
0x1d94   :  { %v5910_v34 = vpop.f32.mrb[49].mxu1 }
0x1d95   :  { %8518 = vmatprep.mubr.msk.f32.mxu1 %vm510_vm5, %v5910_v34  ;;  %v9131_v11 = vpop.permute.xlu0 %9130 }
0x1d96   :  { %8519 = vmatmul.mubr.msk.f32.vlgmr.msra.gmra.mrb[50].mxu1 %vm510_vm5, %v8515_v38  ;;  %v9133_v21 = vunpack.i.h.bf16 %v9131_v11  ;;  %v9132_v23 = vunpack.i.l.bf16 %v9131_v11 }
0x1d97   :  { %8523 = vmatprep.mubr.msk.f32.mxu1 %vm510_vm5, %v5708_v20  ;;  %8522 = vmatpush3.msra.mxu1 %v10471_v16 }
0x1d98   :  { %v8551_v7 = vpop.f32.mrb[58].mxu0  ;;  %v8830_v5 = vpack.c.bf16 %v9133_v21, %v9132_v23  ;;  %v9346_v45 = vpop.eup %9345 }
0x1d99   :  { %v6458_v32 = vmul.f32 0.15811388, %v8551_v7  ;;  %v6448_v24 = vpop.f32.mrb[59].mxu0  ;;  %v6194_v42 = vmul.f32 %v9346_v45, %v9342_v39  ;;  %v10658_v39 = vadd.f32 %v10655_v50, %v6936_v18  ;;  %v7852_v18 = vld [vmem:[%s10964_s14 + $0x60] sm:$0xff] }
0x1d9a   :  { %v6457_v9 = vmul.f32 0.15811388, %v6448_v24  ;;  %8831 = vmatprep.subr.bf16.mxu1 %v8830_v5 }
0x1d9b   :  { %v6462_v36 = vsel %vm596_vm7, %v6458_v32, -inf  ;;  %v6956_v31 = vsel %vm316_vm4, %v10658_v39, 0.0 }
0x1d9c   :  { %6463 = vmax.xlane.f32.xlu1 %v6462_v36  ;;  %v6459_v47 = vsel %vm596_vm7, %v6457_v9, -inf  ;;  %v9348_v15 = vpop.eup %9347 }
0x1d9d   :  { %6460 = vmax.xlane.f32.xlu0 %v6459_v47  ;;  %v6195_v16 = vmul.f32 %v9348_v15, %v9344_v43 }
0x1d9e   :  { %8524 = vmatmul.mubr.msk.f32.vlgmr.msra.gmra.mrb[50].mxu1 %vm510_vm5, %v8501_v22  ;;  %v6937_v22 = vadd.f32 %v10629_v54, %v10261_v62 }
0x1d9f   :  { %8833 = vmatpush3.bf16.msra.mxu1 %v8830_v5  ;;  %8537 = vmatprep.mubr.msk.f32.mxu1 %vm596_vm7, %v6194_v42 }
0x1da0   :  { %8540 = vmatprep.subr.mxu1 %v10519_v25  ;;  %v6949_v20 = vadd.f32 %v10655_v50, %v6937_v22  ;;  %v7858_v22 = vld [vmem:[%s10964_s14 + $0x90] sm:$0xff] }
0x1da2   :  { %8538 = vmatmul.mubr.msk.f32.vlgmr.msra.gmra.mrb[52].mxu1 %vm596_vm7, %v6195_v16  ;;  %v6959_v26 = vsel %vm316_vm4, %v6949_v20, 0.0 }
0x1da3   :  { %8541 = vmatpush3.msra.mxu1 %v10519_v25 }
0x1dd3   :  { %v8570_v44 = vpop.f32.mrb[60].mxu0 }
0x1dd4   :  { %v6733_v63 = vpop.f32.mrb[61].mxu0  ;;  %v6743_v29 = vmul.f32 0.15811388, %v8570_v44 }
0x1dd5   :  { %v6742_v19 = vmul.f32 0.15811388, %v6733_v63 }
0x1dd6   :  { %v6747_v52 = vsel %vm596_vm7, %v6743_v29, -inf }
0x1dd7   :  { %v6744_v41 = vsel %vm596_vm7, %v6742_v19, -inf }
0x1dd8   :  { %6745 = vmax.xlane.f32.xlu1 %v6744_v41 }
0x1ddc   :  { %6748 = vmax.xlane.f32.xlu1 %v6747_v52 }
0x1e29   :  { %v6464_v60 = vpop.xlane.xlu1 %6463 }
0x1e2a   :  { %v6466_v48 = vsub.f32 %v6458_v32, %v6464_v60  ;;  %v6461_v59 = vpop.xlane.xlu0 %6460 }
0x1e2b   :  { %v6465_v6 = vsub.f32 %v6457_v9, %v6461_v59 }
0x1e2c   :  { %v6469_v33 = vmul.f32 1.442695, %v6466_v48 }
0x1e2d   :  { %v6467_v1 = vmul.f32 1.442695, %v6465_v6 }
0x1e2f   :  { %9349 = vpow2.f32 %v6467_v1 }
0x1e30   :  { %9351 = vpow2.f32 %v6469_v33 }
0x1e39   :  { %v9350_v37 = vpop.eup %9349 }
0x1e3a   :  { %v6471_v25 = vsel %vm596_vm7, %v9350_v37, 0.0  ;;  %v9352_v58 = vpop.eup %9351 }
0x1e3b   :  { %6472 = vadd.xlane.f32.xlu0 %v6471_v25  ;;  %v6474_v14 = vsel %vm596_vm7, %v9352_v58, 0.0 }
0x1e3f   :  { %6475 = vadd.xlane.f32.xlu0 %v6474_v14 }
0x1e55   :  { %9140 = vrot.lane.b32.xlu0 %v10453_v4, %s11019_s26  ;;  %s9449_s26 = smov [#allocation2]  }
0x1e56   :  { %s7625_s28 = sshll.u32 %s9449_s26, 4  ;;  %s7626_s28 = int_to_ptr.vmem [resolvable:$true] %s7625_s28 }
0x1e57   :  { %p9412_p1 = scmp.lt.s32.totalorder %s7626_s28, %s7626_s28 }
0x1e65   :  { %v6746_v35 = vpop.xlane.xlu1 %6745 }
0x1e66   :  { %v6750_v61 = vsub.f32 %v6742_v19, %v6746_v35 }
0x1e68   :  { %v6752_v10 = vmul.f32 1.442695, %v6750_v61 }
0x1e69   :  { %v6749_v46 = vpop.xlane.xlu1 %6748 }
0x1e6a   :  { %9353 = vpow2.f32 %v6752_v10  ;;  %v6751_v51 = vsub.f32 %v6743_v29, %v6749_v46  ;;  %v7853_v10 = vld [vmem:[%s10964_s14 + $0x68] sm:$0xff] }
0x1e6c   :  { %v6754_v30 = vmul.f32 1.442695, %v6751_v51  ;;  %v7850_v51 = vld [vmem:[%s10964_s14 + $0x50] sm:$0xff] }
0x1e6e   :  { %9355 = vpow2.f32 %v6754_v30  ;;  %v8856_v30 = vpack.c.bf16 %v7852_v18, %v7850_v51 }
0x1e74   :  { %v9354_v12 = vpop.eup %9353  ;;  %6957 = vadd.xlane.f32.xlu0 %v6956_v31  ;;  %v7855_v31 = vld [vmem:[%s10964_s14 + $0x78] sm:$0xff] }
0x1e75   :  { %v8539_v43 = vpop.f32.mrb[52].mxu1  ;;  %v6756_v13 = vsel %vm596_vm7, %v9354_v12, 0.0 }
0x1e76   :  { %6757 = vadd.xlane.f32.xlu1 %v6756_v13  ;;  %v6274_v17 = vpop.f32.mrb[53].mxu1  ;;  %v7854_v13 = vld [vmem:[%s10964_s14 + $0x70] sm:$0xff] }
0x1e77   :  { %8542 = vmatprep.mubr.msk.f32.mxu1 %vm510_vm5, %v6274_v17  ;;  %v7856_v17 = vld [vmem:[%s10964_s14 + $0x80] sm:$0xff] }
0x1e78   :  { %v9356_v56 = vpop.eup %9355  ;;  %8543 = vmatmul.mubr.msk.f32.vlgmr.msra.gmra.mrb[50].mxu1 %vm510_vm5, %v8539_v43 }
0x1e79   :  { %v6759_v2 = vsel %vm596_vm7, %v9356_v56, 0.0 }
0x1e7a   :  { %6760 = vadd.xlane.f32.xlu1 %v6759_v2  ;;  %v7859_v2 = vld [vmem:[%s10964_s14 + $0x98] sm:$0xff] }
0x1e8b   :  { %9145 = vrot.lane.b32.xlu1 %v10453_v4, %s11018_s7 }
0x1eaf   :  { %6960 = vadd.xlane.f32.xlu1 %v6959_v26 }
0x1ec8   :  { %v6473_v38 = vpop.xlane.xlu0 %6472 }
0x1ec9   :  { %9357 = vrcp.f32 %v6473_v38 }
0x1ecc   :  { %v6476_v34 = vpop.xlane.xlu0 %6475 }
0x1ecd   :  { %9359 = vrcp.f32 %v6476_v34 }
0x1ed0   :  { %v9141_v11 = vpop.permute.xlu0 %9140 }
0x1ed1   :  { %v9143_v21 = vunpack.i.h.bf16 %v9141_v11  ;;  %v9142_v23 = vunpack.i.l.bf16 %v9141_v11 }
0x1ed3   :  { %v9358_v7 = vpop.eup %9357  ;;  %v8840_v5 = vpack.c.bf16 %v9143_v21, %v9142_v23 }
0x1ed4   :  { %v6479_v32 = vmul.f32 %v9358_v7, %v9350_v37 }
0x1ed5   :  { %8841 = vmatprep.subr.bf16.mxu1 %v8840_v5 }
0x1ed6   :  { %8843 = vmatpush3.bf16.msra.mxu1 %v8840_v5  ;;  %8556 = vmatprep.mubr.msk.f32.mxu1 %vm596_vm7, %v6479_v32 }
0x1ed7   :  { %v9360_v62 = vpop.eup %9359  ;;  %8559 = vmatprep.subr.mxu1 %v10539_v0 }
0x1ed8   :  { %v6480_v4 = vmul.f32 %v9360_v62, %v9352_v58 }
0x1eda   :  { %8557 = vmatmul.mubr.msk.f32.vlgmr.msra.gmra.mrb[54].mxu1 %vm596_vm7, %v6480_v4 }
0x1edb   :  { %8560 = vmatpush3.msra.mxu1 %v10539_v0 }
0x1f01   :  { %v6958_v41 = vpop.xlane.xlu0 %6957 }
0x1f02   :  { %v6968_v52 = vmul.f32 0.025, %v6958_v41  ;;  %v7868_v41 = vld [vmem:[%s10966_s16 + $0xb8] sm:$0xff] }
0x1f03   :  { %v6758_v54 = vpop.xlane.xlu1 %6757 }
0x1f04   :  { %9361 = vrcp.f32 %v6758_v54  ;;  %v6972_v6 = vsub.f32 %v10658_v39, %v6968_v52 }
0x1f06   :  { %v6976_v58 = vmul.f32 %v6972_v6, %v6972_v6 }
0x1f07   :  { %v6761_v24 = vpop.xlane.xlu1 %6760 }
0x1f08   :  { %9363 = vrcp.f32 %v6761_v24  ;;  %v6980_v14 = vsel %vm316_vm4, %v6976_v58, 0.0 }
0x1f0b   :  { %v9146_v45 = vpop.permute.xlu1 %9145 }
0x1f0c   :  { %v9148_v9 = vunpack.i.h.bf16 %v9146_v45  ;;  %v9147_v36 = vunpack.i.l.bf16 %v9146_v45  ;;  %v10740_v45 = vld [vmem:[%s10962_s12 + $0x1] ss:$0 sm:$0xff] }
0x1f0e   :  { %v8850_v47 = vpack.c.bf16 %v9148_v9, %v9147_v36  ;;  %v9362_v15 = vpop.eup %9361  ;;  %v10745_v9 = vld [vmem:[%s10963_s13 + $0x1] ss:$0 sm:$0xff] }
0x1f0f   :  { %v6764_v63 = vmul.f32 %v9362_v15, %v9354_v12  ;;  %v7857_v12 = vld [vmem:[%s10964_s14 + $0x88] sm:$0xff] }
0x1f10   :  { %8851 = vmatprep.subr.bf16.mxu1 %v8850_v47  ;;  %v8858_v43 = vpack.c.bf16 %v7857_v12, %v7855_v31  ;;  %v7880_v31 = vld [vmem:[%s10966_s16 + $0x118] sm:$0xff] }
0x1f12   :  { %v9364_v44 = vpop.eup %9363 }
0x1f13   :  { %v6765_v0 = vmul.f32 %v9364_v44, %v9356_v56  ;;  %v8860_v56 = vpack.c.bf16 %v7856_v17, %v7854_v13 }
0x1f3c   :  { %v6961_v60 = vpop.xlane.xlu1 %6960 }
0x1f3d   :  { %v6969_v33 = vmul.f32 0.025, %v6961_v60  ;;  %v7869_v60 = vld [vmem:[%s10966_s16 + $0xc0] sm:$0xff] }
0x1f3f   :  { %v6973_v37 = vsub.f32 %v6949_v20, %v6969_v33  ;;  %v7872_v33 = vld [vmem:[%s10966_s16 + $0xd8] sm:$0xff] }
0x1f41   :  { %v6977_v35 = vmul.f32 %v6973_v37, %v6973_v37 }
0x1f43   :  { %v6983_v61 = vsel %vm316_vm4, %v6977_v35, 0.0  ;;  %v7876_v35 = vld [vmem:[%s10966_s16 + $0xf8] sm:$0xff] }
0x1fad   :  { %v8558_v42 = vpop.f32.mrb[54].mxu1 }
0x1fae   :  { %v6559_v16 = vpop.f32.mrb[55].mxu1 }
0x1faf   :  { %8561 = vmatprep.mubr.msk.f32.mxu1 %vm510_vm5, %v6559_v16 }
0x1fb0   :  { %8562 = vmatmul.mubr.msk.f32.vlgmr.msra.gmra.mrb[50].mxu1 %vm510_vm5, %v8558_v42 }
0x1fb1   :  { %8853 = vmatpush3.bf16.msra.mxu1 %v8850_v47  ;;  %8575 = vmatprep.mubr.msk.f32.mxu1 %vm596_vm7, %v6764_v63  ;;  %v7865_v63 = vld [vmem:[%s10966_s16 + $0xa0] sm:$0xff] }
0x1fb2   :  { %8578 = vmatprep.subr.mxu1 %v10573_v27 }
0x1fb4   :  { %8576 = vmatmul.mubr.msk.f32.vlgmr.msra.gmra.mrb[56].mxu1 %vm596_vm7, %v6765_v0  ;;  %v7866_v0 = vld [vmem:[%s10966_s16 + $0xa8] sm:$0xff] }
0x1fb5   :  { %8579 = vmatpush3.msra.mxu1 %v10573_v27 }
0x1fb6   :  { %8862 = vmatprep.subr.bf16.mxu1 %v9446_v8 }
0x2087   :  { %v8577_v19 = vpop.f32.mrb[56].mxu1 }
0x2088   :  { %v6844_v29 = vpop.f32.mrb[57].mxu1 }
0x2089   :  { %8580 = vmatprep.mubr.msk.f32.mxu1 %vm510_vm5, %v6844_v29  ;;  %v7867_v29 = vld [vmem:[%s10966_s16 + $0xb0] sm:$0xff] }
0x208a   :  { %8581 = vmatmul.mubr.msk.f32.vlgmr.msra.gmra.mrb[50].mxu1 %vm510_vm5, %v8577_v19  ;;  %v8863_v19 = vpack.c.bf16 %v7866_v0, %v7865_v63  ;;  %v8866_v52 = vpack.c.bf16 %v7868_v41, %v7867_v29 }
0x208c   :  { %8864 = vmatpush1.bf16.msra.mxu1 %v8863_v19 }
0x208d   :  { %8865 = vmatprep.subr.bf16.mxu1 %v9446_v8 }
0x2090   :  { %8867 = vmatpush1.bf16.msra.mxu1 %v8866_v52 }
0x2091   :  { %8868 = vmatprep.subr.bf16.mxu1 %v9446_v8 }
0x215d   :  { %v8582_v48 = vpop.f32.mrb[50].mxu1 }
0x215e   :  { %v6925_v59 = vpop.f32.mrb[51].mxu1  ;;  %v6939_v38 = vadd.f32 %v8582_v48, %v10308_v49  ;;  %v7870_v48 = vld [vmem:[%s10966_s16 + $0xc8] sm:$0xff] }
0x215f   :  { %v6938_v1 = vadd.f32 %v6925_v59, %v10302_v3  ;;  %v7851_v3 = vld [vmem:[%s10964_s14 + $0x58] sm:$0xff]  ;;  %v8869_v59 = vpack.c.bf16 %v7870_v48, %v7869_v60 }
0x2160   :  { %v8854_v46 = vpack.c.bf16 %v7853_v10, %v7851_v3  ;;  %v10732_v7 = vadd.f32 %v10655_v50, %v6939_v38  ;;  %v7877_v3 = vld [vmem:[%s10966_s16 + $0x100] sm:$0xff]  ;;  %v7878_v10 = vld [vmem:[%s10966_s16 + $0x108] sm:$0xff]  ;;  %v7883_v38 = vld [vmem:[%s10966_s16 + $0x130] sm:$0xff] }
0x2161   :  { %v10688_v27 = vadd.f32 %v10655_v50, %v6938_v1  ;;  %8870 = vmatpush1.bf16.msra.mxu1 %v8869_v59 }
0x2162   :  { %8855 = vmatprep.subr.bf16.mxu0 %v8854_v46  ;;  %v6965_v49 = vsel %vm316_vm4, %v10732_v7, 0.0  ;;  %8871 = vmatprep.subr.bf16.mxu1 %v9446_v8  ;;  %v8881_v46 = vpack.c.bf16 %v7878_v10, %v7877_v3 }
0x2163   :  { %v6962_v25 = vsel %vm316_vm4, %v10688_v27, 0.0  ;;  %8857 = vmatpush1.bf16.msra.mxu0 %v8856_v30  ;;  %v7879_v30 = vld [vmem:[%s10966_s16 + $0x110] sm:$0xff] }
0x2164   :  { %6963 = vadd.xlane.f32.xlu0 %v6962_v25  ;;  %8859 = vmatprep.subr.bf16.mxu0 %v8858_v43  ;;  %v7874_v25 = vld [vmem:[%s10966_s16 + $0xe8] sm:$0xff]  ;;  %v8884_v12 = vpack.c.bf16 %v7880_v31, %v7879_v30 }
0x2167   :  { %8861 = vmatpush1.bf16.msra.mxu0 %v8860_v56  ;;  %v7881_v56 = vld [vmem:[%s10966_s16 + $0x120] sm:$0xff] }
0x2168   :  { %6981 = vadd.xlane.f32.xlu0 %v6980_v14  ;;  %7072 = vmatprep.subr.mxu0 %v7859_v2  ;;  %v7875_v14 = vld [vmem:[%s10966_s16 + $0xf0] sm:$0xff]  ;;  %v7882_v2 = vld [vmem:[%s10966_s16 + $0x128] sm:$0xff] }
0x216b   :  { %7073 = vmatpush1.msra.mxu0 %v7858_v22  ;;  %v8887_v22 = vpack.c.bf16 %v7882_v2, %v7881_v56 }
0x216c   :  { %6984 = vadd.xlane.f32.xlu0 %v6983_v61  ;;  %8892 = vmatprep.subr.bf16.mxu0 %v9446_v8  ;;  %v8878_v61 = vpack.c.bf16 %v7876_v35, %v7875_v14 }
0x21f1   :  { %v6964_v20 = vpop.xlane.xlu0 %6963 }
0x21f2   :  { %v6970_v26 = vmul.f32 0.025, %v6964_v20 }
0x21f4   :  { %v10727_v34 = vsub.f32 %v10688_v27, %v6970_v26 }
0x21f5   :  { %v6982_v11 = vpop.xlane.xlu0 %6981 }
0x21f6   :  { %v6992_v21 = vmul.f32 0.025, %v6982_v11  ;;  %v6978_v23 = vmul.f32 %v10727_v34, %v10727_v34  ;;  %v7884_v11 = vld [vmem:[%s10966_s16 + $0x138] sm:$0xff] }
0x21f8   :  { %v6996_v5 = vadd.f32 1e-05, %v6992_v21  ;;  %v6986_v32 = vsel %vm316_vm4, %v6978_v23, 0.0  ;;  %v8890_v21 = vpack.c.bf16 %v7884_v11, %v7883_v38 }
0x21f9   :  { %6987 = vadd.xlane.f32.xlu0 %v6986_v32  ;;  %v6985_v62 = vpop.xlane.xlu0 %6984 }
0x21fa   :  { %9365 = vrsqrt.f32 %v6996_v5  ;;  %v6993_v4 = vmul.f32 0.025, %v6985_v62 }
0x21fc   :  { %v6997_v54 = vadd.f32 1e-05, %v6993_v4  ;;  %v7860_v4 = vld [vmem:[%s10965_s15 + $0x2] sm:$0x3] }
0x21fd   :  { %6966 = vadd.xlane.f32.xlu0 %v6965_v49  ;;  %v10844_v49 = vrot.slane %v7860_v4, %v3451_v57 }
0x21fe   :  { %9367 = vrsqrt.f32 %v6997_v54  ;;  %v10840_v54 = vrot.slane %v7860_v4, %v3447_v28 }
0x2204   :  { %v9366_v24 = vpop.eup %9365 }
0x2205   :  { %v7004_v50 = vmul.f32 %v9366_v24, %v6972_v6  ;;  %v7871_v6 = vld [vmem:[%s10966_s16 + $0xd0] sm:$0xff] }
0x2206   :  { %v8872_v1 = vpack.c.bf16 %v7872_v33, %v7871_v6 }
0x2207   :  { %v7014_v36 = vmul.f32 %v10740_v45, %v7004_v50 }
0x2208   :  { %v9368_v47 = vpop.eup %9367  ;;  %8873 = vmatpush1.bf16.msra.mxu1 %v8872_v1 }
0x2209   :  { %v7024_v15 = vadd.f32 %v10745_v9, %v7014_v36  ;;  %v7005_v42 = vmul.f32 %v9368_v47, %v6973_v37  ;;  %8874 = vmatprep.subr.bf16.mxu1 %v9446_v8  ;;  %v7873_v37 = vld [vmem:[%s10966_s16 + $0xe0] sm:$0xff] }
0x220a   :  { %v8875_v58 = vpack.c.bf16 %v7874_v25, %v7873_v37 }
0x220b   :  { %7861 = vmatmul.mubr.msk.f32.vlgmr.msra.gmra.mrb[62].mxu0 %vm316_vm4, %v7024_v15  ;;  %v7015_v16 = vmul.f32 %v10740_v45, %v7005_v42 }
0x220c   :  { %7134 = vmatprep.mubr.f32.mxu0 %v9445_v40  ;;  %8876 = vmatpush1.bf16.msra.mxu1 %v8875_v58 }
0x220d   :  { %v7025_v44 = vadd.f32 %v10745_v9, %v7015_v16  ;;  %8877 = vmatprep.subr.bf16.mxu1 %v9446_v8 }
0x220f   :  { %7862 = vmatmul.mubr.msk.f32.gmra.mrb[64].mxu0 %vm316_vm4, %v7025_v44 }
0x2210   :  { %7140 = vmatprep.mubr.f32.mxu0 %v9445_v40  ;;  %8879 = vmatpush1.bf16.msra.mxu1 %v8878_v61 }
0x2211   :  { %8880 = vmatprep.subr.bf16.mxu1 %v9446_v8 }
0x2214   :  { %8882 = vmatpush1.bf16.msra.mxu1 %v8881_v46 }
0x2215   :  { %8883 = vmatprep.subr.bf16.mxu1 %v9446_v8 }
0x2218   :  { %8885 = vmatpush1.bf16.msra.mxu1 %v8884_v12 }
0x2219   :  { %8886 = vmatprep.subr.bf16.mxu1 %v9446_v8 }
0x221c   :  { %8888 = vmatpush1.bf16.msra.mxu1 %v8887_v22 }
0x221d   :  { %8889 = vmatprep.subr.bf16.mxu1 %v9446_v8 }
0x2220   :  { %8891 = vmatpush1.bf16.msra.mxu1 %v8890_v21 }
0x2286   :  { %v6988_v51 = vpop.xlane.xlu0 %6987 }
0x2287   :  { %v6994_v18 = vmul.f32 0.025, %v6988_v51 }
0x2289   :  { %v6998_v43 = vadd.f32 1e-05, %v6994_v18 }
0x228a   :  { %v6967_v13 = vpop.xlane.xlu0 %6966 }
0x228b   :  { %9369 = vrsqrt.f32 %v6998_v43  ;;  %v6971_v17 = vmul.f32 0.025, %v6967_v13 }
0x228d   :  { %v10818_v20 = vsub.f32 %v10732_v7, %v6971_v17 }
0x228f   :  { %v6979_v26 = vmul.f32 %v10818_v20, %v10818_v20 }
0x2291   :  { %v6989_v23 = vsel %vm316_vm4, %v6979_v26, 0.0 }
0x2292   :  { %6990 = vadd.xlane.f32.xlu1 %v6989_v23 }
0x2295   :  { %v9370_v7 = vpop.eup %9369 }
0x2296   :  { %v7006_v5 = vmul.f32 %v9370_v7, %v10727_v34 }
0x2298   :  { %v7016_v32 = vmul.f32 %v10740_v45, %v7006_v5 }
0x229a   :  { %v7026_v62 = vadd.f32 %v10745_v9, %v7016_v32 }
0x229c   :  { %7863 = vmatmul.mubr.msk.f32.gmra.mrb[66].mxu0 %vm316_vm4, %v7026_v62 }
0x229d   :  { %7146 = vmatprep.mubr.f32.mxu0 %v9445_v40 }
0x22de   :  { %v7130_v34 = vpop.f32.mrb[62].mxu0 }
0x22df   :  { %v10847_v24 = vadd.f32 %v7130_v34, %v10840_v54  ;;  %v7132_v50 = vpop.f32.mrb[63].mxu0 }
0x22e0   :  { %v10850_v36 = vadd.f32 %v7132_v50, %v10844_v49 }
0x22e1   :  { %v10853_v47 = vmul.f32 0.70710677, %v10847_v24 }
0x22e2   :  { %v10856_v15 = vmul.f32 0.70710677, %v10850_v36  ;;  %v7136_v28 = vpop.f32.mrb[64].mxu0 }
0x22e3   :  { %v7185_v42 = vand.u32 2147483647, %v10853_v47  ;;  %v10860_v53 = vadd.f32 %v7136_v28, %v10840_v54  ;;  %v7138_v57 = vpop.f32.mrb[65].mxu0  ;;  %vm7169_vm1 = vcmp.lt.f32.partialorder %v10853_v47, 0.0 }
0x22e4   :  { %v7186_v16 = vand.u32 2147483647, %v10856_v15  ;;  %v10864_v44 = vadd.f32 %v7138_v57, %v10844_v49  ;;  %vm7170_vm2 = vcmp.lt.f32.partialorder %v10856_v15, 0.0 }
0x22e5   :  { %v7193_v63 = vmul.f32 0.3275911, %v7185_v42  ;;  %v10867_v19 = vmul.f32 0.70710677, %v10860_v53  ;;  %v7297_v1 = vsub.f32 0.0, %v7185_v42 }
0x22e6   :  { %v7194_v0 = vmul.f32 0.3275911, %v7186_v16  ;;  %v10870_v41 = vmul.f32 0.70710677, %v10864_v44  ;;  %v7298_v25 = vsub.f32 0.0, %v7186_v16 }
0x22e7   :  { %v7201_v29 = vadd.f32 1.0, %v7193_v63  ;;  %v7187_v60 = vand.u32 2147483647, %v10867_v19  ;;  %v7305_v14 = vmul.f32 %v7297_v1, %v7185_v42  ;;  %vm7171_vm3 = vcmp.lt.f32.partialorder %v10867_v19, 0.0 }
0x22e8   :  { %v7202_v52 = vadd.f32 1.0, %v7194_v0  ;;  %v7188_v59 = vand.u32 2147483647, %v10870_v41  ;;  %v7306_v3 = vmul.f32 %v7298_v25, %v7186_v16  ;;  %vm7172_vm5 = vcmp.lt.f32.partialorder %v10870_v41, 0.0 }
0x22e9   :  { %9371 = vrcp.f32 %v7201_v29  ;;  %v7195_v48 = vmul.f32 0.3275911, %v7187_v60  ;;  %v7299_v10 = vsub.f32 0.0, %v7187_v60  ;;  %v7313_v18 = vmul.f32 1.442695, %v7305_v14 }
0x22ea   :  { %9373 = vrcp.f32 %v7202_v52  ;;  %v7196_v33 = vmul.f32 0.3275911, %v7188_v59  ;;  %v7300_v31 = vsub.f32 0.0, %v7188_v59  ;;  %v7315_v13 = vmul.f32 1.442695, %v7306_v3 }
0x22eb   :  { %v7203_v6 = vadd.f32 1.0, %v7195_v48  ;;  %v7307_v17 = vmul.f32 %v7299_v10, %v7187_v60  ;;  %v7180_v19 = vsel %vm7172_vm5, -1.0, %v9447_v55 }
0x22ec   :  { %v7204_v37 = vadd.f32 1.0, %v7196_v33  ;;  %v7308_v11 = vmul.f32 %v7300_v31, %v7188_v59 }
0x22ed   :  { %9375 = vrcp.f32 %v7203_v6  ;;  %v7317_v7 = vmul.f32 1.442695, %v7307_v17 }
0x22ee   :  { %9377 = vrcp.f32 %v7204_v37  ;;  %v7319_v28 = vmul.f32 1.442695, %v7308_v11 }
0x22ef   :  { %9379 = vpow2.f32 %v7313_v18  ;;  %v7177_v18 = vsel %vm7169_vm1, -1.0, %v9447_v55 }
0x22f0   :  { %9381 = vpow2.f32 %v7315_v13 }
0x22f1   :  { %9383 = vpow2.f32 %v7317_v7 }
0x22f2   :  { %9385 = vpow2.f32 %v7319_v28 }
0x22f3   :  { %v9372_v58 = vpop.eup %9371 }
0x22f4   :  { %v9374_v35 = vpop.eup %9373  ;;  %v7225_v61 = vmul.f32 1.0614054, %v9372_v58 }
0x22f5   :  { %v7226_v46 = vmul.f32 1.0614054, %v9374_v35 }
0x22f6   :  { %v7233_v51 = vadd.f32 -1.4531521, %v7225_v61 }
0x22f7   :  { %v7234_v30 = vadd.f32 -1.4531521, %v7226_v46  ;;  %v9376_v12 = vpop.eup %9375 }
0x22f8   :  { %v7241_v43 = vmul.f32 %v9372_v58, %v7233_v51  ;;  %v7227_v2 = vmul.f32 1.0614054, %v9376_v12  ;;  %v9378_v26 = vpop.eup %9377 }
0x22f9   :  { %v7242_v56 = vmul.f32 %v9374_v35, %v7234_v30  ;;  %v7228_v5 = vmul.f32 1.0614054, %v9378_v26  ;;  %v9380_v33 = vpop.eup %9379 }
0x22fa   :  { %v7249_v22 = vadd.f32 1.4214138, %v7241_v43  ;;  %v7235_v21 = vadd.f32 -1.4531521, %v7227_v2  ;;  %v9382_v25 = vpop.eup %9381 }
0x22fb   :  { %v7250_v38 = vadd.f32 1.4214138, %v7242_v56  ;;  %v7236_v34 = vadd.f32 -1.4531521, %v7228_v5 }
0x22fc   :  { %v7257_v23 = vmul.f32 %v9372_v58, %v7249_v22  ;;  %v7243_v62 = vmul.f32 %v9376_v12, %v7235_v21  ;;  %v7154_v22 = vmul.f32 0.5, %v10850_v36  ;;  %v7153_v21 = vmul.f32 0.5, %v10847_v24 }
0x22fd   :  { %v7258_v32 = vmul.f32 %v9374_v35, %v7250_v38  ;;  %v7244_v16 = vmul.f32 %v9378_v26, %v7236_v34  ;;  %v7155_v24 = vmul.f32 0.5, %v10860_v53 }
0x22fe   :  { %v7265_v4 = vadd.f32 -0.28449672, %v7257_v23  ;;  %v7251_v42 = vadd.f32 1.4214138, %v7243_v62 }
0x22ff   :  { %v7266_v50 = vadd.f32 -0.28449672, %v7258_v32  ;;  %v7252_v52 = vadd.f32 1.4214138, %v7244_v16 }
0x2300   :  { %v7273_v57 = vmul.f32 %v9372_v58, %v7265_v4  ;;  %v7259_v0 = vmul.f32 %v9376_v12, %v7251_v42  ;;  %v7156_v4 = vmul.f32 0.5, %v10864_v44 }
0x2301   :  { %v7274_v63 = vmul.f32 %v9374_v35, %v7266_v50  ;;  %v7260_v6 = vmul.f32 %v9378_v26, %v7252_v52 }
0x2302   :  { %v7281_v29 = vadd.f32 0.2548296, %v7273_v57  ;;  %v7267_v48 = vadd.f32 -0.28449672, %v7259_v0 }
0x2303   :  { %v7282_v60 = vadd.f32 0.2548296, %v7274_v63  ;;  %v7268_v61 = vadd.f32 -0.28449672, %v7260_v6 }
0x2304   :  { %v7289_v59 = vmul.f32 %v9372_v58, %v7281_v29  ;;  %v7275_v37 = vmul.f32 %v9376_v12, %v7267_v48  ;;  %v9384_v58 = vpop.eup %9383 }
0x2305   :  { %v7290_v1 = vmul.f32 %v9374_v35, %v7282_v60  ;;  %v7276_v51 = vmul.f32 %v9378_v26, %v7268_v61  ;;  %v7178_v35 = vsel %vm7170_vm2, -1.0, %v9447_v55  ;;  %v9386_v15 = vpop.eup %9385 }
0x2306   :  { %v7329_v14 = vmul.f32 %v9380_v33, %v7289_v59  ;;  %v7283_v10 = vadd.f32 0.2548296, %v7275_v37 }
0x2307   :  { %v7330_v3 = vmul.f32 %v9382_v25, %v7290_v1  ;;  %v7284_v13 = vadd.f32 0.2548296, %v7276_v51 }
0x2308   :  { %v7337_v46 = vsub.f32 1.0, %v7329_v14  ;;  %v7291_v31 = vmul.f32 %v9376_v12, %v7283_v10  ;;  %v7179_v12 = vsel %vm7171_vm3, -1.0, %v9447_v55 }
0x2309   :  { %v7338_v30 = vsub.f32 1.0, %v7330_v3  ;;  %v7292_v2 = vmul.f32 %v9378_v26, %v7284_v13 }
0x230a   :  { %v7345_v43 = vmul.f32 %v7337_v46, %v7177_v18  ;;  %v7331_v47 = vmul.f32 %v9384_v58, %v7291_v31 }
0x230b   :  { %v7346_v17 = vmul.f32 %v7338_v30, %v7178_v35  ;;  %v7332_v23 = vmul.f32 %v9386_v15, %v7292_v2 }
0x230c   :  { %v7353_v56 = vadd.f32 1.0, %v7345_v43  ;;  %v7339_v11 = vsub.f32 1.0, %v7331_v47 }
0x230d   :  { %v7354_v38 = vadd.f32 1.0, %v7346_v17  ;;  %v7340_v62 = vsub.f32 1.0, %v7332_v23 }
0x230e   :  { %v7347_v5 = vmul.f32 %v7339_v11, %v7179_v12  ;;  %v7361_v32 = vmul.f32 %v7353_v56, %v7153_v21 }
0x230f   :  { %v7362_v7 = vmul.f32 %v7354_v38, %v7154_v22  ;;  %v7348_v26 = vmul.f32 %v7340_v62, %v7180_v19 }
0x2310   :  { %v7355_v36 = vadd.f32 1.0, %v7347_v5 }
0x2311   :  { %7885 = vmatprep.mubr.msk.f32.mxu1 %vm3792_vm12, %v7362_v7  ;;  %v7356_v34 = vadd.f32 1.0, %v7348_v26 }
0x2312   :  { %7467 = vmatmul.mubr.f32.vlgmr.msra.gmra.mrb[58].mxu1 %v7361_v32  ;;  %v7363_v28 = vmul.f32 %v7355_v36, %v7155_v24 }
0x2313   :  { %v7364_v50 = vmul.f32 %v7356_v34, %v7156_v4 }
0x2315   :  { %7886 = vmatprep.mubr.msk.f32.mxu1 %vm3792_vm12, %v7364_v50 }
0x2316   :  { %7472 = vmatmul.mubr.f32.gmra.mrb[60].mxu1 %v7363_v28 }
0x231f   :  { %v6991_v41 = vpop.xlane.xlu1 %6990 }
0x2320   :  { %v6995_v42 = vmul.f32 0.025, %v6991_v41 }
0x2322   :  { %v6999_v57 = vadd.f32 1e-05, %v6995_v42 }
0x2324   :  { %9387 = vrsqrt.f32 %v6999_v57 }
0x232e   :  { %v9388_v16 = vpop.eup %9387 }
0x232f   :  { %v7007_v63 = vmul.f32 %v9388_v16, %v10818_v20 }
0x2331   :  { %v7017_v0 = vmul.f32 %v10740_v45, %v7007_v63 }
0x2333   :  { %v7027_v29 = vadd.f32 %v10745_v9, %v7017_v0 }
0x2335   :  { %7864 = vmatmul.mubr.msk.f32.gmra.mrb[68].mxu0 %vm316_vm4, %v7027_v29 }
0x236f   :  { %v7142_v44 = vpop.f32.mrb[66].mxu0 }
0x2370   :  { %v7143_v53 = vadd.f32 %v7142_v44, %v10840_v54  ;;  %v7144_v52 = vpop.f32.mrb[67].mxu0 }
0x2371   :  { %v7145_v60 = vadd.f32 %v7144_v52, %v10844_v49 }
0x2372   :  { %v7165_v48 = vmul.f32 0.70710677, %v7143_v53  ;;  %v7157_v42 = vmul.f32 0.5, %v7143_v53 }
0x2373   :  { %v7166_v59 = vmul.f32 0.70710677, %v7145_v60  ;;  %v7158_v28 = vmul.f32 0.5, %v7145_v60 }
0x2374   :  { %v7189_v6 = vand.u32 2147483647, %v7165_v48  ;;  %vm7173_vm6 = vcmp.lt.f32.partialorder %v7165_v48, 0.0 }
0x2375   :  { %v7190_v33 = vand.u32 2147483647, %v7166_v59  ;;  %vm7174_vm7 = vcmp.lt.f32.partialorder %v7166_v59, 0.0  ;;  %v7181_v26 = vsel %vm7173_vm6, -1.0, %v9447_v55 }
0x2376   :  { %v7197_v1 = vmul.f32 0.3275911, %v7189_v6  ;;  %v7301_v45 = vsub.f32 0.0, %v7189_v6  ;;  %v7182_v4 = vsel %vm7174_vm7, -1.0, %v9447_v55 }
0x2377   :  { %v7198_v37 = vmul.f32 0.3275911, %v7190_v33  ;;  %v7302_v9 = vsub.f32 0.0, %v7190_v33 }
0x2378   :  { %v7205_v25 = vadd.f32 1.0, %v7197_v1  ;;  %v7309_v61 = vmul.f32 %v7301_v45, %v7189_v6 }
0x2379   :  { %v7206_v20 = vadd.f32 1.0, %v7198_v37  ;;  %v7310_v10 = vmul.f32 %v7302_v9, %v7190_v33 }
0x237a   :  { %9389 = vrcp.f32 %v7205_v25  ;;  %v7321_v30 = vmul.f32 1.442695, %v7309_v61 }
0x237b   :  { %9391 = vrcp.f32 %v7206_v20  ;;  %v7323_v58 = vmul.f32 1.442695, %v7310_v10 }
0x237c   :  { %9393 = vpow2.f32 %v7321_v30 }
0x237d   :  { %9395 = vpow2.f32 %v7323_v58 }
0x2384   :  { %v9390_v14 = vpop.eup %9389 }
0x2385   :  { %v9392_v3 = vpop.eup %9391  ;;  %v7229_v46 = vmul.f32 1.0614054, %v9390_v14 }
0x2386   :  { %v7230_v51 = vmul.f32 1.0614054, %v9392_v3  ;;  %v9394_v23 = vpop.eup %9393 }
0x2387   :  { %v7237_v18 = vadd.f32 -1.4531521, %v7229_v46  ;;  %v9396_v5 = vpop.eup %9395 }
0x2388   :  { %v7238_v31 = vadd.f32 -1.4531521, %v7230_v51 }
0x2389   :  { %v7245_v43 = vmul.f32 %v9390_v14, %v7237_v18 }
0x238a   :  { %v7246_v35 = vmul.f32 %v9392_v3, %v7238_v31 }
0x238b   :  { %v7253_v13 = vadd.f32 1.4214138, %v7245_v43 }
0x238c   :  { %v7254_v17 = vadd.f32 1.4214138, %v7246_v35 }
0x238d   :  { %v7261_v47 = vmul.f32 %v9390_v14, %v7253_v13 }
0x238e   :  { %v7262_v56 = vmul.f32 %v9392_v3, %v7254_v17 }
0x238f   :  { %v7269_v2 = vadd.f32 -0.28449672, %v7261_v47 }
0x2390   :  { %v7270_v15 = vadd.f32 -0.28449672, %v7262_v56 }
0x2391   :  { %v7277_v22 = vmul.f32 %v9390_v14, %v7269_v2 }
0x2392   :  { %v7278_v38 = vmul.f32 %v9392_v3, %v7270_v15 }
0x2393   :  { %v7285_v11 = vadd.f32 0.2548296, %v7277_v22 }
0x2394   :  { %v7286_v21 = vadd.f32 0.2548296, %v7278_v38 }
0x2395   :  { %v7293_v12 = vmul.f32 %v9390_v14, %v7285_v11 }
0x2396   :  { %v7294_v7 = vmul.f32 %v9392_v3, %v7286_v21 }
0x2397   :  { %v7333_v32 = vmul.f32 %v9394_v23, %v7293_v12 }
0x2398   :  { %v7334_v62 = vmul.f32 %v9396_v5, %v7294_v7 }
0x2399   :  { %v7341_v19 = vsub.f32 1.0, %v7333_v32 }
0x239a   :  { %v7342_v36 = vsub.f32 1.0, %v7334_v62 }
0x239b   :  { %v7349_v34 = vmul.f32 %v7341_v19, %v7181_v26 }
0x239c   :  { %v7350_v24 = vmul.f32 %v7342_v36, %v7182_v4 }
0x239d   :  { %v7357_v50 = vadd.f32 1.0, %v7349_v34 }
0x239e   :  { %v7358_v41 = vadd.f32 1.0, %v7350_v24 }
0x239f   :  { %v7365_v16 = vmul.f32 %v7357_v50, %v7157_v42 }
0x23a0   :  { %v7366_v57 = vmul.f32 %v7358_v41, %v7158_v28 }
0x23a2   :  { %7887 = vmatprep.mubr.msk.f32.mxu1 %vm3792_vm12, %v7366_v57 }
0x23a3   :  { %7476 = vmatmul.mubr.f32.gmra.mrb[62].mxu1 %v7365_v16 }
0x23e5   :  { %v10897_v63 = vpop.f32.mrb[58].mxu1 }
0x23e6   :  { %v7470_v0 = vpop.f32.mrb[59].mxu1 }
0x23e7   :  { %v7485_v0 = vadd.f32 %v10897_v63, %v10658_v39 }
0x23e9   :  { %v7473_v29 = vpop.f32.mrb[60].mxu1 }
0x23ea   :  { %v7474_v44 = vpop.f32.mrb[61].mxu1 }
0x2408   :  { %v7148_v52 = vpop.f32.mrb[68].mxu0 }
0x2409   :  { %v7149_v48 = vadd.f32 %v7148_v52, %v10840_v54  ;;  %v7150_v59 = vpop.f32.mrb[69].mxu0 }
0x240a   :  { %v7151_v6 = vadd.f32 %v7150_v59, %v10844_v49 }
0x240b   :  { %v7167_v33 = vmul.f32 0.70710677, %v7149_v48  ;;  %v7159_v41 = vmul.f32 0.5, %v7149_v48 }
0x240c   :  { %v7168_v60 = vmul.f32 0.70710677, %v7151_v6  ;;  %v7160_v50 = vmul.f32 0.5, %v7151_v6 }
0x240d   :  { %v7191_v1 = vand.u32 2147483647, %v7167_v33  ;;  %vm7175_vm8 = vcmp.lt.f32.partialorder %v7167_v33, 0.0 }
0x240e   :  { %v7192_v53 = vand.u32 2147483647, %v7168_v60  ;;  %vm7176_vm9 = vcmp.lt.f32.partialorder %v7168_v60, 0.0  ;;  %v7183_v19 = vsel %vm7175_vm8, -1.0, %v9447_v55 }
0x240f   :  { %v7199_v37 = vmul.f32 0.3275911, %v7191_v1  ;;  %v7303_v9 = vsub.f32 0.0, %v7191_v1  ;;  %v7184_v36 = vsel %vm7176_vm9, -1.0, %v9447_v55  ;;  %v7890_v55 = vld [vmem:[%s10967_s17 + $0x1] ss:$0 sm:$0xff] }
0x2410   :  { %v7200_v25 = vmul.f32 0.3275911, %v7192_v53  ;;  %v7304_v14 = vsub.f32 0.0, %v7192_v53  ;;  %v7495_v59 = vadd.f32 %v7890_v55, %v7485_v0 }
0x2411   :  { %v7207_v20 = vadd.f32 1.0, %v7199_v37  ;;  %v7311_v3 = vmul.f32 %v7303_v9, %v7191_v1  ;;  %v7534_v9 = vld [vmem:[%s10970_s20 + $0x10] sm:$0xff] }
0x2412   :  { %v7208_v45 = vadd.f32 1.0, %v7200_v25  ;;  %v7312_v46 = vmul.f32 %v7304_v14, %v7192_v53  ;;  %v7532_v25 = vld [vmem:[%s10970_s20] sm:$0xff]  ;;  %v7535_v14 = vld [vmem:[%s10970_s20 + $0x18] sm:$0xff] }
0x2413   :  { %9397 = vrcp.f32 %v7207_v20  ;;  %v7325_v49 = vmul.f32 1.442695, %v7311_v3  ;;  %v7533_v20 = vld [vmem:[%s10970_s20 + $0x8] sm:$0xff]  ;;  %v7536_v3 = vld [vmem:[%s10970_s20 + $0x20] sm:$0xff] }
0x2414   :  { %9399 = vrcp.f32 %v7208_v45  ;;  %v7327_v31 = vmul.f32 1.442695, %v7312_v46  ;;  %v8893_v45 = vpack.c.bf16 %v7533_v20, %v7532_v25 }
0x2415   :  { %9401 = vpow2.f32 %v7325_v49  ;;  %v7892_v49 = vld [vmem:[%s10969_s19] ss:$0 sm:$0xff] }
0x2416   :  { %9403 = vpow2.f32 %v7327_v31  ;;  %8894 = vmatpush3.bf16.msra.mxu0 %v8893_v45 }
0x2417   :  { %8895 = vmatprep.subr.bf16.mxu0 %v9446_v8 }
0x241d   :  { %v9398_v61 = vpop.eup %9397 }
0x241e   :  { %v9400_v10 = vpop.eup %9399  ;;  %v7231_v54 = vmul.f32 1.0614054, %v9398_v61 }
0x241f   :  { %v7232_v51 = vmul.f32 1.0614054, %v9400_v10  ;;  %v9402_v12 = vpop.eup %9401 }
0x2420   :  { %v7239_v18 = vadd.f32 -1.4531521, %v7231_v54  ;;  %v9404_v7 = vpop.eup %9403 }
0x2421   :  { %v7240_v30 = vadd.f32 -1.4531521, %v7232_v51  ;;  %v7891_v51 = vld [vmem:[%s10968_s18] ss:$0 sm:$0xff]  ;;  %s9407_s18 = scalar_lea.vmem %s7626_s28, 32 }
0x2422   :  { %v7247_v58 = vmul.f32 %v9398_v61, %v7239_v18  ;;  %p9408_p0 = scmp.ne.s32.totalorder %s7626_s28, %s9407_s18  ;;  %p9413_p2 = scmp.lt.s32.totalorder %s9407_s18, %s9407_s18 }
0x2423   :  { %v7248_v43 = vmul.f32 %v9400_v10, %v7240_v30 }
0x2424   :  { %v7255_v35 = vadd.f32 1.4214138, %v7247_v58  ;;  %p9414_p3 = por %p9413_p2, %p9412_p1 }
0x2425   :  { %v7256_v13 = vadd.f32 1.4214138, %v7248_v43 }
0x2426   :  { %v7263_v17 = vmul.f32 %v9398_v61, %v7255_v35  ;;  %p9415_p4 = pnand %p9414_p3, %p9408_p0 }
0x2427   :  { %v7264_v47 = vmul.f32 %v9400_v10, %v7256_v13 }
0x2428   :  { %v7271_v56 = vadd.f32 -0.28449672, %v7263_v17 }
0x2429   :  { %v7272_v2 = vadd.f32 -0.28449672, %v7264_v47 }
0x242a   :  { %v7279_v15 = vmul.f32 %v9398_v61, %v7271_v56 }
0x242b   :  { %v7280_v22 = vmul.f32 %v9400_v10, %v7272_v2 }
0x242c   :  { %v7287_v38 = vadd.f32 0.2548296, %v7279_v15 }
0x242d   :  { %v7288_v11 = vadd.f32 0.2548296, %v7280_v22 }
0x242e   :  { %v7295_v21 = vmul.f32 %v9398_v61, %v7287_v38  ;;  %v8896_v61 = vpack.c.bf16 %v7535_v14, %v7534_v9 }
0x242f   :  { %v7296_v23 = vmul.f32 %v9400_v10, %v7288_v11 }
0x2430   :  { %v7335_v5 = vmul.f32 %v9402_v12, %v7295_v21  ;;  %8897 = vmatpush3.bf16.msra.mxu0 %v8896_v61 }
0x2431   :  { %v7336_v32 = vmul.f32 %v9404_v7, %v7296_v23  ;;  %8591 = vmatprep.subr.mxu0 %v9445_v40 }
0x2432   :  { %v7343_v62 = vsub.f32 1.0, %v7335_v5 }
0x2433   :  { %v7344_v26 = vsub.f32 1.0, %v7336_v32 }
0x2434   :  { %v7351_v4 = vmul.f32 %v7343_v62, %v7183_v19  ;;  %8592 = vmatpush3.msra.mxu0 %v7536_v3 }
0x2435   :  { %v7352_v34 = vmul.f32 %v7344_v26, %v7184_v36 }
0x2436   :  { %v7359_v24 = vadd.f32 1.0, %v7351_v4 }
0x2437   :  { %v7360_v28 = vadd.f32 1.0, %v7352_v34 }
0x2438   :  { %v7367_v57 = vmul.f32 %v7359_v24, %v7159_v41 }
0x2439   :  { %v7368_v42 = vmul.f32 %v7360_v28, %v7160_v50 }
0x243b   :  { %7888 = vmatprep.mubr.msk.f32.mxu1 %vm3792_vm12, %v7368_v42  ;;  %vm9448_vm12 = vmmov 0  }
0x243c   :  { %7481 = vmatmul.mubr.f32.gmra.mrb[64].mxu1 %v7367_v57  ;;  %8593 = vmatprep.mubr.msk.f32.mxu0 %vm9448_vm12, %v9445_v40  ;;  %v7893_v40 = vld [vmem:[%s10971_s21] ss:$0 sm:$0xff] }
0x2476   :  { %v7477_v16 = vpop.f32.mrb[62].mxu1 }
0x2477   :  { %v7486_v29 = vadd.f32 %v7477_v16, %v10688_v27  ;;  %v7479_v44 = vpop.f32.mrb[63].mxu1 }
0x2479   :  { %v7496_v52 = vadd.f32 %v7890_v55, %v7486_v29 }
0x247b   :  { %v7498_v48 = vrot.slane %v7496_v52, 7 }
0x247d   :  { %v7501_v6 = vsel %vm7500_vm10, %v7495_v59, %v7498_v48 }
0x247e   :  { %v7505_v33 = vsel %vm7504_vm11, %v7501_v6, 0.0 }
0x247f   :  { %7506 = vadd.xlane.f32.xlu0 %v7505_v33 }
0x250c   :  { %v7507_v60 = vpop.xlane.xlu0 %7506 }
0x250d   :  { %v7508_v1 = vmul.f32 0.025, %v7507_v60 }
0x250f   :  { %v7509_v53 = vsub.f32 %v7501_v6, %v7508_v1  ;;  %v7482_v37 = vpop.f32.mrb[64].mxu1 }
0x2510   :  { %v7483_v39 = vpop.f32.mrb[65].mxu1 }
0x2511   :  { %v7510_v63 = vmul.f32 %v7509_v53, %v7509_v53 }
0x2513   :  { %v7511_v27 = vsel %vm7504_vm11, %v7510_v63, 0.0 }
0x2514   :  { %7512 = vadd.xlane.f32.xlu1 %v7511_v27 }
0x25a1   :  { %v7513_v8 = vpop.xlane.xlu1 %7512 }
0x25a2   :  { %v7514_v10 = vmul.f32 0.025, %v7513_v8 }
0x25a4   :  { %v7515_v46 = vadd.f32 1e-05, %v7514_v10 }
0x25a6   :  { %9405 = vrsqrt.f32 %v7515_v46 }
0x25b0   :  { %v9406_v54 = vpop.eup %9405 }
0x25b1   :  { %v7517_v18 = vmul.f32 %v9406_v54, %v7509_v53 }
0x25b3   :  { %v7524_v30 = vmul.f32 %v7891_v51, %v7517_v18 }
0x25b5   :  { %v7531_v31 = vadd.f32 %v7892_v49, %v7524_v30 }
0x25b7   :  { %8594 = vmatmul.mubr.msk.f32.vlgmr.msra.gmra.mrb[70].mxu0 %vm316_vm4, %v7531_v31 }
0x268a   :  { %v7613_v58 = vpop.f32.mrb[70].mxu0 }
0x268b   :  { %v7614_v43 = vadd.f32 %v7893_v40, %v7613_v58  ;;  %v8595_v35 = vpop.f32.mrb[71].mxu0 }
0x268d   :  { %7618 = vst.msk [vmem:[#allocation2] sm:$0x3] %vm7617_vm13, %v7614_v43 }
0x268e   :  { %9418 = shalt.err (!%p9415_p4)
}
0x268f   :  { %s9419_s6 = scalar_lea.hbm %s10972_s22, 32 }
0x2690   :  { %p9420_p5 = scmp.ne.s32.totalorder %s10972_s22, %s9419_s6  ;;  %p9423_p6 = scmp.lt.u32.totalorder %s9419_s6, %s10972_s22 }
0x2692   :  { %p9425_p7 = pnand %p9423_p6, %p9420_p5 }
0x2694   :  { %9428 = shalt.err (!%p9425_p7)
}
0x2695   :  { %7628 = dma.vmem_to_hbm [thread:$0]  %s7626_s28, 32, %s10972_s22, [#allocation3]  }
0x2696   :  { %9429 = dma.done.wait [#allocation3], 32  }
0x2697   :  { %9430 = vsyncadd [#allocation3], 4294967264 }
0x2698   :  { %7632 = vsyncpa [#allocation3], 1 }

</bundles_post_ra>
